<compile_context>
chip_gen: v7x
topology: tpu7x:2x2x1
jax: 0.10.0
libtpu: 0.0.40
codegen_flags: <defaults>
</compile_context>

<pallas_src>
import functools

import jax
import jax.numpy as jnp
import numpy as np
from jax import lax
from jax.experimental import pallas as pl
from jax.experimental.pallas import tpu as pltpu


def _round_up(n, m):
    return ((n + m - 1) // m) * m


def lstm_kernel(x_ref, wih0_ref, whh0_ref, b0_ref,
                w1cat_ref, b1_ref, wfc_ref, bfc_ref,
                out_ref, g0_ref, *, hp, seq_len, b_tile):
    Hp = hp
    T = seq_len
    Bt = b_tile

    # ---- (1) hoisted layer-0 input projection: one (T*Bt, I) @ (I, 4Hp) matmul ----
    x2d = x_ref[0]                                            # (T*Bt, I), rows t-major
    g0_ref[...] = (jnp.dot(x2d, wih0_ref[...],
                           preferred_element_type=jnp.float32)
                   + b0_ref[...])                             # bias folded in once

    # ---- (4) hoist weight/bias loads out of the recurrence ----
    whh0 = whh0_ref[...]                                      # (Hp, 4Hp)
    w1cat = w1cat_ref[...]                                    # (2Hp, 4Hp) = [Wih1; Whh1]
    b1 = b1_ref[...]                                          # (1, 4Hp)

    def gates_to_hc(gates, c_prev):
        # (6) gate blocks padded to 128 lanes -> slices are vreg-aligned
        i = jax.nn.sigmoid(gates[:, 0 * Hp:1 * Hp])
        f = jax.nn.sigmoid(gates[:, 1 * Hp:2 * Hp])
        g = jnp.tanh(gates[:, 2 * Hp:3 * Hp])
        o = jax.nn.sigmoid(gates[:, 3 * Hp:4 * Hp])
        c_new = f * c_prev + i * g
        h_new = o * jnp.tanh(c_new)
        return h_new, c_new

    def cell0(t, h_prev, c_prev):
        # layer 0: precomputed input gates + recurrent matmul only
        r = pl.multiple_of(t * Bt, Bt)
        pre = g0_ref[pl.ds(r, Bt), :]
        gates = pre + jnp.dot(h_prev, whh0, preferred_element_type=jnp.float32)
        return gates_to_hc(gates, c_prev)

    def cell1(h_in, h_prev, c_prev):
        # (2) fused single matmul: [h1_t, h2_prev] @ [Wih1; Whh1]
        xh = jnp.concatenate([h_in, h_prev], axis=1)          # (Bt, 2Hp)
        gates = jnp.dot(xh, w1cat, preferred_element_type=jnp.float32) + b1
        return gates_to_hc(gates, c_prev)

    zeros = jnp.zeros((Bt, Hp), jnp.float32)

    # Peel layer-0 step 0 (h1(-1) = 0, so gates == precomputed input gates).
    h1, c1 = gates_to_hc(g0_ref[pl.ds(0, Bt), :], zeros)
    h2, c2 = zeros, zeros

    # ---- (3) wavefront: iteration k runs layer-0 step k and layer-1 step k-1 ----
    # The two cells only read values produced in earlier iterations, so the LLO
    # scheduler can interleave their MXU pushes and EUP transcendentals.
    def body(k, carry):
        h1_c, c1_c, h2_c, c2_c = carry
        h1_n, c1_n = cell0(k, h1_c, c1_c)        # layer 0, step k
        h2_n, c2_n = cell1(h1_c, h2_c, c2_c)     # layer 1, step k-1 (uses old h1)
        return h1_n, c1_n, h2_n, c2_n

    # (5) unrolled time loop, state carried in registers (no VMEM round-trips).
    h1, c1, h2, c2 = lax.fori_loop(1, T, body, (h1, c1, h2, c2), unroll=True)

    # Tail: layer-1 step T-1.
    h2, c2 = cell1(h1, h2, c2)

    # fc on the last timestep's top-layer hidden state; (7) lane-dense (Bt, 128) store.
    out_ref[...] = (jnp.dot(h2, wfc_ref[...], preferred_element_type=jnp.float32)
                    + bfc_ref[...])


def _pad_gate_weight(w, in_pad, H, Hp):
    """PyTorch (4H, in) gate weight -> (in_pad, 4*Hp) with gate blocks at Hp offsets."""
    in_dim = w.shape[1]
    w4 = w.T.reshape(in_dim, 4, H)                                   # (in, gate, H)
    w4 = jnp.pad(w4, ((0, in_pad - in_dim), (0, 0), (0, Hp - H)))
    return w4.reshape(in_pad, 4 * Hp)


def _pad_gate_bias(b, H, Hp):
    b4 = jnp.pad(b.reshape(4, H), ((0, 0), (0, Hp - H)))
    return b4.reshape(1, 4 * Hp)


def lstm_forward(x, params, hidden_size, *, b_tile=8):
    """x: (B, T, I) float32  ->  (B, output_size) float32."""
    B, T, I = x.shape
    O = params["w_fc"].shape[0]
    H = hidden_size
    Hp = _round_up(H, 128)          # gate block width, lane aligned
    Op = _round_up(O, 128)          # lane-dense output
    Bp = _round_up(B, b_tile)       # sublane-aligned batch
    n_bt = Bp // b_tile

    # --- input: pad batch, tile it, and lay each tile out time-major (t*Bt + b rows) ---
    x_p = jnp.pad(x, ((0, Bp - B), (0, 0), (0, 0)))                  # (Bp, T, I)
    x_p = x_p.reshape(n_bt, b_tile, T, I).transpose(0, 2, 1, 3)      # (n_bt, T, Bt, I)
    x_k = x_p.reshape(n_bt, T * b_tile, I)                           # (n_bt, T*Bt, I)

    # --- weights: transpose to (in, 4H), pad each gate block to Hp columns, pad rows ---
    wih0_p = _pad_gate_weight(params["w_ih_l0"], I, H, Hp)           # (I,   4Hp)
    whh0_p = _pad_gate_weight(params["w_hh_l0"], Hp, H, Hp)          # (Hp,  4Hp)
    b0_p = _pad_gate_bias(params["b_ih_l0"] + params["b_hh_l0"], H, Hp)

    wih1_p = _pad_gate_weight(params["w_ih_l1"], Hp, H, Hp)          # (Hp,  4Hp)
    whh1_p = _pad_gate_weight(params["w_hh_l1"], Hp, H, Hp)          # (Hp,  4Hp)
    w1cat = jnp.concatenate([wih1_p, whh1_p], axis=0)                # (2Hp, 4Hp)
    b1_p = _pad_gate_bias(params["b_ih_l1"] + params["b_hh_l1"], H, Hp)

    wfc_p = jnp.pad(params["w_fc"].T, ((0, Hp - H), (0, Op - O)))    # (Hp, Op)
    bfc_p = jnp.pad(params["b_fc"], (0, Op - O)).reshape(1, Op)

    kernel = functools.partial(lstm_kernel, hp=Hp, seq_len=T, b_tile=b_tile)

    out_p = pl.pallas_call(
        kernel,
        out_shape=jax.ShapeDtypeStruct((Bp, Op), jnp.float32),
        grid=(n_bt,),                                                # (8) batch tiles
        in_specs=[
            pl.BlockSpec((1, T * b_tile, I), lambda b: (b, 0, 0)),   # x tile
            pl.BlockSpec((I, 4 * Hp), lambda b: (0, 0)),             # W_ih0
            pl.BlockSpec((Hp, 4 * Hp), lambda b: (0, 0)),            # W_hh0
            pl.BlockSpec((1, 4 * Hp), lambda b: (0, 0)),             # b0
            pl.BlockSpec((2 * Hp, 4 * Hp), lambda b: (0, 0)),        # [W_ih1; W_hh1]
            pl.BlockSpec((1, 4 * Hp), lambda b: (0, 0)),             # b1
            pl.BlockSpec((Hp, Op), lambda b: (0, 0)),                # W_fc
            pl.BlockSpec((1, Op), lambda b: (0, 0)),                 # b_fc
        ],
        out_specs=pl.BlockSpec((b_tile, Op), lambda b: (b, 0)),
        scratch_shapes=[pltpu.VMEM((T * b_tile, 4 * Hp), jnp.float32)],  # hoisted gates
        compiler_params=pltpu.CompilerParams(
            dimension_semantics=("parallel",)),                      # megacore split
    )(x_k, wih0_p, whh0_p, b0_p, w1cat, b1_p, wfc_p, bfc_p)

    return out_p[:B, :O]


def lstm_forward_ref(x, params, hidden_size):
    """Pure-JAX reference reproducing torch.nn.LSTM(num_layers=2) + Linear."""
    H = hidden_size
    B, T, I = x.shape

    def run_layer(inp, wih, whh, bih, bhh):
        h = jnp.zeros((B, H), jnp.float32)
        c = jnp.zeros((B, H), jnp.float32)
        outs = []
        for t in range(T):
            g = inp[:, t, :] @ wih.T + bih + h @ whh.T + bhh
            i = jax.nn.sigmoid(g[:, 0 * H:1 * H])
            f = jax.nn.sigmoid(g[:, 1 * H:2 * H])
            gg = jnp.tanh(g[:, 2 * H:3 * H])
            o = jax.nn.sigmoid(g[:, 3 * H:4 * H])
            c = f * c + i * gg
            h = o * jnp.tanh(c)
            outs.append(h)
        return jnp.stack(outs, axis=1)

    o1 = run_layer(x, params["w_ih_l0"], params["w_hh_l0"],
                   params["b_ih_l0"], params["b_hh_l0"])
    o2 = run_layer(o1, params["w_ih_l1"], params["w_hh_l1"],
                   params["b_ih_l1"], params["b_hh_l1"])
    return o2[:, -1, :] @ params["w_fc"].T + params["b_fc"]


def init_params(key, input_size, hidden_size, output_size):
    """Deterministic init matching torch default U(-1/sqrt(H), 1/sqrt(H)) shapes."""
    H = hidden_size
    bound = 1.0 / np.sqrt(H)
    shapes = {
        "w_ih_l0": (4 * H, input_size),
        "w_hh_l0": (4 * H, H),
        "b_ih_l0": (4 * H,),
        "b_hh_l0": (4 * H,),
        "w_ih_l1": (4 * H, H),
        "w_hh_l1": (4 * H, H),
        "b_ih_l1": (4 * H,),
        "b_hh_l1": (4 * H,),
        "w_fc": (output_size, H),
        "b_fc": (output_size,),
    }
    params = {}
    for name, shape in shapes.items():
        key, sub = jax.random.split(key)
        params[name] = jax.random.uniform(
            sub, shape, jnp.float32, minval=-bound, maxval=bound)
    return params


if __name__ == "__main__":
    # Shapes consistent with the module: hidden_size=64, num_layers=2,
    # output_size == input_size (= data_matrix.shape[0]); batch chosen to exercise
    # two batch tiles on the parallel grid axis.
    batch, seq_len = 16, 12
    input_size, hidden_size, output_size = 16, 64, 16

    key = jax.random.PRNGKey(0)
    kx, kp = jax.random.split(key)
    x = jax.random.normal(kx, (batch, seq_len, input_size), jnp.float32)
    params = init_params(kp, input_size, hidden_size, output_size)

    out = jax.block_until_ready(lstm_forward(x, params, hidden_size))

    ref = lstm_forward_ref(x, params, hidden_size)
    np.testing.assert_allclose(np.asarray(out), np.asarray(ref),
                               rtol=2e-5, atol=2e-5)
    print("KERNEL_OK")
</pallas_src>

<mosaic_0001>
module attributes {stable_mosaic.version = 11 : i64} {
  func.func @lstm_kernel(%arg0: i32, %arg1: memref<1x96x16xf32, #tpu.memory_space<vmem>>, %arg2: memref<16x512xf32, #tpu.memory_space<vmem>>, %arg3: memref<128x512xf32, #tpu.memory_space<vmem>>, %arg4: memref<1x512xf32, #tpu.memory_space<vmem>>, %arg5: memref<256x512xf32, #tpu.memory_space<vmem>>, %arg6: memref<1x512xf32, #tpu.memory_space<vmem>>, %arg7: memref<128x128xf32, #tpu.memory_space<vmem>>, %arg8: memref<1x128xf32, #tpu.memory_space<vmem>>, %arg9: memref<8x128xf32, #tpu.memory_space<vmem>>, %arg10: memref<96x512xf32, #tpu.memory_space<vmem>>) attributes {dimension_semantics = [#tpu.dimension_semantics<parallel>], iteration_bounds = array<i64: 2>, scalar_prefetch = 0 : i64, scratch_operands = 1 : i64, tpu.core_type = #tpu.core_type<tc>, window_params = [{transform_indices = @transform_0, window_bounds = array<i64: 1, 96, 16>}, {pipeline_mode = #tpu.pipeline_mode<synchronous>, transform_indices = @transform_1, window_bounds = array<i64: 16, 512>}, {pipeline_mode = #tpu.pipeline_mode<synchronous>, transform_indices = @transform_2, window_bounds = array<i64: 128, 512>}, {pipeline_mode = #tpu.pipeline_mode<synchronous>, transform_indices = @transform_3, window_bounds = array<i64: 1, 512>}, {pipeline_mode = #tpu.pipeline_mode<synchronous>, transform_indices = @transform_4, window_bounds = array<i64: 256, 512>}, {pipeline_mode = #tpu.pipeline_mode<synchronous>, transform_indices = @transform_5, window_bounds = array<i64: 1, 512>}, {pipeline_mode = #tpu.pipeline_mode<synchronous>, transform_indices = @transform_6, window_bounds = array<i64: 128, 128>}, {pipeline_mode = #tpu.pipeline_mode<synchronous>, transform_indices = @transform_7, window_bounds = array<i64: 1, 128>}, {transform_indices = @transform_8, window_bounds = array<i64: 8, 128>}]} {
    %c0 = arith.constant 0 : index
    %c0_0 = arith.constant 0 : index
    %c0_1 = arith.constant 0 : index
    %0 = vector.load %arg1[%c0, %c0_0, %c0_1] : memref<1x96x16xf32, #tpu.memory_space<vmem>>, vector<1x96x16xf32>
    %1 = vector.shape_cast %0 : vector<1x96x16xf32> to vector<96x16xf32>
    %c0_2 = arith.constant 0 : index
    %c0_3 = arith.constant 0 : index
    %2 = vector.load %arg2[%c0_2, %c0_3] : memref<16x512xf32, #tpu.memory_space<vmem>>, vector<16x512xf32>
    %cst = arith.constant dense<0.000000e+00> : vector<96x512xf32>
    %3 = tpu.matmul %1, %2, %cst {dimension_numbers = #tpu.dot_dimension_numbers<[1], [0], [0], [1], [0, 0, 1, 1], [], []>} : vector<96x16xf32>, vector<16x512xf32>, vector<96x512xf32> -> vector<96x512xf32>
    %c0_4 = arith.constant 0 : index
    %c0_5 = arith.constant 0 : index
    %4 = vector.load %arg4[%c0_4, %c0_5] : memref<1x512xf32, #tpu.memory_space<vmem>>, vector<1x512xf32>
    %5 = vector.broadcast %4 : vector<1x512xf32> to vector<96x512xf32>
    %6 = arith.addf %3, %5 : vector<96x512xf32>
    %c0_6 = arith.constant 0 : index
    %c0_7 = arith.constant 0 : index
    %7 = vector.load %arg10[%c0_6, %c0_7] : memref<96x512xf32, #tpu.memory_space<vmem>>, vector<96x512xf32>
    tpu.vector_store %arg10[%c0_6, %c0_7], %6 {strides = array<i32>} : memref<96x512xf32, #tpu.memory_space<vmem>>, vector<96x512xf32>,
    %c0_8 = arith.constant 0 : index
    %c0_9 = arith.constant 0 : index
    %8 = vector.load %arg3[%c0_8, %c0_9] : memref<128x512xf32, #tpu.memory_space<vmem>>, vector<128x512xf32>
    %c0_10 = arith.constant 0 : index
    %c0_11 = arith.constant 0 : index
    %9 = vector.load %arg5[%c0_10, %c0_11] : memref<256x512xf32, #tpu.memory_space<vmem>>, vector<256x512xf32>
    %c0_12 = arith.constant 0 : index
    %c0_13 = arith.constant 0 : index
    %10 = vector.load %arg6[%c0_12, %c0_13] : memref<1x512xf32, #tpu.memory_space<vmem>>, vector<1x512xf32>
    %cst_14 = arith.constant 0.000000e+00 : f32
    %11 = vector.broadcast %cst_14 : f32 to vector<8x128xf32>
    %c0_15 = arith.constant 0 : index
    %c0_16 = arith.constant 0 : index
    %12 = vector.load %arg10[%c0_15, %c0_16] : memref<96x512xf32, #tpu.memory_space<vmem>>, vector<8x512xf32>
    %13 = vector.extract_strided_slice %12 {offsets = [0, 0], sizes = [8, 128], strides = [1, 1]} : vector<8x512xf32> to vector<8x128xf32>
    %14 = arith.negf %13 : vector<8x128xf32>
    %15 = math.exp %14 : vector<8x128xf32>
    %cst_17 = arith.constant 1.000000e+00 : f32
    %16 = vector.broadcast %cst_17 : f32 to vector<8x128xf32>
    %17 = arith.addf %16, %15 : vector<8x128xf32>
    %18 = arith.divf %16, %17 : vector<8x128xf32>
    %19 = vector.extract_strided_slice %12 {offsets = [0, 128], sizes = [8, 128], strides = [1, 1]} : vector<8x512xf32> to vector<8x128xf32>
    %20 = arith.negf %19 : vector<8x128xf32>
    %21 = math.exp %20 : vector<8x128xf32>
    %cst_18 = arith.constant 1.000000e+00 : f32
    %22 = vector.broadcast %cst_18 : f32 to vector<8x128xf32>
    %23 = arith.addf %22, %21 : vector<8x128xf32>
    %24 = arith.divf %22, %23 : vector<8x128xf32>
    %25 = vector.extract_strided_slice %12 {offsets = [0, 256], sizes = [8, 128], strides = [1, 1]} : vector<8x512xf32> to vector<8x128xf32>
    %26 = math.tanh %25 : vector<8x128xf32>
    %27 = vector.extract_strided_slice %12 {offsets = [0, 384], sizes = [8, 128], strides = [1, 1]} : vector<8x512xf32> to vector<8x128xf32>
    %28 = arith.negf %27 : vector<8x128xf32>
    %29 = math.exp %28 : vector<8x128xf32>
    %cst_19 = arith.constant 1.000000e+00 : f32
    %30 = vector.broadcast %cst_19 : f32 to vector<8x128xf32>
    %31 = arith.addf %30, %29 : vector<8x128xf32>
    %32 = arith.divf %30, %31 : vector<8x128xf32>
    %33 = arith.mulf %24, %11 : vector<8x128xf32>
    %34 = arith.mulf %18, %26 : vector<8x128xf32>
    %35 = arith.addf %33, %34 : vector<8x128xf32>
    %36 = math.tanh %35 : vector<8x128xf32>
    %37 = arith.mulf %32, %36 : vector<8x128xf32>
    %c1_i32 = arith.constant 1 : i32
    %c8_i32 = arith.constant 8 : i32
    %38 = arith.muli %c1_i32, %c8_i32 : i32
    %39 = tpu.assume_multiple %38, 8 : i32
    %40 = arith.index_cast %39 : i32 to index
    %c0_20 = arith.constant 0 : index
    %41 = vector.load %arg10[%40, %c0_20] : memref<96x512xf32, #tpu.memory_space<vmem>>, vector<8x512xf32>
    %cst_21 = arith.constant dense<0.000000e+00> : vector<8x512xf32>
    %42 = tpu.matmul %37, %8, %cst_21 {dimension_numbers = #tpu.dot_dimension_numbers<[1], [0], [0], [1], [0, 0, 1, 1], [], []>} : vector<8x128xf32>, vector<128x512xf32>, vector<8x512xf32> -> vector<8x512xf32>
    %43 = arith.addf %41, %42 : vector<8x512xf32>
    %44 = vector.extract_strided_slice %43 {offsets = [0, 0], sizes = [8, 128], strides = [1, 1]} : vector<8x512xf32> to vector<8x128xf32>
    %45 = arith.negf %44 : vector<8x128xf32>
    %46 = math.exp %45 : vector<8x128xf32>
    %cst_22 = arith.constant 1.000000e+00 : f32
    %47 = vector.broadcast %cst_22 : f32 to vector<8x128xf32>
    %48 = arith.addf %47, %46 : vector<8x128xf32>
    %49 = arith.divf %47, %48 : vector<8x128xf32>
    %50 = vector.extract_strided_slice %43 {offsets = [0, 128], sizes = [8, 128], strides = [1, 1]} : vector<8x512xf32> to vector<8x128xf32>
    %51 = arith.negf %50 : vector<8x128xf32>
    %52 = math.exp %51 : vector<8x128xf32>
    %cst_23 = arith.constant 1.000000e+00 : f32
    %53 = vector.broadcast %cst_23 : f32 to vector<8x128xf32>
    %54 = arith.addf %53, %52 : vector<8x128xf32>
    %55 = arith.divf %53, %54 : vector<8x128xf32>
    %56 = vector.extract_strided_slice %43 {offsets = [0, 256], sizes = [8, 128], strides = [1, 1]} : vector<8x512xf32> to vector<8x128xf32>
    %57 = math.tanh %56 : vector<8x128xf32>
    %58 = vector.extract_strided_slice %43 {offsets = [0, 384], sizes = [8, 128], strides = [1, 1]} : vector<8x512xf32> to vector<8x128xf32>
    %59 = arith.negf %58 : vector<8x128xf32>
    %60 = math.exp %59 : vector<8x128xf32>
    %cst_24 = arith.constant 1.000000e+00 : f32
    %61 = vector.broadcast %cst_24 : f32 to vector<8x128xf32>
    %62 = arith.addf %61, %60 : vector<8x128xf32>
    %63 = arith.divf %61, %62 : vector<8x128xf32>
    %64 = arith.mulf %55, %35 : vector<8x128xf32>
    %65 = arith.mulf %49, %57 : vector<8x128xf32>
    %66 = arith.addf %64, %65 : vector<8x128xf32>
    %67 = math.tanh %66 : vector<8x128xf32>
    %68 = arith.mulf %63, %67 : vector<8x128xf32>
    %69 = tpu.concatenate %37, %11 in 1 : vector<8x128xf32>, vector<8x128xf32> -> vector<8x256xf32>
    %cst_25 = arith.constant dense<0.000000e+00> : vector<8x512xf32>
    %70 = tpu.matmul %69, %9, %cst_25 {dimension_numbers = #tpu.dot_dimension_numbers<[1], [0], [0], [1], [0, 0, 1, 1], [], []>} : vector<8x256xf32>, vector<256x512xf32>, vector<8x512xf32> -> vector<8x512xf32>
    %71 = vector.broadcast %10 : vector<1x512xf32> to vector<8x512xf32>
    %72 = arith.addf %70, %71 : vector<8x512xf32>
    %73 = vector.extract_strided_slice %72 {offsets = [0, 0], sizes = [8, 128], strides = [1, 1]} : vector<8x512xf32> to vector<8x128xf32>
    %74 = arith.negf %73 : vector<8x128xf32>
    %75 = math.exp %74 : vector<8x128xf32>
    %cst_26 = arith.constant 1.000000e+00 : f32
    %76 = vector.broadcast %cst_26 : f32 to vector<8x128xf32>
    %77 = arith.addf %76, %75 : vector<8x128xf32>
    %78 = arith.divf %76, %77 : vector<8x128xf32>
    %79 = vector.extract_strided_slice %72 {offsets = [0, 128], sizes = [8, 128], strides = [1, 1]} : vector<8x512xf32> to vector<8x128xf32>
    %80 = arith.negf %79 : vector<8x128xf32>
    %81 = math.exp %80 : vector<8x128xf32>
    %cst_27 = arith.constant 1.000000e+00 : f32
    %82 = vector.broadcast %cst_27 : f32 to vector<8x128xf32>
    %83 = arith.addf %82, %81 : vector<8x128xf32>
    %84 = arith.divf %82, %83 : vector<8x128xf32>
    %85 = vector.extract_strided_slice %72 {offsets = [0, 256], sizes = [8, 128], strides = [1, 1]} : vector<8x512xf32> to vector<8x128xf32>
    %86 = math.tanh %85 : vector<8x128xf32>
    %87 = vector.extract_strided_slice %72 {offsets = [0, 384], sizes = [8, 128], strides = [1, 1]} : vector<8x512xf32> to vector<8x128xf32>
    %88 = arith.negf %87 : vector<8x128xf32>
    %89 = math.exp %88 : vector<8x128xf32>
    %cst_28 = arith.constant 1.000000e+00 : f32
    %90 = vector.broadcast %cst_28 : f32 to vector<8x128xf32>
    %91 = arith.addf %90, %89 : vector<8x128xf32>
    %92 = arith.divf %90, %91 : vector<8x128xf32>
    %93 = arith.mulf %84, %11 : vector<8x128xf32>
    %94 = arith.mulf %78, %86 : vector<8x128xf32>
    %95 = arith.addf %93, %94 : vector<8x128xf32>
    %96 = math.tanh %95 : vector<8x128xf32>
    %97 = arith.mulf %92, %96 : vector<8x128xf32>
    %c2_i32 = arith.constant 2 : i32
    %c8_i32_29 = arith.constant 8 : i32
    %98 = arith.muli %c2_i32, %c8_i32_29 : i32
    %99 = tpu.assume_multiple %98, 8 : i32
    %100 = arith.index_cast %99 : i32 to index
    %c0_30 = arith.constant 0 : index
    %101 = vector.load %arg10[%100, %c0_30] : memref<96x512xf32, #tpu.memory_space<vmem>>, vector<8x512xf32>
    %cst_31 = arith.constant dense<0.000000e+00> : vector<8x512xf32>
    %102 = tpu.matmul %68, %8, %cst_31 {dimension_numbers = #tpu.dot_dimension_numbers<[1], [0], [0], [1], [0, 0, 1, 1], [], []>} : vector<8x128xf32>, vector<128x512xf32>, vector<8x512xf32> -> vector<8x512xf32>
    %103 = arith.addf %101, %102 : vector<8x512xf32>
    %104 = vector.extract_strided_slice %103 {offsets = [0, 0], sizes = [8, 128], strides = [1, 1]} : vector<8x512xf32> to vector<8x128xf32>
    %105 = arith.negf %104 : vector<8x128xf32>
    %106 = math.exp %105 : vector<8x128xf32>
    %cst_32 = arith.constant 1.000000e+00 : f32
    %107 = vector.broadcast %cst_32 : f32 to vector<8x128xf32>
    %108 = arith.addf %107, %106 : vector<8x128xf32>
    %109 = arith.divf %107, %108 : vector<8x128xf32>
    %110 = vector.extract_strided_slice %103 {offsets = [0, 128], sizes = [8, 128], strides = [1, 1]} : vector<8x512xf32> to vector<8x128xf32>
    %111 = arith.negf %110 : vector<8x128xf32>
    %112 = math.exp %111 : vector<8x128xf32>
    %cst_33 = arith.constant 1.000000e+00 : f32
    %113 = vector.broadcast %cst_33 : f32 to vector<8x128xf32>
    %114 = arith.addf %113, %112 : vector<8x128xf32>
    %115 = arith.divf %113, %114 : vector<8x128xf32>
    %116 = vector.extract_strided_slice %103 {offsets = [0, 256], sizes = [8, 128], strides = [1, 1]} : vector<8x512xf32> to vector<8x128xf32>
    %117 = math.tanh %116 : vector<8x128xf32>
    %118 = vector.extract_strided_slice %103 {offsets = [0, 384], sizes = [8, 128], strides = [1, 1]} : vector<8x512xf32> to vector<8x128xf32>
    %119 = arith.negf %118 : vector<8x128xf32>
    %120 = math.exp %119 : vector<8x128xf32>
    %cst_34 = arith.constant 1.000000e+00 : f32
    %121 = vector.broadcast %cst_34 : f32 to vector<8x128xf32>
    %122 = arith.addf %121, %120 : vector<8x128xf32>
    %123 = arith.divf %121, %122 : vector<8x128xf32>
    %124 = arith.mulf %115, %66 : vector<8x128xf32>
    %125 = arith.mulf %109, %117 : vector<8x128xf32>
    %126 = arith.addf %124, %125 : vector<8x128xf32>
    %127 = math.tanh %126 : vector<8x128xf32>
    %128 = arith.mulf %123, %127 : vector<8x128xf32>
    %129 = tpu.concatenate %68, %97 in 1 : vector<8x128xf32>, vector<8x128xf32> -> vector<8x256xf32>
    %cst_35 = arith.constant dense<0.000000e+00> : vector<8x512xf32>
    %130 = tpu.matmul %129, %9, %cst_35 {dimension_numbers = #tpu.dot_dimension_numbers<[1], [0], [0], [1], [0, 0, 1, 1], [], []>} : vector<8x256xf32>, vector<256x512xf32>, vector<8x512xf32> -> vector<8x512xf32>
    %131 = vector.broadcast %10 : vector<1x512xf32> to vector<8x512xf32>
    %132 = arith.addf %130, %131 : vector<8x512xf32>
    %133 = vector.extract_strided_slice %132 {offsets = [0, 0], sizes = [8, 128], strides = [1, 1]} : vector<8x512xf32> to vector<8x128xf32>
    %134 = arith.negf %133 : vector<8x128xf32>
    %135 = math.exp %134 : vector<8x128xf32>
    %cst_36 = arith.constant 1.000000e+00 : f32
    %136 = vector.broadcast %cst_36 : f32 to vector<8x128xf32>
    %137 = arith.addf %136, %135 : vector<8x128xf32>
    %138 = arith.divf %136, %137 : vector<8x128xf32>
    %139 = vector.extract_strided_slice %132 {offsets = [0, 128], sizes = [8, 128], strides = [1, 1]} : vector<8x512xf32> to vector<8x128xf32>
    %140 = arith.negf %139 : vector<8x128xf32>
    %141 = math.exp %140 : vector<8x128xf32>
    %cst_37 = arith.constant 1.000000e+00 : f32
    %142 = vector.broadcast %cst_37 : f32 to vector<8x128xf32>
    %143 = arith.addf %142, %141 : vector<8x128xf32>
    %144 = arith.divf %142, %143 : vector<8x128xf32>
    %145 = vector.extract_strided_slice %132 {offsets = [0, 256], sizes = [8, 128], strides = [1, 1]} : vector<8x512xf32> to vector<8x128xf32>
    %146 = math.tanh %145 : vector<8x128xf32>
    %147 = vector.extract_strided_slice %132 {offsets = [0, 384], sizes = [8, 128], strides = [1, 1]} : vector<8x512xf32> to vector<8x128xf32>
    %148 = arith.negf %147 : vector<8x128xf32>
    %149 = math.exp %148 : vector<8x128xf32>
    %cst_38 = arith.constant 1.000000e+00 : f32
    %150 = vector.broadcast %cst_38 : f32 to vector<8x128xf32>
    %151 = arith.addf %150, %149 : vector<8x128xf32>
    %152 = arith.divf %150, %151 : vector<8x128xf32>
    %153 = arith.mulf %144, %95 : vector<8x128xf32>
    %154 = arith.mulf %138, %146 : vector<8x128xf32>
    %155 = arith.addf %153, %154 : vector<8x128xf32>
    %156 = math.tanh %155 : vector<8x128xf32>
    %157 = arith.mulf %152, %156 : vector<8x128xf32>
    %c3_i32 = arith.constant 3 : i32
    %c8_i32_39 = arith.constant 8 : i32
    %158 = arith.muli %c3_i32, %c8_i32_39 : i32
    %159 = tpu.assume_multiple %158, 8 : i32
    %160 = arith.index_cast %159 : i32 to index
    %c0_40 = arith.constant 0 : index
    %161 = vector.load %arg10[%160, %c0_40] : memref<96x512xf32, #tpu.memory_space<vmem>>, vector<8x512xf32>
    %cst_41 = arith.constant dense<0.000000e+00> : vector<8x512xf32>
    %162 = tpu.matmul %128, %8, %cst_41 {dimension_numbers = #tpu.dot_dimension_numbers<[1], [0], [0], [1], [0, 0, 1, 1], [], []>} : vector<8x128xf32>, vector<128x512xf32>, vector<8x512xf32> -> vector<8x512xf32>
    %163 = arith.addf %161, %162 : vector<8x512xf32>
    %164 = vector.extract_strided_slice %163 {offsets = [0, 0], sizes = [8, 128], strides = [1, 1]} : vector<8x512xf32> to vector<8x128xf32>
    %165 = arith.negf %164 : vector<8x128xf32>
    %166 = math.exp %165 : vector<8x128xf32>
    %cst_42 = arith.constant 1.000000e+00 : f32
    %167 = vector.broadcast %cst_42 : f32 to vector<8x128xf32>
    %168 = arith.addf %167, %166 : vector<8x128xf32>
    %169 = arith.divf %167, %168 : vector<8x128xf32>
    %170 = vector.extract_strided_slice %163 {offsets = [0, 128], sizes = [8, 128], strides = [1, 1]} : vector<8x512xf32> to vector<8x128xf32>
    %171 = arith.negf %170 : vector<8x128xf32>
    %172 = math.exp %171 : vector<8x128xf32>
    %cst_43 = arith.constant 1.000000e+00 : f32
    %173 = vector.broadcast %cst_43 : f32 to vector<8x128xf32>
    %174 = arith.addf %173, %172 : vector<8x128xf32>
    %175 = arith.divf %173, %174 : vector<8x128xf32>
    %176 = vector.extract_strided_slice %163 {offsets = [0, 256], sizes = [8, 128], strides = [1, 1]} : vector<8x512xf32> to vector<8x128xf32>
    %177 = math.tanh %176 : vector<8x128xf32>
    %178 = vector.extract_strided_slice %163 {offsets = [0, 384], sizes = [8, 128], strides = [1, 1]} : vector<8x512xf32> to vector<8x128xf32>
    %179 = arith.negf %178 : vector<8x128xf32>
    %180 = math.exp %179 : vector<8x128xf32>
    %cst_44 = arith.constant 1.000000e+00 : f32
    %181 = vector.broadcast %cst_44 : f32 to vector<8x128xf32>
    %182 = arith.addf %181, %180 : vector<8x128xf32>
    %183 = arith.divf %181, %182 : vector<8x128xf32>
    %184 = arith.mulf %175, %126 : vector<8x128xf32>
    %185 = arith.mulf %169, %177 : vector<8x128xf32>
    %186 = arith.addf %184, %185 : vector<8x128xf32>
    %187 = math.tanh %186 : vector<8x128xf32>
    %188 = arith.mulf %183, %187 : vector<8x128xf32>
    %189 = tpu.concatenate %128, %157 in 1 : vector<8x128xf32>, vector<8x128xf32> -> vector<8x256xf32>
    %cst_45 = arith.constant dense<0.000000e+00> : vector<8x512xf32>
    %190 = tpu.matmul %189, %9, %cst_45 {dimension_numbers = #tpu.dot_dimension_numbers<[1], [0], [0], [1], [0, 0, 1, 1], [], []>} : vector<8x256xf32>, vector<256x512xf32>, vector<8x512xf32> -> vector<8x512xf32>
    %191 = vector.broadcast %10 : vector<1x512xf32> to vector<8x512xf32>
    %192 = arith.addf %190, %191 : vector<8x512xf32>
    %193 = vector.extract_strided_slice %192 {offsets = [0, 0], sizes = [8, 128], strides = [1, 1]} : vector<8x512xf32> to vector<8x128xf32>
    %194 = arith.negf %193 : vector<8x128xf32>
    %195 = math.exp %194 : vector<8x128xf32>
    %cst_46 = arith.constant 1.000000e+00 : f32
    %196 = vector.broadcast %cst_46 : f32 to vector<8x128xf32>
    %197 = arith.addf %196, %195 : vector<8x128xf32>
    %198 = arith.divf %196, %197 : vector<8x128xf32>
    %199 = vector.extract_strided_slice %192 {offsets = [0, 128], sizes = [8, 128], strides = [1, 1]} : vector<8x512xf32> to vector<8x128xf32>
    %200 = arith.negf %199 : vector<8x128xf32>
    %201 = math.exp %200 : vector<8x128xf32>
    %cst_47 = arith.constant 1.000000e+00 : f32
    %202 = vector.broadcast %cst_47 : f32 to vector<8x128xf32>
    %203 = arith.addf %202, %201 : vector<8x128xf32>
    %204 = arith.divf %202, %203 : vector<8x128xf32>
    %205 = vector.extract_strided_slice %192 {offsets = [0, 256], sizes = [8, 128], strides = [1, 1]} : vector<8x512xf32> to vector<8x128xf32>
    %206 = math.tanh %205 : vector<8x128xf32>
    %207 = vector.extract_strided_slice %192 {offsets = [0, 384], sizes = [8, 128], strides = [1, 1]} : vector<8x512xf32> to vector<8x128xf32>
    %208 = arith.negf %207 : vector<8x128xf32>
    %209 = math.exp %208 : vector<8x128xf32>
    %cst_48 = arith.constant 1.000000e+00 : f32
    %210 = vector.broadcast %cst_48 : f32 to vector<8x128xf32>
    %211 = arith.addf %210, %209 : vector<8x128xf32>
    %212 = arith.divf %210, %211 : vector<8x128xf32>
    %213 = arith.mulf %204, %155 : vector<8x128xf32>
    %214 = arith.mulf %198, %206 : vector<8x128xf32>
    %215 = arith.addf %213, %214 : vector<8x128xf32>
    %216 = math.tanh %215 : vector<8x128xf32>
    %217 = arith.mulf %212, %216 : vector<8x128xf32>
    %c4_i32 = arith.constant 4 : i32
    %c8_i32_49 = arith.constant 8 : i32
    %218 = arith.muli %c4_i32, %c8_i32_49 : i32
    %219 = tpu.assume_multiple %218, 8 : i32
    %220 = arith.index_cast %219 : i32 to index
    %c0_50 = arith.constant 0 : index
    %221 = vector.load %arg10[%220, %c0_50] : memref<96x512xf32, #tpu.memory_space<vmem>>, vector<8x512xf32>
    %cst_51 = arith.constant dense<0.000000e+00> : vector<8x512xf32>
    %222 = tpu.matmul %188, %8, %cst_51 {dimension_numbers = #tpu.dot_dimension_numbers<[1], [0], [0], [1], [0, 0, 1, 1], [], []>} : vector<8x128xf32>, vector<128x512xf32>, vector<8x512xf32> -> vector<8x512xf32>
    %223 = arith.addf %221, %222 : vector<8x512xf32>
    %224 = vector.extract_strided_slice %223 {offsets = [0, 0], sizes = [8, 128], strides = [1, 1]} : vector<8x512xf32> to vector<8x128xf32>
    %225 = arith.negf %224 : vector<8x128xf32>
    %226 = math.exp %225 : vector<8x128xf32>
    %cst_52 = arith.constant 1.000000e+00 : f32
    %227 = vector.broadcast %cst_52 : f32 to vector<8x128xf32>
    %228 = arith.addf %227, %226 : vector<8x128xf32>
    %229 = arith.divf %227, %228 : vector<8x128xf32>
    %230 = vector.extract_strided_slice %223 {offsets = [0, 128], sizes = [8, 128], strides = [1, 1]} : vector<8x512xf32> to vector<8x128xf32>
    %231 = arith.negf %230 : vector<8x128xf32>
    %232 = math.exp %231 : vector<8x128xf32>
    %cst_53 = arith.constant 1.000000e+00 : f32
    %233 = vector.broadcast %cst_53 : f32 to vector<8x128xf32>
    %234 = arith.addf %233, %232 : vector<8x128xf32>
    %235 = arith.divf %233, %234 : vector<8x128xf32>
    %236 = vector.extract_strided_slice %223 {offsets = [0, 256], sizes = [8, 128], strides = [1, 1]} : vector<8x512xf32> to vector<8x128xf32>
    %237 = math.tanh %236 : vector<8x128xf32>
    %238 = vector.extract_strided_slice %223 {offsets = [0, 384], sizes = [8, 128], strides = [1, 1]} : vector<8x512xf32> to vector<8x128xf32>
    %239 = arith.negf %238 : vector<8x128xf32>
    %240 = math.exp %239 : vector<8x128xf32>
    %cst_54 = arith.constant 1.000000e+00 : f32
    %241 = vector.broadcast %cst_54 : f32 to vector<8x128xf32>
    %242 = arith.addf %241, %240 : vector<8x128xf32>
    %243 = arith.divf %241, %242 : vector<8x128xf32>
    %244 = arith.mulf %235, %186 : vector<8x128xf32>
    %245 = arith.mulf %229, %237 : vector<8x128xf32>
    %246 = arith.addf %244, %245 : vector<8x128xf32>
    %247 = math.tanh %246 : vector<8x128xf32>
    %248 = arith.mulf %243, %247 : vector<8x128xf32>
    %249 = tpu.concatenate %188, %217 in 1 : vector<8x128xf32>, vector<8x128xf32> -> vector<8x256xf32>
    %cst_55 = arith.constant dense<0.000000e+00> : vector<8x512xf32>
    %250 = tpu.matmul %249, %9, %cst_55 {dimension_numbers = #tpu.dot_dimension_numbers<[1], [0], [0], [1], [0, 0, 1, 1], [], []>} : vector<8x256xf32>, vector<256x512xf32>, vector<8x512xf32> -> vector<8x512xf32>
    %251 = vector.broadcast %10 : vector<1x512xf32> to vector<8x512xf32>
    %252 = arith.addf %250, %251 : vector<8x512xf32>
    %253 = vector.extract_strided_slice %252 {offsets = [0, 0], sizes = [8, 128], strides = [1, 1]} : vector<8x512xf32> to vector<8x128xf32>
    %254 = arith.negf %253 : vector<8x128xf32>
    %255 = math.exp %254 : vector<8x128xf32>
    %cst_56 = arith.constant 1.000000e+00 : f32
    %256 = vector.broadcast %cst_56 : f32 to vector<8x128xf32>
    %257 = arith.addf %256, %255 : vector<8x128xf32>
    %258 = arith.divf %256, %257 : vector<8x128xf32>
    %259 = vector.extract_strided_slice %252 {offsets = [0, 128], sizes = [8, 128], strides = [1, 1]} : vector<8x512xf32> to vector<8x128xf32>
    %260 = arith.negf %259 : vector<8x128xf32>
    %261 = math.exp %260 : vector<8x128xf32>
    %cst_57 = arith.constant 1.000000e+00 : f32
    %262 = vector.broadcast %cst_57 : f32 to vector<8x128xf32>
    %263 = arith.addf %262, %261 : vector<8x128xf32>
    %264 = arith.divf %262, %263 : vector<8x128xf32>
    %265 = vector.extract_strided_slice %252 {offsets = [0, 256], sizes = [8, 128], strides = [1, 1]} : vector<8x512xf32> to vector<8x128xf32>
    %266 = math.tanh %265 : vector<8x128xf32>
    %267 = vector.extract_strided_slice %252 {offsets = [0, 384], sizes = [8, 128], strides = [1, 1]} : vector<8x512xf32> to vector<8x128xf32>
    %268 = arith.negf %267 : vector<8x128xf32>
    %269 = math.exp %268 : vector<8x128xf32>
    %cst_58 = arith.constant 1.000000e+00 : f32
    %270 = vector.broadcast %cst_58 : f32 to vector<8x128xf32>
    %271 = arith.addf %270, %269 : vector<8x128xf32>
    %272 = arith.divf %270, %271 : vector<8x128xf32>
    %273 = arith.mulf %264, %215 : vector<8x128xf32>
    %274 = arith.mulf %258, %266 : vector<8x128xf32>
    %275 = arith.addf %273, %274 : vector<8x128xf32>
    %276 = math.tanh %275 : vector<8x128xf32>
    %277 = arith.mulf %272, %276 : vector<8x128xf32>
    %c5_i32 = arith.constant 5 : i32
    %c8_i32_59 = arith.constant 8 : i32
    %278 = arith.muli %c5_i32, %c8_i32_59 : i32
    %279 = tpu.assume_multiple %278, 8 : i32
    %280 = arith.index_cast %279 : i32 to index
    %c0_60 = arith.constant 0 : index
    %281 = vector.load %arg10[%280, %c0_60] : memref<96x512xf32, #tpu.memory_space<vmem>>, vector<8x512xf32>
    %cst_61 = arith.constant dense<0.000000e+00> : vector<8x512xf32>
    %282 = tpu.matmul %248, %8, %cst_61 {dimension_numbers = #tpu.dot_dimension_numbers<[1], [0], [0], [1], [0, 0, 1, 1], [], []>} : vector<8x128xf32>, vector<128x512xf32>, vector<8x512xf32> -> vector<8x512xf32>
    %283 = arith.addf %281, %282 : vector<8x512xf32>
    %284 = vector.extract_strided_slice %283 {offsets = [0, 0], sizes = [8, 128], strides = [1, 1]} : vector<8x512xf32> to vector<8x128xf32>
    %285 = arith.negf %284 : vector<8x128xf32>
    %286 = math.exp %285 : vector<8x128xf32>
    %cst_62 = arith.constant 1.000000e+00 : f32
    %287 = vector.broadcast %cst_62 : f32 to vector<8x128xf32>
    %288 = arith.addf %287, %286 : vector<8x128xf32>
    %289 = arith.divf %287, %288 : vector<8x128xf32>
    %290 = vector.extract_strided_slice %283 {offsets = [0, 128], sizes = [8, 128], strides = [1, 1]} : vector<8x512xf32> to vector<8x128xf32>
    %291 = arith.negf %290 : vector<8x128xf32>
    %292 = math.exp %291 : vector<8x128xf32>
    %cst_63 = arith.constant 1.000000e+00 : f32
    %293 = vector.broadcast %cst_63 : f32 to vector<8x128xf32>
    %294 = arith.addf %293, %292 : vector<8x128xf32>
    %295 = arith.divf %293, %294 : vector<8x128xf32>
    %296 = vector.extract_strided_slice %283 {offsets = [0, 256], sizes = [8, 128], strides = [1, 1]} : vector<8x512xf32> to vector<8x128xf32>
    %297 = math.tanh %296 : vector<8x128xf32>
    %298 = vector.extract_strided_slice %283 {offsets = [0, 384], sizes = [8, 128], strides = [1, 1]} : vector<8x512xf32> to vector<8x128xf32>
    %299 = arith.negf %298 : vector<8x128xf32>
    %300 = math.exp %299 : vector<8x128xf32>
    %cst_64 = arith.constant 1.000000e+00 : f32
    %301 = vector.broadcast %cst_64 : f32 to vector<8x128xf32>
    %302 = arith.addf %301, %300 : vector<8x128xf32>
    %303 = arith.divf %301, %302 : vector<8x128xf32>
    %304 = arith.mulf %295, %246 : vector<8x128xf32>
    %305 = arith.mulf %289, %297 : vector<8x128xf32>
    %306 = arith.addf %304, %305 : vector<8x128xf32>
    %307 = math.tanh %306 : vector<8x128xf32>
    %308 = arith.mulf %303, %307 : vector<8x128xf32>
    %309 = tpu.concatenate %248, %277 in 1 : vector<8x128xf32>, vector<8x128xf32> -> vector<8x256xf32>
    %cst_65 = arith.constant dense<0.000000e+00> : vector<8x512xf32>
    %310 = tpu.matmul %309, %9, %cst_65 {dimension_numbers = #tpu.dot_dimension_numbers<[1], [0], [0], [1], [0, 0, 1, 1], [], []>} : vector<8x256xf32>, vector<256x512xf32>, vector<8x512xf32> -> vector<8x512xf32>
    %311 = vector.broadcast %10 : vector<1x512xf32> to vector<8x512xf32>
    %312 = arith.addf %310, %311 : vector<8x512xf32>
    %313 = vector.extract_strided_slice %312 {offsets = [0, 0], sizes = [8, 128], strides = [1, 1]} : vector<8x512xf32> to vector<8x128xf32>
    %314 = arith.negf %313 : vector<8x128xf32>
    %315 = math.exp %314 : vector<8x128xf32>
    %cst_66 = arith.constant 1.000000e+00 : f32
    %316 = vector.broadcast %cst_66 : f32 to vector<8x128xf32>
    %317 = arith.addf %316, %315 : vector<8x128xf32>
    %318 = arith.divf %316, %317 : vector<8x128xf32>
    %319 = vector.extract_strided_slice %312 {offsets = [0, 128], sizes = [8, 128], strides = [1, 1]} : vector<8x512xf32> to vector<8x128xf32>
    %320 = arith.negf %319 : vector<8x128xf32>
    %321 = math.exp %320 : vector<8x128xf32>
    %cst_67 = arith.constant 1.000000e+00 : f32
    %322 = vector.broadcast %cst_67 : f32 to vector<8x128xf32>
    %323 = arith.addf %322, %321 : vector<8x128xf32>
    %324 = arith.divf %322, %323 : vector<8x128xf32>
    %325 = vector.extract_strided_slice %312 {offsets = [0, 256], sizes = [8, 128], strides = [1, 1]} : vector<8x512xf32> to vector<8x128xf32>
    %326 = math.tanh %325 : vector<8x128xf32>
    %327 = vector.extract_strided_slice %312 {offsets = [0, 384], sizes = [8, 128], strides = [1, 1]} : vector<8x512xf32> to vector<8x128xf32>
    %328 = arith.negf %327 : vector<8x128xf32>
    %329 = math.exp %328 : vector<8x128xf32>
    %cst_68 = arith.constant 1.000000e+00 : f32
    %330 = vector.broadcast %cst_68 : f32 to vector<8x128xf32>
    %331 = arith.addf %330, %329 : vector<8x128xf32>
    %332 = arith.divf %330, %331 : vector<8x128xf32>
    %333 = arith.mulf %324, %275 : vector<8x128xf32>
    %334 = arith.mulf %318, %326 : vector<8x128xf32>
    %335 = arith.addf %333, %334 : vector<8x128xf32>
    %336 = math.tanh %335 : vector<8x128xf32>
    %337 = arith.mulf %332, %336 : vector<8x128xf32>
    %c6_i32 = arith.constant 6 : i32
    %c8_i32_69 = arith.constant 8 : i32
    %338 = arith.muli %c6_i32, %c8_i32_69 : i32
    %339 = tpu.assume_multiple %338, 8 : i32
    %340 = arith.index_cast %339 : i32 to index
    %c0_70 = arith.constant 0 : index
    %341 = vector.load %arg10[%340, %c0_70] : memref<96x512xf32, #tpu.memory_space<vmem>>, vector<8x512xf32>
    %cst_71 = arith.constant dense<0.000000e+00> : vector<8x512xf32>
    %342 = tpu.matmul %308, %8, %cst_71 {dimension_numbers = #tpu.dot_dimension_numbers<[1], [0], [0], [1], [0, 0, 1, 1], [], []>} : vector<8x128xf32>, vector<128x512xf32>, vector<8x512xf32> -> vector<8x512xf32>
    %343 = arith.addf %341, %342 : vector<8x512xf32>
    %344 = vector.extract_strided_slice %343 {offsets = [0, 0], sizes = [8, 128], strides = [1, 1]} : vector<8x512xf32> to vector<8x128xf32>
    %345 = arith.negf %344 : vector<8x128xf32>
    %346 = math.exp %345 : vector<8x128xf32>
    %cst_72 = arith.constant 1.000000e+00 : f32
    %347 = vector.broadcast %cst_72 : f32 to vector<8x128xf32>
    %348 = arith.addf %347, %346 : vector<8x128xf32>
    %349 = arith.divf %347, %348 : vector<8x128xf32>
    %350 = vector.extract_strided_slice %343 {offsets = [0, 128], sizes = [8, 128], strides = [1, 1]} : vector<8x512xf32> to vector<8x128xf32>
    %351 = arith.negf %350 : vector<8x128xf32>
    %352 = math.exp %351 : vector<8x128xf32>
    %cst_73 = arith.constant 1.000000e+00 : f32
    %353 = vector.broadcast %cst_73 : f32 to vector<8x128xf32>
    %354 = arith.addf %353, %352 : vector<8x128xf32>
    %355 = arith.divf %353, %354 : vector<8x128xf32>
    %356 = vector.extract_strided_slice %343 {offsets = [0, 256], sizes = [8, 128], strides = [1, 1]} : vector<8x512xf32> to vector<8x128xf32>
    %357 = math.tanh %356 : vector<8x128xf32>
    %358 = vector.extract_strided_slice %343 {offsets = [0, 384], sizes = [8, 128], strides = [1, 1]} : vector<8x512xf32> to vector<8x128xf32>
    %359 = arith.negf %358 : vector<8x128xf32>
    %360 = math.exp %359 : vector<8x128xf32>
    %cst_74 = arith.constant 1.000000e+00 : f32
    %361 = vector.broadcast %cst_74 : f32 to vector<8x128xf32>
    %362 = arith.addf %361, %360 : vector<8x128xf32>
    %363 = arith.divf %361, %362 : vector<8x128xf32>
    %364 = arith.mulf %355, %306 : vector<8x128xf32>
    %365 = arith.mulf %349, %357 : vector<8x128xf32>
    %366 = arith.addf %364, %365 : vector<8x128xf32>
    %367 = math.tanh %366 : vector<8x128xf32>
    %368 = arith.mulf %363, %367 : vector<8x128xf32>
    %369 = tpu.concatenate %308, %337 in 1 : vector<8x128xf32>, vector<8x128xf32> -> vector<8x256xf32>
    %cst_75 = arith.constant dense<0.000000e+00> : vector<8x512xf32>
    %370 = tpu.matmul %369, %9, %cst_75 {dimension_numbers = #tpu.dot_dimension_numbers<[1], [0], [0], [1], [0, 0, 1, 1], [], []>} : vector<8x256xf32>, vector<256x512xf32>, vector<8x512xf32> -> vector<8x512xf32>
    %371 = vector.broadcast %10 : vector<1x512xf32> to vector<8x512xf32>
    %372 = arith.addf %370, %371 : vector<8x512xf32>
    %373 = vector.extract_strided_slice %372 {offsets = [0, 0], sizes = [8, 128], strides = [1, 1]} : vector<8x512xf32> to vector<8x128xf32>
    %374 = arith.negf %373 : vector<8x128xf32>
    %375 = math.exp %374 : vector<8x128xf32>
    %cst_76 = arith.constant 1.000000e+00 : f32
    %376 = vector.broadcast %cst_76 : f32 to vector<8x128xf32>
    %377 = arith.addf %376, %375 : vector<8x128xf32>
    %378 = arith.divf %376, %377 : vector<8x128xf32>
    %379 = vector.extract_strided_slice %372 {offsets = [0, 128], sizes = [8, 128], strides = [1, 1]} : vector<8x512xf32> to vector<8x128xf32>
    %380 = arith.negf %379 : vector<8x128xf32>
    %381 = math.exp %380 : vector<8x128xf32>
    %cst_77 = arith.constant 1.000000e+00 : f32
    %382 = vector.broadcast %cst_77 : f32 to vector<8x128xf32>
    %383 = arith.addf %382, %381 : vector<8x128xf32>
    %384 = arith.divf %382, %383 : vector<8x128xf32>
    %385 = vector.extract_strided_slice %372 {offsets = [0, 256], sizes = [8, 128], strides = [1, 1]} : vector<8x512xf32> to vector<8x128xf32>
    %386 = math.tanh %385 : vector<8x128xf32>
    %387 = vector.extract_strided_slice %372 {offsets = [0, 384], sizes = [8, 128], strides = [1, 1]} : vector<8x512xf32> to vector<8x128xf32>
    %388 = arith.negf %387 : vector<8x128xf32>
    %389 = math.exp %388 : vector<8x128xf32>
    %cst_78 = arith.constant 1.000000e+00 : f32
    %390 = vector.broadcast %cst_78 : f32 to vector<8x128xf32>
    %391 = arith.addf %390, %389 : vector<8x128xf32>
    %392 = arith.divf %390, %391 : vector<8x128xf32>
    %393 = arith.mulf %384, %335 : vector<8x128xf32>
    %394 = arith.mulf %378, %386 : vector<8x128xf32>
    %395 = arith.addf %393, %394 : vector<8x128xf32>
    %396 = math.tanh %395 : vector<8x128xf32>
    %397 = arith.mulf %392, %396 : vector<8x128xf32>
    %c7_i32 = arith.constant 7 : i32
    %c8_i32_79 = arith.constant 8 : i32
    %398 = arith.muli %c7_i32, %c8_i32_79 : i32
    %399 = tpu.assume_multiple %398, 8 : i32
    %400 = arith.index_cast %399 : i32 to index
    %c0_80 = arith.constant 0 : index
    %401 = vector.load %arg10[%400, %c0_80] : memref<96x512xf32, #tpu.memory_space<vmem>>, vector<8x512xf32>
    %cst_81 = arith.constant dense<0.000000e+00> : vector<8x512xf32>
    %402 = tpu.matmul %368, %8, %cst_81 {dimension_numbers = #tpu.dot_dimension_numbers<[1], [0], [0], [1], [0, 0, 1, 1], [], []>} : vector<8x128xf32>, vector<128x512xf32>, vector<8x512xf32> -> vector<8x512xf32>
    %403 = arith.addf %401, %402 : vector<8x512xf32>
    %404 = vector.extract_strided_slice %403 {offsets = [0, 0], sizes = [8, 128], strides = [1, 1]} : vector<8x512xf32> to vector<8x128xf32>
    %405 = arith.negf %404 : vector<8x128xf32>
    %406 = math.exp %405 : vector<8x128xf32>
    %cst_82 = arith.constant 1.000000e+00 : f32
    %407 = vector.broadcast %cst_82 : f32 to vector<8x128xf32>
    %408 = arith.addf %407, %406 : vector<8x128xf32>
    %409 = arith.divf %407, %408 : vector<8x128xf32>
    %410 = vector.extract_strided_slice %403 {offsets = [0, 128], sizes = [8, 128], strides = [1, 1]} : vector<8x512xf32> to vector<8x128xf32>
    %411 = arith.negf %410 : vector<8x128xf32>
    %412 = math.exp %411 : vector<8x128xf32>
    %cst_83 = arith.constant 1.000000e+00 : f32
    %413 = vector.broadcast %cst_83 : f32 to vector<8x128xf32>
    %414 = arith.addf %413, %412 : vector<8x128xf32>
    %415 = arith.divf %413, %414 : vector<8x128xf32>
    %416 = vector.extract_strided_slice %403 {offsets = [0, 256], sizes = [8, 128], strides = [1, 1]} : vector<8x512xf32> to vector<8x128xf32>
    %417 = math.tanh %416 : vector<8x128xf32>
    %418 = vector.extract_strided_slice %403 {offsets = [0, 384], sizes = [8, 128], strides = [1, 1]} : vector<8x512xf32> to vector<8x128xf32>
    %419 = arith.negf %418 : vector<8x128xf32>
    %420 = math.exp %419 : vector<8x128xf32>
    %cst_84 = arith.constant 1.000000e+00 : f32
    %421 = vector.broadcast %cst_84 : f32 to vector<8x128xf32>
    %422 = arith.addf %421, %420 : vector<8x128xf32>
    %423 = arith.divf %421, %422 : vector<8x128xf32>
    %424 = arith.mulf %415, %366 : vector<8x128xf32>
    %425 = arith.mulf %409, %417 : vector<8x128xf32>
    %426 = arith.addf %424, %425 : vector<8x128xf32>
    %427 = math.tanh %426 : vector<8x128xf32>
    %428 = arith.mulf %423, %427 : vector<8x128xf32>
    %429 = tpu.concatenate %368, %397 in 1 : vector<8x128xf32>, vector<8x128xf32> -> vector<8x256xf32>
    %cst_85 = arith.constant dense<0.000000e+00> : vector<8x512xf32>
    %430 = tpu.matmul %429, %9, %cst_85 {dimension_numbers = #tpu.dot_dimension_numbers<[1], [0], [0], [1], [0, 0, 1, 1], [], []>} : vector<8x256xf32>, vector<256x512xf32>, vector<8x512xf32> -> vector<8x512xf32>
    %431 = vector.broadcast %10 : vector<1x512xf32> to vector<8x512xf32>
    %432 = arith.addf %430, %431 : vector<8x512xf32>
    %433 = vector.extract_strided_slice %432 {offsets = [0, 0], sizes = [8, 128], strides = [1, 1]} : vector<8x512xf32> to vector<8x128xf32>
    %434 = arith.negf %433 : vector<8x128xf32>
    %435 = math.exp %434 : vector<8x128xf32>
    %cst_86 = arith.constant 1.000000e+00 : f32
    %436 = vector.broadcast %cst_86 : f32 to vector<8x128xf32>
    %437 = arith.addf %436, %435 : vector<8x128xf32>
    %438 = arith.divf %436, %437 : vector<8x128xf32>
    %439 = vector.extract_strided_slice %432 {offsets = [0, 128], sizes = [8, 128], strides = [1, 1]} : vector<8x512xf32> to vector<8x128xf32>
    %440 = arith.negf %439 : vector<8x128xf32>
    %441 = math.exp %440 : vector<8x128xf32>
    %cst_87 = arith.constant 1.000000e+00 : f32
    %442 = vector.broadcast %cst_87 : f32 to vector<8x128xf32>
    %443 = arith.addf %442, %441 : vector<8x128xf32>
    %444 = arith.divf %442, %443 : vector<8x128xf32>
    %445 = vector.extract_strided_slice %432 {offsets = [0, 256], sizes = [8, 128], strides = [1, 1]} : vector<8x512xf32> to vector<8x128xf32>
    %446 = math.tanh %445 : vector<8x128xf32>
    %447 = vector.extract_strided_slice %432 {offsets = [0, 384], sizes = [8, 128], strides = [1, 1]} : vector<8x512xf32> to vector<8x128xf32>
    %448 = arith.negf %447 : vector<8x128xf32>
    %449 = math.exp %448 : vector<8x128xf32>
    %cst_88 = arith.constant 1.000000e+00 : f32
    %450 = vector.broadcast %cst_88 : f32 to vector<8x128xf32>
    %451 = arith.addf %450, %449 : vector<8x128xf32>
    %452 = arith.divf %450, %451 : vector<8x128xf32>
    %453 = arith.mulf %444, %395 : vector<8x128xf32>
    %454 = arith.mulf %438, %446 : vector<8x128xf32>
    %455 = arith.addf %453, %454 : vector<8x128xf32>
    %456 = math.tanh %455 : vector<8x128xf32>
    %457 = arith.mulf %452, %456 : vector<8x128xf32>
    %c8_i32_89 = arith.constant 8 : i32
    %c8_i32_90 = arith.constant 8 : i32
    %458 = arith.muli %c8_i32_89, %c8_i32_90 : i32
    %459 = tpu.assume_multiple %458, 8 : i32
    %460 = arith.index_cast %459 : i32 to index
    %c0_91 = arith.constant 0 : index
    %461 = vector.load %arg10[%460, %c0_91] : memref<96x512xf32, #tpu.memory_space<vmem>>, vector<8x512xf32>
    %cst_92 = arith.constant dense<0.000000e+00> : vector<8x512xf32>
    %462 = tpu.matmul %428, %8, %cst_92 {dimension_numbers = #tpu.dot_dimension_numbers<[1], [0], [0], [1], [0, 0, 1, 1], [], []>} : vector<8x128xf32>, vector<128x512xf32>, vector<8x512xf32> -> vector<8x512xf32>
    %463 = arith.addf %461, %462 : vector<8x512xf32>
    %464 = vector.extract_strided_slice %463 {offsets = [0, 0], sizes = [8, 128], strides = [1, 1]} : vector<8x512xf32> to vector<8x128xf32>
    %465 = arith.negf %464 : vector<8x128xf32>
    %466 = math.exp %465 : vector<8x128xf32>
    %cst_93 = arith.constant 1.000000e+00 : f32
    %467 = vector.broadcast %cst_93 : f32 to vector<8x128xf32>
    %468 = arith.addf %467, %466 : vector<8x128xf32>
    %469 = arith.divf %467, %468 : vector<8x128xf32>
    %470 = vector.extract_strided_slice %463 {offsets = [0, 128], sizes = [8, 128], strides = [1, 1]} : vector<8x512xf32> to vector<8x128xf32>
    %471 = arith.negf %470 : vector<8x128xf32>
    %472 = math.exp %471 : vector<8x128xf32>
    %cst_94 = arith.constant 1.000000e+00 : f32
    %473 = vector.broadcast %cst_94 : f32 to vector<8x128xf32>
    %474 = arith.addf %473, %472 : vector<8x128xf32>
    %475 = arith.divf %473, %474 : vector<8x128xf32>
    %476 = vector.extract_strided_slice %463 {offsets = [0, 256], sizes = [8, 128], strides = [1, 1]} : vector<8x512xf32> to vector<8x128xf32>
    %477 = math.tanh %476 : vector<8x128xf32>
    %478 = vector.extract_strided_slice %463 {offsets = [0, 384], sizes = [8, 128], strides = [1, 1]} : vector<8x512xf32> to vector<8x128xf32>
    %479 = arith.negf %478 : vector<8x128xf32>
    %480 = math.exp %479 : vector<8x128xf32>
    %cst_95 = arith.constant 1.000000e+00 : f32
    %481 = vector.broadcast %cst_95 : f32 to vector<8x128xf32>
    %482 = arith.addf %481, %480 : vector<8x128xf32>
    %483 = arith.divf %481, %482 : vector<8x128xf32>
    %484 = arith.mulf %475, %426 : vector<8x128xf32>
    %485 = arith.mulf %469, %477 : vector<8x128xf32>
    %486 = arith.addf %484, %485 : vector<8x128xf32>
    %487 = math.tanh %486 : vector<8x128xf32>
    %488 = arith.mulf %483, %487 : vector<8x128xf32>
    %489 = tpu.concatenate %428, %457 in 1 : vector<8x128xf32>, vector<8x128xf32> -> vector<8x256xf32>
    %cst_96 = arith.constant dense<0.000000e+00> : vector<8x512xf32>
    %490 = tpu.matmul %489, %9, %cst_96 {dimension_numbers = #tpu.dot_dimension_numbers<[1], [0], [0], [1], [0, 0, 1, 1], [], []>} : vector<8x256xf32>, vector<256x512xf32>, vector<8x512xf32> -> vector<8x512xf32>
    %491 = vector.broadcast %10 : vector<1x512xf32> to vector<8x512xf32>
    %492 = arith.addf %490, %491 : vector<8x512xf32>
    %493 = vector.extract_strided_slice %492 {offsets = [0, 0], sizes = [8, 128], strides = [1, 1]} : vector<8x512xf32> to vector<8x128xf32>
    %494 = arith.negf %493 : vector<8x128xf32>
    %495 = math.exp %494 : vector<8x128xf32>
    %cst_97 = arith.constant 1.000000e+00 : f32
    %496 = vector.broadcast %cst_97 : f32 to vector<8x128xf32>
    %497 = arith.addf %496, %495 : vector<8x128xf32>
    %498 = arith.divf %496, %497 : vector<8x128xf32>
    %499 = vector.extract_strided_slice %492 {offsets = [0, 128], sizes = [8, 128], strides = [1, 1]} : vector<8x512xf32> to vector<8x128xf32>
    %500 = arith.negf %499 : vector<8x128xf32>
    %501 = math.exp %500 : vector<8x128xf32>
    %cst_98 = arith.constant 1.000000e+00 : f32
    %502 = vector.broadcast %cst_98 : f32 to vector<8x128xf32>
    %503 = arith.addf %502, %501 : vector<8x128xf32>
    %504 = arith.divf %502, %503 : vector<8x128xf32>
    %505 = vector.extract_strided_slice %492 {offsets = [0, 256], sizes = [8, 128], strides = [1, 1]} : vector<8x512xf32> to vector<8x128xf32>
    %506 = math.tanh %505 : vector<8x128xf32>
    %507 = vector.extract_strided_slice %492 {offsets = [0, 384], sizes = [8, 128], strides = [1, 1]} : vector<8x512xf32> to vector<8x128xf32>
    %508 = arith.negf %507 : vector<8x128xf32>
    %509 = math.exp %508 : vector<8x128xf32>
    %cst_99 = arith.constant 1.000000e+00 : f32
    %510 = vector.broadcast %cst_99 : f32 to vector<8x128xf32>
    %511 = arith.addf %510, %509 : vector<8x128xf32>
    %512 = arith.divf %510, %511 : vector<8x128xf32>
    %513 = arith.mulf %504, %455 : vector<8x128xf32>
    %514 = arith.mulf %498, %506 : vector<8x128xf32>
    %515 = arith.addf %513, %514 : vector<8x128xf32>
    %516 = math.tanh %515 : vector<8x128xf32>
    %517 = arith.mulf %512, %516 : vector<8x128xf32>
    %c9_i32 = arith.constant 9 : i32
    %c8_i32_100 = arith.constant 8 : i32
    %518 = arith.muli %c9_i32, %c8_i32_100 : i32
    %519 = tpu.assume_multiple %518, 8 : i32
    %520 = arith.index_cast %519 : i32 to index
    %c0_101 = arith.constant 0 : index
    %521 = vector.load %arg10[%520, %c0_101] : memref<96x512xf32, #tpu.memory_space<vmem>>, vector<8x512xf32>
    %cst_102 = arith.constant dense<0.000000e+00> : vector<8x512xf32>
    %522 = tpu.matmul %488, %8, %cst_102 {dimension_numbers = #tpu.dot_dimension_numbers<[1], [0], [0], [1], [0, 0, 1, 1], [], []>} : vector<8x128xf32>, vector<128x512xf32>, vector<8x512xf32> -> vector<8x512xf32>
    %523 = arith.addf %521, %522 : vector<8x512xf32>
    %524 = vector.extract_strided_slice %523 {offsets = [0, 0], sizes = [8, 128], strides = [1, 1]} : vector<8x512xf32> to vector<8x128xf32>
    %525 = arith.negf %524 : vector<8x128xf32>
    %526 = math.exp %525 : vector<8x128xf32>
    %cst_103 = arith.constant 1.000000e+00 : f32
    %527 = vector.broadcast %cst_103 : f32 to vector<8x128xf32>
    %528 = arith.addf %527, %526 : vector<8x128xf32>
    %529 = arith.divf %527, %528 : vector<8x128xf32>
    %530 = vector.extract_strided_slice %523 {offsets = [0, 128], sizes = [8, 128], strides = [1, 1]} : vector<8x512xf32> to vector<8x128xf32>
    %531 = arith.negf %530 : vector<8x128xf32>
    %532 = math.exp %531 : vector<8x128xf32>
    %cst_104 = arith.constant 1.000000e+00 : f32
    %533 = vector.broadcast %cst_104 : f32 to vector<8x128xf32>
    %534 = arith.addf %533, %532 : vector<8x128xf32>
    %535 = arith.divf %533, %534 : vector<8x128xf32>
    %536 = vector.extract_strided_slice %523 {offsets = [0, 256], sizes = [8, 128], strides = [1, 1]} : vector<8x512xf32> to vector<8x128xf32>
    %537 = math.tanh %536 : vector<8x128xf32>
    %538 = vector.extract_strided_slice %523 {offsets = [0, 384], sizes = [8, 128], strides = [1, 1]} : vector<8x512xf32> to vector<8x128xf32>
    %539 = arith.negf %538 : vector<8x128xf32>
    %540 = math.exp %539 : vector<8x128xf32>
    %cst_105 = arith.constant 1.000000e+00 : f32
    %541 = vector.broadcast %cst_105 : f32 to vector<8x128xf32>
    %542 = arith.addf %541, %540 : vector<8x128xf32>
    %543 = arith.divf %541, %542 : vector<8x128xf32>
    %544 = arith.mulf %535, %486 : vector<8x128xf32>
    %545 = arith.mulf %529, %537 : vector<8x128xf32>
    %546 = arith.addf %544, %545 : vector<8x128xf32>
    %547 = math.tanh %546 : vector<8x128xf32>
    %548 = arith.mulf %543, %547 : vector<8x128xf32>
    %549 = tpu.concatenate %488, %517 in 1 : vector<8x128xf32>, vector<8x128xf32> -> vector<8x256xf32>
    %cst_106 = arith.constant dense<0.000000e+00> : vector<8x512xf32>
    %550 = tpu.matmul %549, %9, %cst_106 {dimension_numbers = #tpu.dot_dimension_numbers<[1], [0], [0], [1], [0, 0, 1, 1], [], []>} : vector<8x256xf32>, vector<256x512xf32>, vector<8x512xf32> -> vector<8x512xf32>
    %551 = vector.broadcast %10 : vector<1x512xf32> to vector<8x512xf32>
    %552 = arith.addf %550, %551 : vector<8x512xf32>
    %553 = vector.extract_strided_slice %552 {offsets = [0, 0], sizes = [8, 128], strides = [1, 1]} : vector<8x512xf32> to vector<8x128xf32>
    %554 = arith.negf %553 : vector<8x128xf32>
    %555 = math.exp %554 : vector<8x128xf32>
    %cst_107 = arith.constant 1.000000e+00 : f32
    %556 = vector.broadcast %cst_107 : f32 to vector<8x128xf32>
    %557 = arith.addf %556, %555 : vector<8x128xf32>
    %558 = arith.divf %556, %557 : vector<8x128xf32>
    %559 = vector.extract_strided_slice %552 {offsets = [0, 128], sizes = [8, 128], strides = [1, 1]} : vector<8x512xf32> to vector<8x128xf32>
    %560 = arith.negf %559 : vector<8x128xf32>
    %561 = math.exp %560 : vector<8x128xf32>
    %cst_108 = arith.constant 1.000000e+00 : f32
    %562 = vector.broadcast %cst_108 : f32 to vector<8x128xf32>
    %563 = arith.addf %562, %561 : vector<8x128xf32>
    %564 = arith.divf %562, %563 : vector<8x128xf32>
    %565 = vector.extract_strided_slice %552 {offsets = [0, 256], sizes = [8, 128], strides = [1, 1]} : vector<8x512xf32> to vector<8x128xf32>
    %566 = math.tanh %565 : vector<8x128xf32>
    %567 = vector.extract_strided_slice %552 {offsets = [0, 384], sizes = [8, 128], strides = [1, 1]} : vector<8x512xf32> to vector<8x128xf32>
    %568 = arith.negf %567 : vector<8x128xf32>
    %569 = math.exp %568 : vector<8x128xf32>
    %cst_109 = arith.constant 1.000000e+00 : f32
    %570 = vector.broadcast %cst_109 : f32 to vector<8x128xf32>
    %571 = arith.addf %570, %569 : vector<8x128xf32>
    %572 = arith.divf %570, %571 : vector<8x128xf32>
    %573 = arith.mulf %564, %515 : vector<8x128xf32>
    %574 = arith.mulf %558, %566 : vector<8x128xf32>
    %575 = arith.addf %573, %574 : vector<8x128xf32>
    %576 = math.tanh %575 : vector<8x128xf32>
    %577 = arith.mulf %572, %576 : vector<8x128xf32>
    %c10_i32 = arith.constant 10 : i32
    %c8_i32_110 = arith.constant 8 : i32
    %578 = arith.muli %c10_i32, %c8_i32_110 : i32
    %579 = tpu.assume_multiple %578, 8 : i32
    %580 = arith.index_cast %579 : i32 to index
    %c0_111 = arith.constant 0 : index
    %581 = vector.load %arg10[%580, %c0_111] : memref<96x512xf32, #tpu.memory_space<vmem>>, vector<8x512xf32>
    %cst_112 = arith.constant dense<0.000000e+00> : vector<8x512xf32>
    %582 = tpu.matmul %548, %8, %cst_112 {dimension_numbers = #tpu.dot_dimension_numbers<[1], [0], [0], [1], [0, 0, 1, 1], [], []>} : vector<8x128xf32>, vector<128x512xf32>, vector<8x512xf32> -> vector<8x512xf32>
    %583 = arith.addf %581, %582 : vector<8x512xf32>
    %584 = vector.extract_strided_slice %583 {offsets = [0, 0], sizes = [8, 128], strides = [1, 1]} : vector<8x512xf32> to vector<8x128xf32>
    %585 = arith.negf %584 : vector<8x128xf32>
    %586 = math.exp %585 : vector<8x128xf32>
    %cst_113 = arith.constant 1.000000e+00 : f32
    %587 = vector.broadcast %cst_113 : f32 to vector<8x128xf32>
    %588 = arith.addf %587, %586 : vector<8x128xf32>
    %589 = arith.divf %587, %588 : vector<8x128xf32>
    %590 = vector.extract_strided_slice %583 {offsets = [0, 128], sizes = [8, 128], strides = [1, 1]} : vector<8x512xf32> to vector<8x128xf32>
    %591 = arith.negf %590 : vector<8x128xf32>
    %592 = math.exp %591 : vector<8x128xf32>
    %cst_114 = arith.constant 1.000000e+00 : f32
    %593 = vector.broadcast %cst_114 : f32 to vector<8x128xf32>
    %594 = arith.addf %593, %592 : vector<8x128xf32>
    %595 = arith.divf %593, %594 : vector<8x128xf32>
    %596 = vector.extract_strided_slice %583 {offsets = [0, 256], sizes = [8, 128], strides = [1, 1]} : vector<8x512xf32> to vector<8x128xf32>
    %597 = math.tanh %596 : vector<8x128xf32>
    %598 = vector.extract_strided_slice %583 {offsets = [0, 384], sizes = [8, 128], strides = [1, 1]} : vector<8x512xf32> to vector<8x128xf32>
    %599 = arith.negf %598 : vector<8x128xf32>
    %600 = math.exp %599 : vector<8x128xf32>
    %cst_115 = arith.constant 1.000000e+00 : f32
    %601 = vector.broadcast %cst_115 : f32 to vector<8x128xf32>
    %602 = arith.addf %601, %600 : vector<8x128xf32>
    %603 = arith.divf %601, %602 : vector<8x128xf32>
    %604 = arith.mulf %595, %546 : vector<8x128xf32>
    %605 = arith.mulf %589, %597 : vector<8x128xf32>
    %606 = arith.addf %604, %605 : vector<8x128xf32>
    %607 = math.tanh %606 : vector<8x128xf32>
    %608 = arith.mulf %603, %607 : vector<8x128xf32>
    %609 = tpu.concatenate %548, %577 in 1 : vector<8x128xf32>, vector<8x128xf32> -> vector<8x256xf32>
    %cst_116 = arith.constant dense<0.000000e+00> : vector<8x512xf32>
    %610 = tpu.matmul %609, %9, %cst_116 {dimension_numbers = #tpu.dot_dimension_numbers<[1], [0], [0], [1], [0, 0, 1, 1], [], []>} : vector<8x256xf32>, vector<256x512xf32>, vector<8x512xf32> -> vector<8x512xf32>
    %611 = vector.broadcast %10 : vector<1x512xf32> to vector<8x512xf32>
    %612 = arith.addf %610, %611 : vector<8x512xf32>
    %613 = vector.extract_strided_slice %612 {offsets = [0, 0], sizes = [8, 128], strides = [1, 1]} : vector<8x512xf32> to vector<8x128xf32>
    %614 = arith.negf %613 : vector<8x128xf32>
    %615 = math.exp %614 : vector<8x128xf32>
    %cst_117 = arith.constant 1.000000e+00 : f32
    %616 = vector.broadcast %cst_117 : f32 to vector<8x128xf32>
    %617 = arith.addf %616, %615 : vector<8x128xf32>
    %618 = arith.divf %616, %617 : vector<8x128xf32>
    %619 = vector.extract_strided_slice %612 {offsets = [0, 128], sizes = [8, 128], strides = [1, 1]} : vector<8x512xf32> to vector<8x128xf32>
    %620 = arith.negf %619 : vector<8x128xf32>
    %621 = math.exp %620 : vector<8x128xf32>
    %cst_118 = arith.constant 1.000000e+00 : f32
    %622 = vector.broadcast %cst_118 : f32 to vector<8x128xf32>
    %623 = arith.addf %622, %621 : vector<8x128xf32>
    %624 = arith.divf %622, %623 : vector<8x128xf32>
    %625 = vector.extract_strided_slice %612 {offsets = [0, 256], sizes = [8, 128], strides = [1, 1]} : vector<8x512xf32> to vector<8x128xf32>
    %626 = math.tanh %625 : vector<8x128xf32>
    %627 = vector.extract_strided_slice %612 {offsets = [0, 384], sizes = [8, 128], strides = [1, 1]} : vector<8x512xf32> to vector<8x128xf32>
    %628 = arith.negf %627 : vector<8x128xf32>
    %629 = math.exp %628 : vector<8x128xf32>
    %cst_119 = arith.constant 1.000000e+00 : f32
    %630 = vector.broadcast %cst_119 : f32 to vector<8x128xf32>
    %631 = arith.addf %630, %629 : vector<8x128xf32>
    %632 = arith.divf %630, %631 : vector<8x128xf32>
    %633 = arith.mulf %624, %575 : vector<8x128xf32>
    %634 = arith.mulf %618, %626 : vector<8x128xf32>
    %635 = arith.addf %633, %634 : vector<8x128xf32>
    %636 = math.tanh %635 : vector<8x128xf32>
    %637 = arith.mulf %632, %636 : vector<8x128xf32>
    %c11_i32 = arith.constant 11 : i32
    %c8_i32_120 = arith.constant 8 : i32
    %638 = arith.muli %c11_i32, %c8_i32_120 : i32
    %639 = tpu.assume_multiple %638, 8 : i32
    %640 = arith.index_cast %639 : i32 to index
    %c0_121 = arith.constant 0 : index
    %641 = vector.load %arg10[%640, %c0_121] : memref<96x512xf32, #tpu.memory_space<vmem>>, vector<8x512xf32>
    %cst_122 = arith.constant dense<0.000000e+00> : vector<8x512xf32>
    %642 = tpu.matmul %608, %8, %cst_122 {dimension_numbers = #tpu.dot_dimension_numbers<[1], [0], [0], [1], [0, 0, 1, 1], [], []>} : vector<8x128xf32>, vector<128x512xf32>, vector<8x512xf32> -> vector<8x512xf32>
    %643 = arith.addf %641, %642 : vector<8x512xf32>
    %644 = vector.extract_strided_slice %643 {offsets = [0, 0], sizes = [8, 128], strides = [1, 1]} : vector<8x512xf32> to vector<8x128xf32>
    %645 = arith.negf %644 : vector<8x128xf32>
    %646 = math.exp %645 : vector<8x128xf32>
    %cst_123 = arith.constant 1.000000e+00 : f32
    %647 = vector.broadcast %cst_123 : f32 to vector<8x128xf32>
    %648 = arith.addf %647, %646 : vector<8x128xf32>
    %649 = arith.divf %647, %648 : vector<8x128xf32>
    %650 = vector.extract_strided_slice %643 {offsets = [0, 128], sizes = [8, 128], strides = [1, 1]} : vector<8x512xf32> to vector<8x128xf32>
    %651 = arith.negf %650 : vector<8x128xf32>
    %652 = math.exp %651 : vector<8x128xf32>
    %cst_124 = arith.constant 1.000000e+00 : f32
    %653 = vector.broadcast %cst_124 : f32 to vector<8x128xf32>
    %654 = arith.addf %653, %652 : vector<8x128xf32>
    %655 = arith.divf %653, %654 : vector<8x128xf32>
    %656 = vector.extract_strided_slice %643 {offsets = [0, 256], sizes = [8, 128], strides = [1, 1]} : vector<8x512xf32> to vector<8x128xf32>
    %657 = math.tanh %656 : vector<8x128xf32>
    %658 = vector.extract_strided_slice %643 {offsets = [0, 384], sizes = [8, 128], strides = [1, 1]} : vector<8x512xf32> to vector<8x128xf32>
    %659 = arith.negf %658 : vector<8x128xf32>
    %660 = math.exp %659 : vector<8x128xf32>
    %cst_125 = arith.constant 1.000000e+00 : f32
    %661 = vector.broadcast %cst_125 : f32 to vector<8x128xf32>
    %662 = arith.addf %661, %660 : vector<8x128xf32>
    %663 = arith.divf %661, %662 : vector<8x128xf32>
    %664 = arith.mulf %655, %606 : vector<8x128xf32>
    %665 = arith.mulf %649, %657 : vector<8x128xf32>
    %666 = arith.addf %664, %665 : vector<8x128xf32>
    %667 = math.tanh %666 : vector<8x128xf32>
    %668 = arith.mulf %663, %667 : vector<8x128xf32>
    %669 = tpu.concatenate %608, %637 in 1 : vector<8x128xf32>, vector<8x128xf32> -> vector<8x256xf32>
    %cst_126 = arith.constant dense<0.000000e+00> : vector<8x512xf32>
    %670 = tpu.matmul %669, %9, %cst_126 {dimension_numbers = #tpu.dot_dimension_numbers<[1], [0], [0], [1], [0, 0, 1, 1], [], []>} : vector<8x256xf32>, vector<256x512xf32>, vector<8x512xf32> -> vector<8x512xf32>
    %671 = vector.broadcast %10 : vector<1x512xf32> to vector<8x512xf32>
    %672 = arith.addf %670, %671 : vector<8x512xf32>
    %673 = vector.extract_strided_slice %672 {offsets = [0, 0], sizes = [8, 128], strides = [1, 1]} : vector<8x512xf32> to vector<8x128xf32>
    %674 = arith.negf %673 : vector<8x128xf32>
    %675 = math.exp %674 : vector<8x128xf32>
    %cst_127 = arith.constant 1.000000e+00 : f32
    %676 = vector.broadcast %cst_127 : f32 to vector<8x128xf32>
    %677 = arith.addf %676, %675 : vector<8x128xf32>
    %678 = arith.divf %676, %677 : vector<8x128xf32>
    %679 = vector.extract_strided_slice %672 {offsets = [0, 128], sizes = [8, 128], strides = [1, 1]} : vector<8x512xf32> to vector<8x128xf32>
    %680 = arith.negf %679 : vector<8x128xf32>
    %681 = math.exp %680 : vector<8x128xf32>
    %cst_128 = arith.constant 1.000000e+00 : f32
    %682 = vector.broadcast %cst_128 : f32 to vector<8x128xf32>
    %683 = arith.addf %682, %681 : vector<8x128xf32>
    %684 = arith.divf %682, %683 : vector<8x128xf32>
    %685 = vector.extract_strided_slice %672 {offsets = [0, 256], sizes = [8, 128], strides = [1, 1]} : vector<8x512xf32> to vector<8x128xf32>
    %686 = math.tanh %685 : vector<8x128xf32>
    %687 = vector.extract_strided_slice %672 {offsets = [0, 384], sizes = [8, 128], strides = [1, 1]} : vector<8x512xf32> to vector<8x128xf32>
    %688 = arith.negf %687 : vector<8x128xf32>
    %689 = math.exp %688 : vector<8x128xf32>
    %cst_129 = arith.constant 1.000000e+00 : f32
    %690 = vector.broadcast %cst_129 : f32 to vector<8x128xf32>
    %691 = arith.addf %690, %689 : vector<8x128xf32>
    %692 = arith.divf %690, %691 : vector<8x128xf32>
    %693 = arith.mulf %684, %635 : vector<8x128xf32>
    %694 = arith.mulf %678, %686 : vector<8x128xf32>
    %695 = arith.addf %693, %694 : vector<8x128xf32>
    %696 = math.tanh %695 : vector<8x128xf32>
    %697 = arith.mulf %692, %696 : vector<8x128xf32>
    %c11_i32_130 = arith.constant 11 : i32
    %698 = tpu.concatenate %668, %697 in 1 : vector<8x128xf32>, vector<8x128xf32> -> vector<8x256xf32>
    %cst_131 = arith.constant dense<0.000000e+00> : vector<8x512xf32>
    %699 = tpu.matmul %698, %9, %cst_131 {dimension_numbers = #tpu.dot_dimension_numbers<[1], [0], [0], [1], [0, 0, 1, 1], [], []>} : vector<8x256xf32>, vector<256x512xf32>, vector<8x512xf32> -> vector<8x512xf32>
    %700 = vector.broadcast %10 : vector<1x512xf32> to vector<8x512xf32>
    %701 = arith.addf %699, %700 : vector<8x512xf32>
    %702 = vector.extract_strided_slice %701 {offsets = [0, 0], sizes = [8, 128], strides = [1, 1]} : vector<8x512xf32> to vector<8x128xf32>
    %703 = arith.negf %702 : vector<8x128xf32>
    %704 = math.exp %703 : vector<8x128xf32>
    %cst_132 = arith.constant 1.000000e+00 : f32
    %705 = vector.broadcast %cst_132 : f32 to vector<8x128xf32>
    %706 = arith.addf %705, %704 : vector<8x128xf32>
    %707 = arith.divf %705, %706 : vector<8x128xf32>
    %708 = vector.extract_strided_slice %701 {offsets = [0, 128], sizes = [8, 128], strides = [1, 1]} : vector<8x512xf32> to vector<8x128xf32>
    %709 = arith.negf %708 : vector<8x128xf32>
    %710 = math.exp %709 : vector<8x128xf32>
    %cst_133 = arith.constant 1.000000e+00 : f32
    %711 = vector.broadcast %cst_133 : f32 to vector<8x128xf32>
    %712 = arith.addf %711, %710 : vector<8x128xf32>
    %713 = arith.divf %711, %712 : vector<8x128xf32>
    %714 = vector.extract_strided_slice %701 {offsets = [0, 256], sizes = [8, 128], strides = [1, 1]} : vector<8x512xf32> to vector<8x128xf32>
    %715 = math.tanh %714 : vector<8x128xf32>
    %716 = vector.extract_strided_slice %701 {offsets = [0, 384], sizes = [8, 128], strides = [1, 1]} : vector<8x512xf32> to vector<8x128xf32>
    %717 = arith.negf %716 : vector<8x128xf32>
    %718 = math.exp %717 : vector<8x128xf32>
    %cst_134 = arith.constant 1.000000e+00 : f32
    %719 = vector.broadcast %cst_134 : f32 to vector<8x128xf32>
    %720 = arith.addf %719, %718 : vector<8x128xf32>
    %721 = arith.divf %719, %720 : vector<8x128xf32>
    %722 = arith.mulf %713, %695 : vector<8x128xf32>
    %723 = arith.mulf %707, %715 : vector<8x128xf32>
    %724 = arith.addf %722, %723 : vector<8x128xf32>
    %725 = math.tanh %724 : vector<8x128xf32>
    %726 = arith.mulf %721, %725 : vector<8x128xf32>
    %c0_135 = arith.constant 0 : index
    %c0_136 = arith.constant 0 : index
    %727 = vector.load %arg7[%c0_135, %c0_136] : memref<128x128xf32, #tpu.memory_space<vmem>>, vector<128x128xf32>
    %cst_137 = arith.constant dense<0.000000e+00> : vector<8x128xf32>
    %728 = tpu.matmul %726, %727, %cst_137 {dimension_numbers = #tpu.dot_dimension_numbers<[1], [0], [0], [1], [0, 0, 1, 1], [], []>} : vector<8x128xf32>, vector<128x128xf32>, vector<8x128xf32> -> vector<8x128xf32>
    %c0_138 = arith.constant 0 : index
    %c0_139 = arith.constant 0 : index
    %729 = vector.load %arg8[%c0_138, %c0_139] : memref<1x128xf32, #tpu.memory_space<vmem>>, vector<1x128xf32>
    %730 = vector.broadcast %729 : vector<1x128xf32> to vector<8x128xf32>
    %731 = arith.addf %728, %730 : vector<8x128xf32>
    %c0_140 = arith.constant 0 : index
    %c0_141 = arith.constant 0 : index
    %732 = vector.load %arg9[%c0_140, %c0_141] : memref<8x128xf32, #tpu.memory_space<vmem>>, vector<8x128xf32>
    tpu.vector_store %arg9[%c0_140, %c0_141], %731 {strides = array<i32>} : memref<8x128xf32, #tpu.memory_space<vmem>>, vector<8x128xf32>,
    return
  }
  func.func @transform_0(%arg0: i32) -> (i32, i32, i32) {
    %c0_i32 = arith.constant 0 : i32
    %c0_i32_0 = arith.constant 0 : i32
    %c0_i32_1 = arith.constant 0 : i32
    return %arg0, %c0_i32, %c0_i32_0 : i32, i32, i32
  }
  func.func @transform_1(%arg0: i32) -> (i32, i32) {
    %c0_i32 = arith.constant 0 : i32
    %c0_i32_0 = arith.constant 0 : i32
    %c0_i32_1 = arith.constant 0 : i32
    return %c0_i32, %c0_i32_0 : i32, i32
  }
  func.func @transform_2(%arg0: i32) -> (i32, i32) {
    %c0_i32 = arith.constant 0 : i32
    %c0_i32_0 = arith.constant 0 : i32
    %c0_i32_1 = arith.constant 0 : i32
    return %c0_i32, %c0_i32_0 : i32, i32
  }
  func.func @transform_3(%arg0: i32) -> (i32, i32) {
    %c0_i32 = arith.constant 0 : i32
    %c0_i32_0 = arith.constant 0 : i32
    %c0_i32_1 = arith.constant 0 : i32
    return %c0_i32, %c0_i32_0 : i32, i32
  }
  func.func @transform_4(%arg0: i32) -> (i32, i32) {
    %c0_i32 = arith.constant 0 : i32
    %c0_i32_0 = arith.constant 0 : i32
    %c0_i32_1 = arith.constant 0 : i32
    return %c0_i32, %c0_i32_0 : i32, i32
  }
  func.func @transform_5(%arg0: i32) -> (i32, i32) {
    %c0_i32 = arith.constant 0 : i32
    %c0_i32_0 = arith.constant 0 : i32
    %c0_i32_1 = arith.constant 0 : i32
    return %c0_i32, %c0_i32_0 : i32, i32
  }
  func.func @transform_6(%arg0: i32) -> (i32, i32) {
    %c0_i32 = arith.constant 0 : i32
    %c0_i32_0 = arith.constant 0 : i32
    %c0_i32_1 = arith.constant 0 : i32
    return %c0_i32, %c0_i32_0 : i32, i32
  }
  func.func @transform_7(%arg0: i32) -> (i32, i32) {
    %c0_i32 = arith.constant 0 : i32
    %c0_i32_0 = arith.constant 0 : i32
    %c0_i32_1 = arith.constant 0 : i32
    return %c0_i32, %c0_i32_0 : i32, i32
  }
  func.func @transform_8(%arg0: i32) -> (i32, i32) {
    %c0_i32 = arith.constant 0 : i32
    %c0_i32_0 = arith.constant 0 : i32
    return %arg0, %c0_i32 : i32, i32
  }
}

</mosaic_0001>

<bundles_post_ra>
// kernel: tpu_custom_call.1
= control target key start
LH: loop header
LB: loop body
LE: loop exit
PB: predicated region body
PF: predicated region fallthrough
CT: control target
= control target key end

     0   :  { %13 = vsyncpa [#allocation4], 0  ;;  %s10252_s0 = inlined_call_operand.vmem [shape: f32[2,96,16], index: 0, kind: input, shape index: {}]   ;;  %s10253_s1 = inlined_call_operand.vmem [shape: f32[16,512], index: 1, kind: input, shape index: {}]   ;;  %s10254_s2 = inlined_call_operand.hbm [shape: f32[128,512], index: 2, kind: input, shape index: {}]   ;;  %s10255_s3 = inlined_call_operand.vmem [shape: f32[1,512], index: 3, kind: input, shape index: {}]   ;;  %s10256_s4 = inlined_call_operand.hbm [shape: f32[256,512], index: 4, kind: input, shape index: {}]   ;;  %s10257_s5 = inlined_call_operand.vmem [shape: f32[1,512], index: 5, kind: input, shape index: {}]   ;;  %s10258_s6 = inlined_call_operand.vmem [shape: f32[128,128], index: 6, kind: input, shape index: {}]   ;;  %s10259_s7 = inlined_call_operand.vmem [shape: f32[1,128], index: 7, kind: input, shape index: {}]   ;;  %s10260_s8 = inlined_call_operand.hbm [shape: f32[16,128], index: 8, kind: output, shape index: {}]  }
   0x1   :  { %14 = vsyncpa [#allocation7], 0 }
   0x2   :  { %15 = vsyncpa [#allocation5], 0 }
   0x3   :  { %17 = vsyncpa [#allocation5 + $0x1], 0  ;;  %s8272_s27 = smov 0   ;;  %s8274_s28 = smov 0  }
   0x4   :  { %s8276_s29 = smov 0   ;;  %s8278_s30 = smov 0  }
   0x5 LB: > { %10525 = sst [smem:[#allocation12_spill]] %s8213_s29  ;;  %s8293_s9 = sadd.s32 4294967295, %s8217_s30   ;;  %s8217_s30 = sphi %s8278_s30, %s11250_s30   ;;  %s8213_s29 = sphi %s8276_s29, %s11247_s29   ;;  %s8209_s28 = sphi %s8274_s28, %s11249_s28   ;;  %s8205_s27 = sphi %s8272_s27, %s11248_s27  }
   0x6   : > { %s5116_s10 = sadd.s32 4294967294, %s8217_s30   ;;  %s8297_s11 = sadd.s32 1, %s8217_s30  }
   0x7   : > { %s203_s12 = sadd.s32 1, %s8213_s29  ;;  %s200_s13 = ssub.s32 %s8217_s30, %s8297_s11 }
   0x8   : > { %p213_p0 = scmp.ne.s32.totalorder %s8213_s29, %s8209_s28  ;;  %p201_p1 = scmp.eq.s32.totalorder %s200_s13, 0 }
   0x9   : > { %p214_p2 = scmp.eq.s32.totalorder %s8293_s9, 1  ;;  %p219_p3 = scmp.ne.s32.totalorder %s8209_s28, %s8205_s27 }
   0xa   : > { %p220_p4 = scmp.eq.s32.totalorder %s5116_s10, 1  ;;  %p5117_p7 = scmp.ge.s32.totalorder %s8217_s30, 1 }
   0xb   : > { %s8308_s14 = scalar_select %p201_p1, %s8213_s29, %s203_s12  }
   0xc   : > { %p8310_p5 = por %p214_p2, %p213_p0  ;;  %p8314_p6 = por %p220_p4, %p219_p3 }
   0xd   : > { %10526 = sst [smem:[#allocation13_spill]] %s8308_s14  ;;  %p227_p8 = scmp.lt.s32.totalorder %s8217_s30, 3 }
   0xe   : > { %s10527_s15 = scalar_select %p8310_p5, 1, 0 }
   0xf   : > { %s10528_s16 = scalar_select %p8314_p6, 1, 0 }
  0x10   : > { %p10261_p9 = scmp.eq.s32.totalorder %s8293_s9, 0  ;;  %p8321_p10 = pnand %p5117_p7, %p227_p8 }
  0x11   : > { %s8219_s18 = smov [#allocation3]   ;;  %s8220_s21 = smov [#allocation6]  }
  0x12   : > { %s10529_s17 = scalar_select %p8321_p10, 1, 0 }
  0x13   : > { %s242_s19 = sshll.u32 %s8219_s18, 4  ;;  %p7652_p11 = pneg %p8321_p10  ;;  %s243_s19 = int_to_ptr.vmem [resolvable:$true] %s242_s19 }
  0x14   : > { %s258_s22 = sshll.u32 %s8220_s21, 4  ;;  %s8091_s25 = scalar_lea.hbm %s10254_s2, 8192  ;;  %s8333_s22 = int_to_ptr.vmem [resolvable:$true] %s258_s22 }
  0x15   : > { %p8329_p12 = pnand %p10261_p9, %p7652_p11  ;;  %p8092_p13 = scmp.ne.s32.totalorder %s10254_s2, %s8091_s25 }
  0x16   : > { %p8098_p3 = scmp.lt.u32.totalorder %s8091_s25, %s10254_s2 }
  0x17   : > { %p8093_p0 = pneg %p8329_p12 }
  0x19   : > { %p8094_p1 = pnand %p8093_p0, %p8092_p13 }
  0x1b   : > { %p8095_p2 = pneg %p8094_p1 }
  0x1d   : > { %p8100_p4 = pnand %p8098_p3, %p8095_p2 }
  0x1f   : > { %8103 = shalt.err (!%p8100_p4)
}
  0x20   : > { %s8104_s18 = scalar_lea.vmem %s243_s19, 8192  ;;  %p8112_p9 = scmp.lt.s32.totalorder %s243_s19, %s243_s19 }
  0x21   : > { %p8105_p7 = scmp.ne.s32.totalorder %s243_s19, %s8104_s18  ;;  %p8113_p6 = scmp.lt.s32.totalorder %s8104_s18, %s8104_s18 }
  0x23   : > { %p8107_p8 = pnand %p8105_p7, %p8093_p0  ;;  %p8114_p5 = por %p8113_p6, %p8112_p9 }
  0x25   : > { %p8108_p11 = pneg %p8107_p8 }
  0x27   : > { %p8115_p10 = pnand %p8114_p5, %p8108_p11 }
  0x29   : > { %8118 = shalt.err (!%p8115_p10)
}
  0x2a   : > { %s8221_s21 = smov 512   ;;  %s8222_s23 = smov 32  }
  0x2b   : > { %7655 = dma.hbm_to_vmem [thread:$0]  (!%p8329_p12), %s10254_s2, 8192, %s243_s19, [#allocation4], %s8221_s21, %s8221_s21, %s8222_s23  }
  0x2c   : > { %s8119_s12 = scalar_lea.hbm %s10256_s4, 16384 }
  0x2d   : > { %p8120_p13 = scmp.ne.s32.totalorder %s10256_s4, %s8119_s12  ;;  %p8126_p9 = scmp.lt.u32.totalorder %s8119_s12, %s10256_s4 }
  0x2f   : > { %p8122_p5 = pnand %p8120_p13, %p8093_p0 }
  0x31   : > { %p8123_p6 = pneg %p8122_p5 }
  0x33   : > { %p8128_p10 = pnand %p8126_p9, %p8123_p6 }
  0x35   : > { %8131 = shalt.err (!%p8128_p10)
}
  0x36   : > { %s8132_s19 = scalar_lea.vmem %s8333_s22, 16384  ;;  %p8140_p4 = scmp.lt.s32.totalorder %s8333_s22, %s8333_s22 }
  0x37   : > { %p8133_p1 = scmp.ne.s32.totalorder %s8333_s22, %s8132_s19  ;;  %p8141_p7 = scmp.lt.s32.totalorder %s8132_s19, %s8132_s19 }
  0x39   : > { %p8135_p2 = pnand %p8133_p1, %p8093_p0  ;;  %p8142_p8 = por %p8141_p7, %p8140_p4 }
  0x3b   : > { %p8136_p3 = pneg %p8135_p2 }
  0x3d   : > { %p8143_p11 = pnand %p8142_p8, %p8136_p3 }
  0x3f   : > { %8146 = shalt.err (!%p8143_p11)
}
  0x40   : > { %7658 = dma.hbm_to_vmem [thread:$0]  (!%p8329_p12), %s10256_s4, 16384, %s8333_s22, [#allocation7], %s8221_s21, %s8221_s21, %s8222_s23  }
  0x41   : > { %p10531_p13 = scmp.ne.s32.totalorder %s10529_s17, 0 }
  0x43   : > { %291 = sbr.rel (%p10531_p13) target bundleno = 3749 (0xea5), region = 52 }
  0x4a   : > { %p10532_p5 = scmp.eq.s32.totalorder %s8293_s9, 0 }
  0x4c   : > { %8192 = dma.done.wait (%p10532_p5), [#allocation4], 8192   ;;  %p10533_p0 = pmov %p10532_p5 }
  0x4e   : > { %8194 = vsyncadd (%p10533_p0), [#allocation4], 4294959104  ;;  %p10534_p6 = pmov %p10533_p0 }
  0x4f   : > { %p10535_p9 = pmov %p10533_p0 }
  0x50   : > { %8196 = dma.done.wait (%p10534_p6), [#allocation7], 16384  }
  0x51   : > { %8198 = vsyncadd (%p10535_p9), [#allocation7], 4294950912  ;;  %p329_p10 = scmp.lt.s32.totalorder %s8293_s9, 1  ;;  %v10269_v0 = vmov 0.0   ;;  %v347_v1 = vld [vmem:[%s10253_s1 + $0x8] sm:$0xff]  ;;  %v346_v3 = vld [vmem:[%s10253_s1] sm:$0xff] }
  0x52   : > { %525 = vmatprep.mubr.f32.mxu1 %v10269_v0  ;;  %477 = vmatprep.mubr.f32.mxu0 %v10269_v0  ;;  %v351_v2 = vld [vmem:[%s10253_s1 + $0x28] sm:$0xff]  ;;  %v350_v5 = vld [vmem:[%s10253_s1 + $0x20] sm:$0xff]  ;;  %v349_v6 = vld [vmem:[%s10253_s1 + $0x18] sm:$0xff]  ;;  %vm376_vm0 = vcmask 130048   ;;  %vm8225_vm1 = vmmov 0   ;;  %s5224_s22 = sshll.u32 %s8293_s9, 7 }
  0x53   : > { %s330_s17 = scalar_select %p329_p10, %s8293_s9, 1  ;;  %v5279_v4 = vpack.c.bf16 %v351_v2, %v347_v1  ;;  %v5281_v7 = vpack.c.bf16 %v350_v5, %v346_v3  ;;  %v353_v8 = vld [vmem:[%s10253_s1 + $0x38] sm:$0xff]  ;;  %v348_v9 = vld [vmem:[%s10253_s1 + $0x10] sm:$0xff]  ;;  %v736_v21 = vld [vmem:[#allocation3 + $0x8] sm:$0xff] }
  0x54   : > { %v5283_v10 = vpack.c.bf16 %v353_v8, %v349_v6  ;;  %v352_v11 = vld [vmem:[%s10253_s1 + $0x30] sm:$0xff]  ;;  %v740_v22 = vld [vmem:[#allocation3 + $0x28] sm:$0xff]  ;;  %v738_v23 = vld [vmem:[#allocation3 + $0x18] sm:$0xff]  ;;  %s10210_s25 = scalar_lea.hbm %s10260_s8, %s5224_s22  ;;  %p11244_p1 = scmp.ne.s32.totalorder %s10527_s15, 0 }
  0x55   : > { %s7641_s20 = smul.u32 96, %s330_s17  ;;  %7551 = vmatprep.subr.bf16.mxu1 %v5279_v4  ;;  %5280 = vmatprep.subr.bf16.mxu0 %v5279_v4  ;;  %v5285_v14 = vpack.c.bf16 %v352_v11, %v348_v9  ;;  %v8468_v24 = vpack.c.bf16 %v740_v22, %v736_v21  ;;  %v742_v25 = vld [vmem:[#allocation3 + $0x38] sm:$0xff]  ;;  %v735_v27 = vld [vmem:[#allocation3] sm:$0xff]  ;;  %v737_v29 = vld [vmem:[#allocation3 + $0x10] sm:$0xff]  ;;  %s8226_s9 = smov [#allocation8]  }
  0x56   : > { %7552 = vmatpush1.bf16.msra.mxu1 %v5281_v7  ;;  %5282 = vmatpush1.bf16.msra.mxu0 %v5281_v7  ;;  %v8471_v26 = vpack.c.bf16 %v742_v25, %v738_v23  ;;  %v739_v28 = vld [vmem:[#allocation3 + $0x20] sm:$0xff]  ;;  %v741_v31 = vld [vmem:[#allocation3 + $0x30] sm:$0xff]  ;;  %v744_v34 = vld [vmem:[#allocation3 + $0x48] sm:$0xff]  ;;  %s8151_s12 = sshll.u32 %s8226_s9, 4  ;;  %s8152_s12 = int_to_ptr.vmem [resolvable:$false] %s8151_s12 }
  0x57   : > { %s8411_s19 = scalar_lea.vmem %s10252_s0, %s7641_s20  ;;  %5284 = vmatprep.subr.bf16.mxu1 %v5283_v10  ;;  %10536 = vst [vmem:[#allocation14_spill] sm:$0xff] %v8468_v24  ;;  %5288 = vmatprep.subr.bf16.mxu0 %v8468_v24  ;;  %v8474_v30 = vpack.c.bf16 %v739_v28, %v735_v27  ;;  %v8478_v33 = vpack.c.bf16 %v741_v31, %v737_v29  ;;  %v748_v35 = vld [vmem:[#allocation3 + $0x68] sm:$0xff]  ;;  %v746_v36 = vld [vmem:[#allocation3 + $0x58] sm:$0xff]  ;;  %v743_v39 = vld [vmem:[#allocation3 + $0x40] sm:$0xff]  ;;  %s8153_s13 = scalar_lea.vmem %s8152_s12, 256 }
  0x58   : > { %v8426_v12 = vld [vmem:[%s8411_s19 + $0x40] sm:$0xff]  ;;  %v8434_v15 = vld [vmem:[%s8411_s19 + $0x48] sm:$0xff]  ;;  %v8441_v16 = vld [vmem:[%s8411_s19 + $0x50] sm:$0xff]  ;;  %10537 = vst [vmem:[#allocation15_spill] sm:$0xff] %v8471_v26  ;;  %v8484_v37 = vpack.c.bf16 %v748_v35, %v744_v34 }
  0x59   : > { %v334_v13 = vld [vmem:[%s8411_s19] sm:$0xff]  ;;  %5134 = vmatmul.mubr.msk.f32.vlgmr.msra.gmra.mrb[0].mxu1 %vm376_vm0, %v8426_v12  ;;  %v8447_v17 = vld [vmem:[%s8411_s19 + $0x58] sm:$0xff]  ;;  %v335_v18 = vld [vmem:[%s8411_s19 + $0x8] sm:$0xff]  ;;  %10538 = vst [vmem:[#allocation16_spill] sm:$0xff] %v8474_v30 }
  0x5a   : > { %5126 = vmatmul.mubr.msk.f32.vlgmr.msra.gmra.mrb[0].mxu0 %vm376_vm0, %v334_v13  ;;  %5286 = vmatpush1.bf16.msra.mxu1 %v5285_v14  ;;  %v336_v19 = vld [vmem:[%s8411_s19 + $0x10] sm:$0xff]  ;;  %v337_v20 = vld [vmem:[%s8411_s19 + $0x18] sm:$0xff]  ;;  %v338_v32 = vld [vmem:[%s8411_s19 + $0x20] sm:$0xff]  ;;  %10539 = vst [vmem:[#allocation17_spill] sm:$0xff] %v8478_v33 }
  0x5b   : > { %531 = vmatprep.mubr.f32.mxu1 %v10269_v0  ;;  %483 = vmatprep.mubr.f32.mxu0 %v10269_v0  ;;  %10540 = vst [vmem:[#allocation18_spill] sm:$0xff] %v8484_v37  ;;  %v750_v38 = vld [vmem:[#allocation3 + $0x78] sm:$0xff]  ;;  %v747_v40 = vld [vmem:[#allocation3 + $0x60] sm:$0xff]  ;;  %v745_v43 = vld [vmem:[#allocation3 + $0x50] sm:$0xff] }
  0x5c   : > { %5320 = vmatprep.subr.bf16.mxu1 %v8471_v26  ;;  %5290 = vmatpush1.bf16.msra.mxu0 %v8474_v30  ;;  %v8486_v41 = vpack.c.bf16 %v750_v38, %v746_v36  ;;  %v8488_v42 = vpack.c.bf16 %v747_v40, %v743_v39  ;;  %v749_v44 = vld [vmem:[#allocation3 + $0x70] sm:$0xff]  ;;  %v339_v45 = vld [vmem:[%s8411_s19 + $0x28] sm:$0xff]  ;;  %v754_v49 = vld [vmem:[#allocation3 + $0x98] sm:$0xff] }
  0x5d   : > { %5135 = vmatmul.mubr.msk.f32.gmra.mrb[2].mxu1 %vm376_vm0, %v8434_v15  ;;  %5292 = vmatprep.subr.bf16.mxu0 %v8484_v37  ;;  %v8493_v46 = vpack.c.bf16 %v749_v44, %v745_v43  ;;  %v752_v47 = vld [vmem:[#allocation3 + $0x88] sm:$0xff]  ;;  %v758_v51 = vld [vmem:[#allocation3 + $0xb8] sm:$0xff]  ;;  %v751_v52 = vld [vmem:[#allocation3 + $0x80] sm:$0xff] }
  0x5e   : > { %537 = vmatprep.mubr.f32.mxu1 %v10269_v0  ;;  %5127 = vmatmul.mubr.msk.f32.gmra.mrb[2].mxu0 %vm376_vm0, %v335_v18  ;;  %10541 = vst [vmem:[#allocation19_spill] sm:$0xff] %v8486_v41  ;;  %10542 = vst [vmem:[#allocation20_spill] sm:$0xff] %v8488_v42  ;;  %v756_v48 = vld [vmem:[#allocation3 + $0xa8] sm:$0xff]  ;;  %v755_v53 = vld [vmem:[#allocation3 + $0xa0] sm:$0xff]  ;;  %v8503_v54 = vpack.c.bf16 %v758_v51, %v754_v49 }
  0x5f   : > { %489 = vmatprep.mubr.f32.mxu0 %v10269_v0  ;;  %10543 = vst [vmem:[#allocation21_spill] sm:$0xff] %v8493_v46  ;;  %v8500_v50 = vpack.c.bf16 %v756_v48, %v752_v47  ;;  %v8505_v55 = vpack.c.bf16 %v755_v53, %v751_v52  ;;  %v753_v56 = vld [vmem:[#allocation3 + $0x90] sm:$0xff]  ;;  %v760_v60 = vld [vmem:[#allocation3 + $0xc8] sm:$0xff]  ;;  %v762_v62 = vld [vmem:[#allocation3 + $0xd8] sm:$0xff] }
  0x60   : > { %5294 = vmatpush1.bf16.msra.mxu0 %v8488_v42  ;;  %10545 = vst [vmem:[#allocation23_spill] sm:$0xff] %v8503_v54  ;;  %v757_v57 = vld [vmem:[#allocation3 + $0xb0] sm:$0xff]  ;;  %v764_v61 = vld [vmem:[#allocation3 + $0xe8] sm:$0xff]  ;;  %v766_v1 = vld [vmem:[#allocation3 + $0xf8] sm:$0xff] }
  0x61   : > { %5136 = vmatmul.mubr.msk.f32.gmra.mrb[4].mxu1 %vm376_vm0, %v8441_v16  ;;  %10544 = vst [vmem:[#allocation22_spill] sm:$0xff] %v8500_v50  ;;  %10546 = vst [vmem:[#allocation24_spill] sm:$0xff] %v8505_v55  ;;  %5296 = vmatprep.subr.bf16.mxu0 %v8500_v50  ;;  %v340_v58 = vld [vmem:[%s8411_s19 + $0x30] sm:$0xff]  ;;  %v8510_v59 = vpack.c.bf16 %v757_v57, %v753_v56  ;;  %v8517_v63 = vpack.c.bf16 %v764_v61, %v760_v60  ;;  %v759_v2 = vld [vmem:[#allocation3 + $0xc0] sm:$0xff] }
  0x62   : > { %543 = vmatprep.mubr.f32.mxu1 %v10269_v0  ;;  %5128 = vmatmul.mubr.msk.f32.gmra.mrb[4].mxu0 %vm376_vm0, %v336_v19  ;;  %v763_v3 = vld [vmem:[#allocation3 + $0xe0] sm:$0xff]  ;;  %v8520_v4 = vpack.c.bf16 %v766_v1, %v762_v62  ;;  %v761_v6 = vld [vmem:[#allocation3 + $0xd0] sm:$0xff]  ;;  %v341_v8 = vld [vmem:[%s8411_s19 + $0x38] sm:$0xff]  ;;  %s326_s19 = sand.u32 1, %s8209_s28  }
  0x63   : > { %495 = vmatprep.mubr.f32.mxu0 %v10269_v0  ;;  %10547 = vst [vmem:[#allocation25_spill] sm:$0xff] %v8510_v59  ;;  %10548 = vst [vmem:[#allocation26_spill] sm:$0xff] %v8517_v63  ;;  %v8522_v5 = vpack.c.bf16 %v763_v3, %v759_v2  ;;  %v765_v7 = vld [vmem:[#allocation3 + $0xf0] sm:$0xff]  ;;  %v768_v10 = vld [vmem:[#allocation3 + $0x108] sm:$0xff]  ;;  %s5124_s29 = sshll.u32 %s326_s19, 3  ;;  %s5011_s26 = scalar_lea.sflag [#allocation5], %s326_s19 }
  0x64   : > { %5298 = vmatpush1.bf16.msra.mxu0 %v8505_v55  ;;  %10549 = vst [vmem:[#allocation27_spill] sm:$0xff] %v8520_v4  ;;  %v8527_v9 = vpack.c.bf16 %v765_v7, %v761_v6  ;;  %v772_v11 = vld [vmem:[#allocation3 + $0x128] sm:$0xff]  ;;  %v769_v23 = vld [vmem:[#allocation3 + $0x110] sm:$0xff]  ;;  %v778_v31 = vld [vmem:[#allocation3 + $0x158] sm:$0xff]  ;;  %s328_s21 = scalar_lea.vmem [#allocation8], %s5124_s29 }
  0x65   : > { %5137 = vmatmul.mubr.msk.f32.gmra.mrb[6].mxu1 %vm376_vm0, %v8447_v17  ;;  %10550 = vst [vmem:[#allocation28_spill] sm:$0xff] %v8522_v5  ;;  %5300 = vmatprep.subr.bf16.mxu0 %v8517_v63  ;;  %v8534_v14 = vpack.c.bf16 %v772_v11, %v768_v10  ;;  %v773_v25 = vld [vmem:[#allocation3 + $0x130] sm:$0xff]  ;;  %v776_v28 = vld [vmem:[#allocation3 + $0x148] sm:$0xff]  ;;  %v782_v34 = vld [vmem:[#allocation3 + $0x178] sm:$0xff]  ;;  %s5024_s23 = sshll.u32 %s328_s21, 4  ;;  %s10212_s23 = int_to_ptr.vmem [resolvable:$true] %s5024_s23 }
  0x66   : > { %614 = vmatprep.mubr.f32.mxu1 %v10269_v0  ;;  %5129 = vmatmul.mubr.msk.f32.gmra.mrb[6].mxu0 %vm376_vm0, %v337_v20  ;;  %10551 = vst [vmem:[#allocation29_spill] sm:$0xff] %v8527_v9  ;;  %v8543_v27 = vpack.c.bf16 %v773_v25, %v769_v23  ;;  %v780_v29 = vld [vmem:[#allocation3 + $0x168] sm:$0xff]  ;;  %v775_v35 = vld [vmem:[#allocation3 + $0x140] sm:$0xff]  ;;  %v8554_v38 = vpack.c.bf16 %v782_v34, %v778_v31  ;;  %v777_v40 = vld [vmem:[#allocation3 + $0x150] sm:$0xff]  ;;  %s8147_s10 = scalar_lea.vmem %s10212_s23, 128  ;;  %p8154_p4 = scmp.lt.s32.totalorder %s10212_s23, %s8152_s12 }
  0x67   : > { %501 = vmatprep.mubr.f32.mxu0 %v10269_v0  ;;  %10552 = vst [vmem:[#allocation30_spill] sm:$0xff] %v8534_v14  ;;  %v779_v36 = vld [vmem:[#allocation3 + $0x160] sm:$0xff]  ;;  %v784_v44 = vld [vmem:[#allocation3 + $0x188] sm:$0xff]  ;;  %v786_v47 = vld [vmem:[#allocation3 + $0x198] sm:$0xff]  ;;  %p8148_p12 = scmp.ne.s32.totalorder %s10212_s23, %s8147_s10  ;;  %p8155_p7 = scmp.lt.s32.totalorder %s8153_s13, %s8147_s10 }
  0x68   : > { %5302 = vmatpush1.bf16.msra.mxu0 %v8522_v5  ;;  %10555 = vst [vmem:[#allocation33_spill] sm:$0xff] %v8543_v27  ;;  %10557 = vst [vmem:[#allocation35_spill] sm:$0xff] %v8554_v38  ;;  %v8556_v39 = vpack.c.bf16 %v779_v36, %v775_v35  ;;  %v790_v49 = vld [vmem:[#allocation3 + $0x1b8] sm:$0xff]  ;;  %v783_v51 = vld [vmem:[#allocation3 + $0x180] sm:$0xff] }
  0x69   : > { %5138 = vmatmul.mubr.msk.f32.vlgmr.msra.gmra.mrb[8].mxu1 %vm376_vm0, %v334_v13  ;;  %v770_v13 = vld [vmem:[#allocation3 + $0x118] sm:$0xff]  ;;  %5304 = vmatprep.subr.bf16.mxu0 %v8534_v14  ;;  %v787_v52 = vld [vmem:[#allocation3 + $0x1a0] sm:$0xff]  ;;  %v8568_v53 = vpack.c.bf16 %v790_v49, %v786_v47  ;;  %v785_v57 = vld [vmem:[#allocation3 + $0x190] sm:$0xff]  ;;  %p8149_p2 = pnand %p8148_p12, %p11244_p1  ;;  %p8156_p8 = por %p8155_p7, %p8154_p4 }
  0x6a   : > { %620 = vmatprep.mubr.f32.mxu1 %v10269_v0  ;;  %5322 = vmatpush1.bf16.msra.mxu1 %v8478_v33  ;;  %10558 = vst [vmem:[#allocation36_spill] sm:$0xff] %v8556_v39  ;;  %v8570_v56 = vpack.c.bf16 %v787_v52, %v783_v51  ;;  %v792_v60 = vld [vmem:[#allocation3 + $0x1c8] sm:$0xff]  ;;  %v794_v62 = vld [vmem:[#allocation3 + $0x1d8] sm:$0xff]  ;;  %v791_v6 = vld [vmem:[#allocation3 + $0x1c0] sm:$0xff] }
  0x6b   : > { %5130 = vmatmul.mubr.msk.f32.gmra.mrb[8].mxu0 %vm376_vm0, %v338_v32  ;;  %5324 = vmatprep.subr.bf16.mxu1 %v8486_v41  ;;  %10561 = vst [vmem:[#allocation39_spill] sm:$0xff] %v8568_v53  ;;  %v796_v61 = vld [vmem:[#allocation3 + $0x1e8] sm:$0xff]  ;;  %v798_v1 = vld [vmem:[#allocation3 + $0x1f8] sm:$0xff]  ;;  %v795_v7 = vld [vmem:[#allocation3 + $0x1e0] sm:$0xff]  ;;  %p8150_p3 = pneg %p8149_p2 }
  0x6c   : > { %507 = vmatprep.mubr.f32.mxu0 %v10269_v0  ;;  %10562 = vst [vmem:[#allocation40_spill] sm:$0xff] %v8570_v56  ;;  %v8577_v2 = vpack.c.bf16 %v796_v61, %v792_v60  ;;  %v8579_v3 = vpack.c.bf16 %v798_v1, %v794_v62  ;;  %v797_v10 = vld [vmem:[#allocation3 + $0x1f0] sm:$0xff]  ;;  %v800_v11 = vld [vmem:[#allocation6 + $0x8] sm:$0xff]  ;;  %v806_v23 = vld [vmem:[#allocation6 + $0x38] sm:$0xff] }
  0x6d   : > { %5139 = vmatmul.mubr.msk.f32.gmra.mrb[10].mxu1 %vm376_vm0, %v335_v18  ;;  %v774_v18 = vld [vmem:[#allocation3 + $0x138] sm:$0xff]  ;;  %v354_v34 = vld [vmem:[%s10255_s3] sm:$0xf]  ;;  %p8157_p11 = pnand %p8156_p8, %p8150_p3 }
  0x6e   : > { %626 = vmatprep.mubr.f32.mxu1 %v10269_v0  ;;  %5326 = vmatpush1.bf16.msra.mxu1 %v8493_v46  ;;  %v8537_v21 = vpack.c.bf16 %v774_v18, %v770_v13  ;;  %10564 = vst [vmem:[#allocation42_spill] sm:$0xff] %v8577_v2  ;;  %10565 = vst [vmem:[#allocation43_spill] sm:$0xff] %v8579_v3  ;;  %v804_v13 = vld [vmem:[#allocation6 + $0x28] sm:$0xff]  ;;  %v8585_v18 = vpack.c.bf16 %v795_v7, %v791_v6 }
  0x6f   : > { %5131 = vmatmul.mubr.msk.f32.gmra.mrb[10].mxu0 %vm376_vm0, %v339_v45  ;;  %5328 = vmatprep.subr.bf16.mxu1 %v8503_v54  ;;  %v8591_v25 = vpack.c.bf16 %v804_v13, %v800_v11 }
  0x70   : > { %513 = vmatprep.mubr.f32.mxu0 %v10269_v0  ;;  %10553 = vst [vmem:[#allocation31_spill] sm:$0xff] %v8537_v21  ;;  %10566 = vst [vmem:[#allocation44_spill] sm:$0xff] %v8585_v18 }
  0x71   : > { %5140 = vmatmul.mubr.msk.f32.gmra.mrb[12].mxu1 %vm376_vm0, %v336_v19  ;;  %v767_v19 = vld [vmem:[#allocation3 + $0x100] sm:$0xff]  ;;  %10568 = vst [vmem:[#allocation46_spill] sm:$0xff] %v8591_v25 }
  0x72   : > { %632 = vmatprep.mubr.f32.mxu1 %v10269_v0  ;;  %5330 = vmatpush1.bf16.msra.mxu1 %v8510_v59 }
  0x73   : > { %5132 = vmatmul.mubr.msk.f32.gmra.mrb[12].mxu0 %vm376_vm0, %v340_v58  ;;  %5332 = vmatprep.subr.bf16.mxu1 %v8520_v4 }
  0x74   : > { %519 = vmatprep.mubr.f32.mxu0 %v10269_v0 }
  0x75   : > { %5141 = vmatmul.mubr.msk.f32.gmra.mrb[14].mxu1 %vm376_vm0, %v337_v20  ;;  %v771_v20 = vld [vmem:[#allocation3 + $0x120] sm:$0xff] }
  0x76   : > { %638 = vmatprep.mubr.f32.mxu1 %v10269_v0  ;;  %5334 = vmatpush1.bf16.msra.mxu1 %v8527_v9  ;;  %v8539_v22 = vpack.c.bf16 %v771_v20, %v767_v19  ;;  %v802_v20 = vld [vmem:[#allocation6 + $0x18] sm:$0xff] }
  0x77   : > { %5133 = vmatmul.mubr.msk.f32.gmra.mrb[14].mxu0 %vm376_vm0, %v341_v8  ;;  %5336 = vmatprep.subr.bf16.mxu1 %v8537_v21 }
  0x78   : > { %10554 = vst [vmem:[#allocation32_spill] sm:$0xff] %v8539_v22  ;;  %1027 = vmatprep.mubr.f32.mxu0 %v10269_v0  ;;  %5306 = vmatpush1.bf16.msra.mxu0 %v8539_v22 }
  0x79   : > { %5142 = vmatmul.mubr.msk.f32.gmra.mrb[16].mxu1 %vm376_vm0, %v338_v32  ;;  %v8551_v32 = vpack.c.bf16 %v780_v29, %v776_v28  ;;  %v356_v28 = vlaneseq }
  0x7a   : > { %644 = vmatprep.mubr.f32.mxu1 %v10269_v0  ;;  %5338 = vmatpush1.bf16.msra.mxu1 %v8543_v27 }
  0x7b   : > { %10556 = vst [vmem:[#allocation34_spill] sm:$0xff] %v8551_v32  ;;  %5308 = vmatprep.subr.bf16.mxu0 %v8551_v32  ;;  %5340 = vmatprep.subr.bf16.mxu1 %v8554_v38  ;;  %v8603_v29 = vshrl.u32 %v356_v28, 7 }
  0x7c   : > { %5310 = vmatpush1.bf16.msra.mxu0 %v8556_v39 }
  0x7d   : > { %5143 = vmatmul.mubr.msk.f32.gmra.mrb[18].mxu1 %vm376_vm0, %v339_v45  ;;  %v788_v45 = vld [vmem:[#allocation3 + $0x1a8] sm:$0xff]  ;;  %10570 = vst [vmem:[#allocation48_spill] sm:$0xff] %v8603_v29  ;;  %v10268_v31 = vsub.s32 0, %v8603_v29  ;;  %v10265_v62 = vsub.s32 2, %v8603_v29  ;;  %v10266_v1 = vsub.s32 3, %v8603_v29 }
  0x7e   : > { %650 = vmatprep.mubr.f32.mxu1 %v10269_v0  ;;  %v8564_v48 = vpack.c.bf16 %v788_v45, %v784_v44 }
  0x7f   : > { %v8612_v35 = vrot.slane %v354_v34, %v10268_v31 }
  0x80   : > { %10560 = vst [vmem:[#allocation38_spill] sm:$0xff] %v8564_v48  ;;  %5312 = vmatprep.subr.bf16.mxu0 %v8564_v48 }
  0x81   : > { %5144 = vmatmul.mubr.msk.f32.gmra.mrb[20].mxu1 %vm376_vm0, %v340_v58  ;;  %v789_v58 = vld [vmem:[#allocation3 + $0x1b0] sm:$0xff]  ;;  %5314 = vmatpush1.bf16.msra.mxu0 %v8570_v56  ;;  %10571 = vst [vmem:[#allocation49_spill] sm:$0xff] %v8612_v35 }
  0x82   : > { %656 = vmatprep.mubr.f32.mxu1 %v10269_v0  ;;  %5316 = vmatprep.subr.bf16.mxu0 %v8577_v2 }
  0x85   : > { %5145 = vmatmul.mubr.msk.f32.gmra.mrb[22].mxu1 %vm376_vm0, %v341_v8  ;;  %v793_v8 = vld [vmem:[#allocation3 + $0x1d0] sm:$0xff]  ;;  %5318 = vmatpush1.bf16.msra.mxu0 %v8585_v18 }
  0x86   : > { %662 = vmatprep.mubr.f32.mxu1 %v10269_v0  ;;  %v8587_v19 = vpack.c.bf16 %v797_v10, %v793_v8  ;;  %5352 = vmatprep.subr.bf16.mxu0 %v8591_v25  ;;  %v8640_v8 = vrot.slane %v354_v34, %v10265_v62  ;;  %v8644_v10 = vrot.slane %v354_v34, %v10266_v1 }
  0x88   : > { %10567 = vst [vmem:[#allocation45_spill] sm:$0xff] %v8587_v19  ;;  %10581 = vst [vmem:[#allocation59_spill] sm:$0xff] %v8640_v8 }
  0x89   : > { %5146 = vmatmul.mubr.msk.f32.gmra.mrb[24].mxu1 %vm376_vm0, %v8426_v12  ;;  %v781_v12 = vld [vmem:[#allocation3 + $0x170] sm:$0xff]  ;;  %10582 = vst [vmem:[#allocation60_spill] sm:$0xff] %v8644_v10 }
  0x8a   : > { %668 = vmatprep.mubr.f32.mxu1 %v10269_v0  ;;  %v8559_v43 = vpack.c.bf16 %v781_v12, %v777_v40 }
  0x8c   : > { %10559 = vst [vmem:[#allocation37_spill] sm:$0xff] %v8559_v43  ;;  %5342 = vmatpush1.bf16.msra.mxu1 %v8559_v43 }
  0x8d   : > { %5147 = vmatmul.mubr.msk.f32.gmra.mrb[26].mxu1 %vm376_vm0, %v8434_v15  ;;  %v8574_v15 = vpack.c.bf16 %v789_v58, %v785_v57  ;;  %5344 = vmatprep.subr.bf16.mxu1 %v8568_v53 }
  0x8e   : > { %674 = vmatprep.mubr.f32.mxu1 %v10269_v0 }
  0x8f   : > { %10563 = vst [vmem:[#allocation41_spill] sm:$0xff] %v8574_v15 }
  0x90   : > { %5346 = vmatpush1.bf16.msra.mxu1 %v8574_v15 }
  0x91   : > { %5148 = vmatmul.mubr.msk.f32.gmra.mrb[28].mxu1 %vm376_vm0, %v8441_v16  ;;  %5348 = vmatprep.subr.bf16.mxu1 %v8579_v3  ;;  %v8594_v16 = vpack.c.bf16 %v806_v23, %v802_v20 }
  0x92   : > { %680 = vmatprep.mubr.f32.mxu1 %v10269_v0 }
  0x93   : > { %10569 = vst [vmem:[#allocation47_spill] sm:$0xff] %v8594_v16 }
  0x94   : > { %5350 = vmatpush1.bf16.msra.mxu1 %v8587_v19 }
  0x95   : > { %5149 = vmatmul.mubr.msk.f32.gmra.mrb[30].mxu1 %vm376_vm0, %v8447_v17  ;;  %5416 = vmatprep.subr.bf16.mxu1 %v8594_v16  ;;  %v10267_v17 = vsub.s32 1, %v8603_v29  ;;  %v830_v29 = vld [vmem:[#allocation6 + $0xf8] sm:$0xff] }
  0x96   : > { %1098 = vmatprep.mubr.f32.mxu1 %v10269_v0 }
  0x97   : > { %v8616_v36 = vrot.slane %v354_v34, %v10267_v17 }
  0x99   : > { %10572 = vst [vmem:[#allocation50_spill] sm:$0xff] %v8616_v36 }
 0x12c   : > { %v8618_v40 = vpop.f32.mrb[0].mxu1 }
 0x12d   : > { %10573 = vst [vmem:[#allocation51_spill] sm:$0xff] %v8618_v40  ;;  %v479_v12 = vpop.f32.mrb[0].mxu0  ;;  %v8621_v45 = vpop.f32.mrb[1].mxu1  ;;  %v826_v40 = vld [vmem:[#allocation6 + $0xd8] sm:$0xff] }
 0x12e   : > { %v480_v44 = vadd.f32 %v479_v12, %v8612_v35  ;;  %10574 = vst [vmem:[#allocation52_spill] sm:$0xff] %v8621_v45  ;;  %v481_v47 = vpop.f32.mrb[1].mxu0  ;;  %v822_v45 = vld [vmem:[#allocation6 + $0xb8] sm:$0xff] }
 0x12f   : > { %v482_v49 = vadd.f32 %v481_v47, %v8616_v36 }
 0x130   : > { %v5150_v51 = vmul.f32 -1.442695, %v480_v44  ;;  %v8624_v57 = vpop.f32.mrb[2].mxu1 }
 0x131   : > { %v5151_v52 = vmul.f32 -1.442695, %v482_v49  ;;  %10575 = vst [vmem:[#allocation53_spill] sm:$0xff] %v8624_v57  ;;  %v8626_v58 = vpop.f32.mrb[3].mxu1  ;;  %v818_v57 = vld [vmem:[#allocation6 + $0x98] sm:$0xff] }
 0x132   : > { %7707 = vpow2.f32 %v5150_v51  ;;  %10576 = vst [vmem:[#allocation54_spill] sm:$0xff] %v8626_v58  ;;  %v820_v58 = vld [vmem:[#allocation6 + $0xa8] sm:$0xff] }
 0x133   : > { %7709 = vpow2.f32 %v5151_v52 }
 0x134   : > { %v8628_v60 = vpop.f32.mrb[4].mxu1 }
 0x135   : > { %10577 = vst [vmem:[#allocation55_spill] sm:$0xff] %v8628_v60  ;;  %v8630_v61 = vpop.f32.mrb[5].mxu1  ;;  %v816_v60 = vld [vmem:[#allocation6 + $0x88] sm:$0xff] }
 0x136   : > { %10578 = vst [vmem:[#allocation56_spill] sm:$0xff] %v8630_v61  ;;  %v813_v61 = vld [vmem:[#allocation6 + $0x70] sm:$0xff] }
 0x138   : > { %v8634_v6 = vpop.f32.mrb[6].mxu1 }
 0x139   : > { %10579 = vst [vmem:[#allocation57_spill] sm:$0xff] %v8634_v6  ;;  %v8636_v7 = vpop.f32.mrb[7].mxu1 }
 0x13a   : > { %10580 = vst [vmem:[#allocation58_spill] sm:$0xff] %v8636_v7 }
 0x13c   : > { %v7708_v11 = vpop.eup %7707  ;;  %v616_v23 = vpop.f32.mrb[8].mxu1 }
 0x13d   : > { %v7710_v13 = vpop.eup %7709  ;;  %v935_v20 = vadd.f32 1.0, %v7708_v11  ;;  %v617_v12 = vadd.f32 %v616_v23, %v8640_v8  ;;  %v618_v44 = vpop.f32.mrb[9].mxu1  ;;  %v801_v23 = vld [vmem:[#allocation6 + $0x10] sm:$0xff] }
 0x13e   : > { %v941_v28 = vadd.f32 1.0, %v7710_v13  ;;  %v619_v47 = vadd.f32 %v618_v44, %v8644_v10  ;;  %v799_v13 = vld [vmem:[#allocation6] sm:$0xff]  ;;  %v805_v44 = vld [vmem:[#allocation6 + $0x30] sm:$0xff] }
 0x13f   : > { %7711 = vrcp.f32 %v935_v20  ;;  %v803_v20 = vld [vmem:[#allocation6 + $0x20] sm:$0xff] }
 0x140   : > { %7713 = vrcp.f32 %v941_v28  ;;  %v5152_v49 = vmul.f32 -1.442695, %v619_v47  ;;  %v808_v28 = vld [vmem:[#allocation6 + $0x48] sm:$0xff]  ;;  %v810_v47 = vld [vmem:[#allocation6 + $0x58] sm:$0xff]  ;;  %v8651_v6 = vpack.c.bf16 %v803_v20, %v799_v13  ;;  %v815_v13 = vld [vmem:[#allocation6 + $0x80] sm:$0xff] }
 0x141   : > { %7715 = vtanh.f32 %v617_v12  ;;  %v812_v12 = vld [vmem:[#allocation6 + $0x68] sm:$0xff]  ;;  %v819_v20 = vld [vmem:[#allocation6 + $0xa0] sm:$0xff] }
 0x142   : > { %7717 = vpow2.f32 %v5152_v49  ;;  %v814_v49 = vld [vmem:[#allocation6 + $0x78] sm:$0xff]  ;;  %10583 = vst [vmem:[#allocation61_spill] sm:$0xff] %v8651_v6 }
 0x149   : > { %v7712_v51 = vpop.eup %7711 }
 0x14a   : > { %v7714_v52 = vpop.eup %7713 }
 0x14b   : > { %v7716_v62 = vpop.eup %7715  ;;  %v951_v34 = vmul.f32 0.0, %v7714_v52  ;;  %v8657_v52 = vpack.c.bf16 %v812_v12, %v808_v28  ;;  %v817_v28 = vld [vmem:[#allocation6 + $0x90] sm:$0xff] }
 0x14c   : > { %v952_v1 = vmul.f32 %v7716_v62, %v7712_v51  ;;  %v7718_v17 = vpop.eup %7717  ;;  %v8653_v62 = vpack.c.bf16 %v805_v44, %v801_v23  ;;  %v811_v51 = vld [vmem:[#allocation6 + $0x60] sm:$0xff]  ;;  %v8671_v23 = vpack.c.bf16 %v820_v58, %v816_v60  ;;  %v8673_v44 = vpack.c.bf16 %v822_v45, %v818_v57  ;;  %v821_v12 = vld [vmem:[#allocation6 + $0xb0] sm:$0xff] }
 0x14d   : > { %v948_v11 = vadd.f32 1.0, %v7718_v17  ;;  %10585 = vst [vmem:[#allocation63_spill] sm:$0xff] %v8657_v52  ;;  %v8681_v58 = vpack.c.bf16 %v821_v12, %v817_v28  ;;  %v823_v45 = vld [vmem:[#allocation6 + $0xc0] sm:$0xff] }
 0x14e   : > { %v8648_v31 = vadd.f32 %v952_v1, %v951_v34  ;;  %10584 = vst [vmem:[#allocation62_spill] sm:$0xff] %v8653_v62  ;;  %v807_v1 = vld [vmem:[#allocation6 + $0x40] sm:$0xff]  ;;  %v8659_v34 = vpack.c.bf16 %v814_v49, %v810_v47  ;;  %10589 = vst [vmem:[#allocation67_spill] sm:$0xff] %v8671_v23  ;;  %v824_v47 = vld [vmem:[#allocation6 + $0xc8] sm:$0xff] }
 0x14f   : > { %10590 = vst [vmem:[#allocation68_spill] sm:$0xff] %v8673_v44  ;;  %v828_v49 = vld [vmem:[#allocation6 + $0xe8] sm:$0xff]  ;;  %10593 = vst [vmem:[#allocation70_spill] sm:$0xff] %v8681_v58  ;;  %v827_v57 = vld [vmem:[#allocation6 + $0xe0] sm:$0xff] }
 0x150   : > { %7719 = vtanh.f32 %v8648_v31  ;;  %10586 = vst [vmem:[#allocation64_spill] sm:$0xff] %v8659_v34  ;;  %v8685_v60 = vpack.c.bf16 %v828_v49, %v824_v47  ;;  %v831_v28 = vld [vmem:[#allocation6 + $0x100] sm:$0xff]  ;;  %v833_v47 = vld [vmem:[#allocation6 + $0x110] sm:$0xff] }
 0x151   : > { %7721 = vrcp.f32 %v948_v11  ;;  %v809_v11 = vld [vmem:[#allocation6 + $0x50] sm:$0xff]  ;;  %v835_v12 = vld [vmem:[#allocation6 + $0x120] sm:$0xff] }
 0x152   : > { %10594 = vst [vmem:[#allocation71_spill] sm:$0xff] %v8685_v60  ;;  %v837_v49 = vld [vmem:[#allocation6 + $0x130] sm:$0xff] }
 0x15a   : > { %v7720_v0 = vpop.eup %7719 }
 0x15b   : > { %v7722_v7 = vpop.eup %7721 }
 0x15c   : > { %v8655_v17 = vmul.f32 %v7722_v7, %v7720_v0  ;;  %v8665_v0 = vpack.c.bf16 %v811_v51, %v807_v1  ;;  %v8667_v7 = vpack.c.bf16 %v813_v61, %v809_v11  ;;  %v10591_v1 = vmov 0.0   ;;  %v825_v11 = vld [vmem:[#allocation6 + $0xd0] sm:$0xff] }
 0x15d   : > { %v8679_v61 = vpack.c.bf16 %v819_v20, %v815_v13  ;;  %v8687_v51 = vpack.c.bf16 %v830_v29, %v826_v40  ;;  %v8691_v13 = vpack.c.bf16 %v827_v57, %v823_v45  ;;  %v8705_v45 = vpack.c.bf16 %v837_v49, %v833_v47  ;;  %v839_v57 = vld [vmem:[#allocation6 + $0x140] sm:$0xff] }
 0x15e   : > { %1028 = vmatmul.mubr.f32.vlgmr.msra.gmra.mrb[2].mxu0 %v8655_v17  ;;  %1099 = vmatmul.mubr.f32.vlgmr.msra.gmra.mrb[10].mxu1 %v8655_v17  ;;  %10587 = vst [vmem:[#allocation65_spill] sm:$0xff] %v8665_v0  ;;  %10588 = vst [vmem:[#allocation66_spill] sm:$0xff] %v8667_v7  ;;  %v847_v47 = vld [vmem:[#allocation6 + $0x180] sm:$0xff] }
 0x15f   : > { %5354 = vmatpush1.bf16.msra.mxu0 %v8651_v6  ;;  %5418 = vmatpush1.bf16.msra.mxu1 %v8653_v62  ;;  %10592 = vst [vmem:[#allocation69_spill] sm:$0xff] %v8679_v61  ;;  %10595 = vst [vmem:[#allocation72_spill] sm:$0xff] %v8687_v51  ;;  %v834_v62 = vld [vmem:[#allocation6 + $0x118] sm:$0xff]  ;;  %v851_v49 = vld [vmem:[#allocation6 + $0x1a0] sm:$0xff] }
 0x160   : > { %5356 = vmatprep.subr.bf16.mxu0 %v8657_v52  ;;  %5420 = vmatprep.subr.bf16.mxu1 %v8659_v34  ;;  %v829_v34 = vld [vmem:[#allocation6 + $0xf0] sm:$0xff]  ;;  %v832_v52 = vld [vmem:[#allocation6 + $0x108] sm:$0xff]  ;;  %10596 = vst [vmem:[#allocation73_spill] sm:$0xff] %v8691_v13  ;;  %10601 = vst [vmem:[#allocation78_spill] sm:$0xff] %v8705_v45 }
 0x161   : > { %1218 = vmatprep.mubr.f32.mxu0 %v10591_v1  ;;  %1289 = vmatprep.mubr.f32.mxu1 %v10591_v1  ;;  %v8693_v20 = vpack.c.bf16 %v829_v34, %v825_v11  ;;  %v8703_v34 = vpack.c.bf16 %v835_v12, %v831_v28  ;;  %v843_v11 = vld [vmem:[#allocation6 + $0x160] sm:$0xff] }
 0x162   : > { %v8715_v28 = vpack.c.bf16 %v843_v11, %v839_v57  ;;  %v8727_v57 = vpack.c.bf16 %v851_v49, %v847_v47 }
 0x163   : > { %5358 = vmatpush1.bf16.msra.mxu0 %v8665_v0  ;;  %5422 = vmatpush1.bf16.msra.mxu1 %v8667_v7  ;;  %v836_v0 = vld [vmem:[#allocation6 + $0x128] sm:$0xff]  ;;  %v838_v7 = vld [vmem:[#allocation6 + $0x138] sm:$0xff]  ;;  %10597 = vst [vmem:[#allocation74_spill] sm:$0xff] %v8693_v20  ;;  %10600 = vst [vmem:[#allocation77_spill] sm:$0xff] %v8703_v34 }
 0x164   : > { %5360 = vmatprep.subr.bf16.mxu0 %v8671_v23  ;;  %5424 = vmatprep.subr.bf16.mxu1 %v8673_v44  ;;  %v8697_v29 = vpack.c.bf16 %v836_v0, %v832_v52  ;;  %v8699_v40 = vpack.c.bf16 %v838_v7, %v834_v62  ;;  %v840_v44 = vld [vmem:[#allocation6 + $0x148] sm:$0xff]  ;;  %v842_v23 = vld [vmem:[#allocation6 + $0x158] sm:$0xff]  ;;  %v841_v0 = vld [vmem:[#allocation6 + $0x150] sm:$0xff]  ;;  %10604 = vst [vmem:[#allocation81_spill] sm:$0xff] %v8715_v28 }
 0x165   : > { %v845_v7 = vld [vmem:[#allocation6 + $0x170] sm:$0xff]  ;;  %10608 = vst [vmem:[#allocation85_spill] sm:$0xff] %v8727_v57 }
 0x166   : > { %10598 = vst [vmem:[#allocation75_spill] sm:$0xff] %v8697_v29  ;;  %10599 = vst [vmem:[#allocation76_spill] sm:$0xff] %v8699_v40  ;;  %v8717_v12 = vpack.c.bf16 %v845_v7, %v841_v0  ;;  %v855_v0 = vld [vmem:[#allocation6 + $0x1c0] sm:$0xff] }
 0x167   : > { %5362 = vmatpush1.bf16.msra.mxu0 %v8679_v61  ;;  %5426 = vmatpush1.bf16.msra.mxu1 %v8681_v58  ;;  %v844_v61 = vld [vmem:[#allocation6 + $0x168] sm:$0xff]  ;;  %v846_v58 = vld [vmem:[#allocation6 + $0x178] sm:$0xff]  ;;  %v859_v7 = vld [vmem:[#allocation6 + $0x1e0] sm:$0xff] }
 0x168   : > { %5364 = vmatprep.subr.bf16.mxu0 %v8685_v60  ;;  %5428 = vmatprep.subr.bf16.mxu1 %v8687_v51  ;;  %v8709_v62 = vpack.c.bf16 %v844_v61, %v840_v44  ;;  %v8711_v52 = vpack.c.bf16 %v846_v58, %v842_v23  ;;  %v848_v51 = vld [vmem:[#allocation6 + $0x188] sm:$0xff]  ;;  %v850_v60 = vld [vmem:[#allocation6 + $0x198] sm:$0xff]  ;;  %10605 = vst [vmem:[#allocation82_spill] sm:$0xff] %v8717_v12  ;;  %v849_v61 = vld [vmem:[#allocation6 + $0x190] sm:$0xff] }
 0x169   : > { %v853_v58 = vld [vmem:[#allocation6 + $0x1b0] sm:$0xff]  ;;  %v8739_v47 = vpack.c.bf16 %v859_v7, %v855_v0 }
 0x16a   : > { %10602 = vst [vmem:[#allocation79_spill] sm:$0xff] %v8709_v62  ;;  %10603 = vst [vmem:[#allocation80_spill] sm:$0xff] %v8711_v52  ;;  %v8729_v11 = vpack.c.bf16 %v853_v58, %v849_v61  ;;  %v863_v61 = vld [vmem:[#allocation6 + $0x200] sm:$0xff] }
 0x16b   : > { %5366 = vmatpush1.bf16.msra.mxu0 %v8691_v13  ;;  %5430 = vmatpush1.bf16.msra.mxu1 %v8693_v20  ;;  %v852_v13 = vld [vmem:[#allocation6 + $0x1a8] sm:$0xff]  ;;  %v854_v20 = vld [vmem:[#allocation6 + $0x1b8] sm:$0xff]  ;;  %10612 = vst [vmem:[#allocation89_spill] sm:$0xff] %v8739_v47  ;;  %v867_v58 = vld [vmem:[#allocation6 + $0x220] sm:$0xff] }
 0x16c   : > { %5368 = vmatprep.subr.bf16.mxu0 %v8697_v29  ;;  %5432 = vmatprep.subr.bf16.mxu1 %v8699_v40  ;;  %v8721_v23 = vpack.c.bf16 %v852_v13, %v848_v51  ;;  %v8723_v44 = vpack.c.bf16 %v854_v20, %v850_v60  ;;  %v856_v40 = vld [vmem:[#allocation6 + $0x1c8] sm:$0xff]  ;;  %v858_v29 = vld [vmem:[#allocation6 + $0x1d8] sm:$0xff]  ;;  %10609 = vst [vmem:[#allocation86_spill] sm:$0xff] %v8729_v11  ;;  %v857_v13 = vld [vmem:[#allocation6 + $0x1d0] sm:$0xff] }
 0x16d   : > { %v861_v20 = vld [vmem:[#allocation6 + $0x1f0] sm:$0xff]  ;;  %v8751_v0 = vpack.c.bf16 %v867_v58, %v863_v61 }
 0x16e   : > { %10606 = vst [vmem:[#allocation83_spill] sm:$0xff] %v8721_v23  ;;  %10607 = vst [vmem:[#allocation84_spill] sm:$0xff] %v8723_v44  ;;  %v8741_v49 = vpack.c.bf16 %v861_v20, %v857_v13  ;;  %v871_v13 = vld [vmem:[#allocation6 + $0x240] sm:$0xff] }
 0x16f   : > { %5370 = vmatpush1.bf16.msra.mxu0 %v8703_v34  ;;  %5434 = vmatpush1.bf16.msra.mxu1 %v8705_v45  ;;  %v860_v34 = vld [vmem:[#allocation6 + $0x1e8] sm:$0xff]  ;;  %v862_v45 = vld [vmem:[#allocation6 + $0x1f8] sm:$0xff]  ;;  %10616 = vst [vmem:[#allocation93_spill] sm:$0xff] %v8751_v0  ;;  %v875_v20 = vld [vmem:[#allocation6 + $0x260] sm:$0xff] }
 0x170   : > { %5372 = vmatprep.subr.bf16.mxu0 %v8709_v62  ;;  %5436 = vmatprep.subr.bf16.mxu1 %v8711_v52  ;;  %v8733_v60 = vpack.c.bf16 %v860_v34, %v856_v40  ;;  %v8735_v51 = vpack.c.bf16 %v862_v45, %v858_v29  ;;  %v864_v52 = vld [vmem:[#allocation6 + $0x208] sm:$0xff]  ;;  %v866_v62 = vld [vmem:[#allocation6 + $0x218] sm:$0xff]  ;;  %10613 = vst [vmem:[#allocation90_spill] sm:$0xff] %v8741_v49  ;;  %v865_v34 = vld [vmem:[#allocation6 + $0x210] sm:$0xff] }
 0x171   : > { %v869_v45 = vld [vmem:[#allocation6 + $0x230] sm:$0xff]  ;;  %v8763_v61 = vpack.c.bf16 %v875_v20, %v871_v13 }
 0x172   : > { %10610 = vst [vmem:[#allocation87_spill] sm:$0xff] %v8733_v60  ;;  %10611 = vst [vmem:[#allocation88_spill] sm:$0xff] %v8735_v51  ;;  %v8753_v7 = vpack.c.bf16 %v869_v45, %v865_v34  ;;  %v879_v34 = vld [vmem:[#allocation6 + $0x280] sm:$0xff] }
 0x173   : > { %5374 = vmatpush1.bf16.msra.mxu0 %v8715_v28  ;;  %5438 = vmatpush1.bf16.msra.mxu1 %v8717_v12  ;;  %v868_v28 = vld [vmem:[#allocation6 + $0x228] sm:$0xff]  ;;  %v870_v12 = vld [vmem:[#allocation6 + $0x238] sm:$0xff]  ;;  %10620 = vst [vmem:[#allocation97_spill] sm:$0xff] %v8763_v61  ;;  %v883_v45 = vld [vmem:[#allocation6 + $0x2a0] sm:$0xff] }
 0x174   : > { %5376 = vmatprep.subr.bf16.mxu0 %v8721_v23  ;;  %5440 = vmatprep.subr.bf16.mxu1 %v8723_v44  ;;  %v8745_v29 = vpack.c.bf16 %v868_v28, %v864_v52  ;;  %v8747_v40 = vpack.c.bf16 %v870_v12, %v866_v62  ;;  %v872_v44 = vld [vmem:[#allocation6 + $0x248] sm:$0xff]  ;;  %v874_v23 = vld [vmem:[#allocation6 + $0x258] sm:$0xff]  ;;  %10617 = vst [vmem:[#allocation94_spill] sm:$0xff] %v8753_v7  ;;  %v873_v28 = vld [vmem:[#allocation6 + $0x250] sm:$0xff] }
 0x175   : > { %v877_v12 = vld [vmem:[#allocation6 + $0x270] sm:$0xff]  ;;  %v8775_v13 = vpack.c.bf16 %v883_v45, %v879_v34 }
 0x176   : > { %10614 = vst [vmem:[#allocation91_spill] sm:$0xff] %v8745_v29  ;;  %10615 = vst [vmem:[#allocation92_spill] sm:$0xff] %v8747_v40  ;;  %v8765_v58 = vpack.c.bf16 %v877_v12, %v873_v28  ;;  %v887_v28 = vld [vmem:[#allocation6 + $0x2c0] sm:$0xff] }
 0x177   : > { %5378 = vmatpush1.bf16.msra.mxu0 %v8727_v57  ;;  %5442 = vmatpush1.bf16.msra.mxu1 %v8729_v11  ;;  %v876_v57 = vld [vmem:[#allocation6 + $0x268] sm:$0xff]  ;;  %v878_v11 = vld [vmem:[#allocation6 + $0x278] sm:$0xff]  ;;  %10624 = vst [vmem:[#allocation101_spill] sm:$0xff] %v8775_v13  ;;  %v891_v12 = vld [vmem:[#allocation6 + $0x2e0] sm:$0xff] }
 0x178   : > { %5380 = vmatprep.subr.bf16.mxu0 %v8733_v60  ;;  %5444 = vmatprep.subr.bf16.mxu1 %v8735_v51  ;;  %v8757_v62 = vpack.c.bf16 %v876_v57, %v872_v44  ;;  %v8759_v52 = vpack.c.bf16 %v878_v11, %v874_v23  ;;  %v880_v51 = vld [vmem:[#allocation6 + $0x288] sm:$0xff]  ;;  %v882_v60 = vld [vmem:[#allocation6 + $0x298] sm:$0xff]  ;;  %10621 = vst [vmem:[#allocation98_spill] sm:$0xff] %v8765_v58  ;;  %v881_v57 = vld [vmem:[#allocation6 + $0x290] sm:$0xff] }
 0x179   : > { %v885_v11 = vld [vmem:[#allocation6 + $0x2b0] sm:$0xff]  ;;  %v8787_v34 = vpack.c.bf16 %v891_v12, %v887_v28 }
 0x17a   : > { %10618 = vst [vmem:[#allocation95_spill] sm:$0xff] %v8757_v62  ;;  %10619 = vst [vmem:[#allocation96_spill] sm:$0xff] %v8759_v52  ;;  %v8777_v20 = vpack.c.bf16 %v885_v11, %v881_v57  ;;  %v895_v57 = vld [vmem:[#allocation6 + $0x300] sm:$0xff] }
 0x17b   : > { %5382 = vmatpush1.bf16.msra.mxu0 %v8739_v47  ;;  %5446 = vmatpush1.bf16.msra.mxu1 %v8741_v49  ;;  %v884_v47 = vld [vmem:[#allocation6 + $0x2a8] sm:$0xff]  ;;  %v886_v49 = vld [vmem:[#allocation6 + $0x2b8] sm:$0xff]  ;;  %10628 = vst [vmem:[#allocation105_spill] sm:$0xff] %v8787_v34  ;;  %v899_v11 = vld [vmem:[#allocation6 + $0x320] sm:$0xff] }
 0x17c   : > { %5384 = vmatprep.subr.bf16.mxu0 %v8745_v29  ;;  %5448 = vmatprep.subr.bf16.mxu1 %v8747_v40  ;;  %v8769_v23 = vpack.c.bf16 %v884_v47, %v880_v51  ;;  %v8771_v44 = vpack.c.bf16 %v886_v49, %v882_v60  ;;  %v888_v40 = vld [vmem:[#allocation6 + $0x2c8] sm:$0xff]  ;;  %v890_v29 = vld [vmem:[#allocation6 + $0x2d8] sm:$0xff]  ;;  %10625 = vst [vmem:[#allocation102_spill] sm:$0xff] %v8777_v20  ;;  %v889_v47 = vld [vmem:[#allocation6 + $0x2d0] sm:$0xff] }
 0x17d   : > { %v893_v49 = vld [vmem:[#allocation6 + $0x2f0] sm:$0xff]  ;;  %v8799_v28 = vpack.c.bf16 %v899_v11, %v895_v57 }
 0x17e   : > { %10622 = vst [vmem:[#allocation99_spill] sm:$0xff] %v8769_v23  ;;  %10623 = vst [vmem:[#allocation100_spill] sm:$0xff] %v8771_v44  ;;  %v8789_v45 = vpack.c.bf16 %v893_v49, %v889_v47  ;;  %v903_v47 = vld [vmem:[#allocation6 + $0x340] sm:$0xff] }
 0x17f   : > { %5386 = vmatpush1.bf16.msra.mxu0 %v8751_v0  ;;  %5450 = vmatpush1.bf16.msra.mxu1 %v8753_v7  ;;  %v892_v0 = vld [vmem:[#allocation6 + $0x2e8] sm:$0xff]  ;;  %v894_v7 = vld [vmem:[#allocation6 + $0x2f8] sm:$0xff]  ;;  %10632 = vst [vmem:[#allocation109_spill] sm:$0xff] %v8799_v28  ;;  %v907_v49 = vld [vmem:[#allocation6 + $0x360] sm:$0xff] }
 0x180   : > { %5388 = vmatprep.subr.bf16.mxu0 %v8757_v62  ;;  %5452 = vmatprep.subr.bf16.mxu1 %v8759_v52  ;;  %v8781_v60 = vpack.c.bf16 %v892_v0, %v888_v40  ;;  %v8783_v51 = vpack.c.bf16 %v894_v7, %v890_v29  ;;  %v896_v52 = vld [vmem:[#allocation6 + $0x308] sm:$0xff]  ;;  %v898_v62 = vld [vmem:[#allocation6 + $0x318] sm:$0xff]  ;;  %10629 = vst [vmem:[#allocation106_spill] sm:$0xff] %v8789_v45  ;;  %v897_v0 = vld [vmem:[#allocation6 + $0x310] sm:$0xff] }
 0x181   : > { %v901_v7 = vld [vmem:[#allocation6 + $0x330] sm:$0xff]  ;;  %v8811_v57 = vpack.c.bf16 %v907_v49, %v903_v47 }
 0x182   : > { %10626 = vst [vmem:[#allocation103_spill] sm:$0xff] %v8781_v60  ;;  %10627 = vst [vmem:[#allocation104_spill] sm:$0xff] %v8783_v51  ;;  %v8801_v12 = vpack.c.bf16 %v901_v7, %v897_v0  ;;  %v911_v0 = vld [vmem:[#allocation6 + $0x380] sm:$0xff] }
 0x183   : > { %5390 = vmatpush1.bf16.msra.mxu0 %v8763_v61  ;;  %5454 = vmatpush1.bf16.msra.mxu1 %v8765_v58  ;;  %v900_v61 = vld [vmem:[#allocation6 + $0x328] sm:$0xff]  ;;  %v902_v58 = vld [vmem:[#allocation6 + $0x338] sm:$0xff]  ;;  %10636 = vst [vmem:[#allocation113_spill] sm:$0xff] %v8811_v57  ;;  %v915_v7 = vld [vmem:[#allocation6 + $0x3a0] sm:$0xff] }
 0x184   : > { %5392 = vmatprep.subr.bf16.mxu0 %v8769_v23  ;;  %5456 = vmatprep.subr.bf16.mxu1 %v8771_v44  ;;  %v8793_v29 = vpack.c.bf16 %v900_v61, %v896_v52  ;;  %v8795_v40 = vpack.c.bf16 %v902_v58, %v898_v62  ;;  %v904_v44 = vld [vmem:[#allocation6 + $0x348] sm:$0xff]  ;;  %v906_v23 = vld [vmem:[#allocation6 + $0x358] sm:$0xff]  ;;  %10633 = vst [vmem:[#allocation110_spill] sm:$0xff] %v8801_v12  ;;  %v905_v61 = vld [vmem:[#allocation6 + $0x350] sm:$0xff] }
 0x185   : > { %v909_v58 = vld [vmem:[#allocation6 + $0x370] sm:$0xff]  ;;  %v8823_v47 = vpack.c.bf16 %v915_v7, %v911_v0 }
 0x186   : > { %10630 = vst [vmem:[#allocation107_spill] sm:$0xff] %v8793_v29  ;;  %10631 = vst [vmem:[#allocation108_spill] sm:$0xff] %v8795_v40  ;;  %v8813_v11 = vpack.c.bf16 %v909_v58, %v905_v61  ;;  %v919_v61 = vld [vmem:[#allocation6 + $0x3c0] sm:$0xff]  ;;  %v925_v58 = vld [vmem:[#allocation6 + $0x3f0] sm:$0xff] }
 0x187   : > { %5394 = vmatpush1.bf16.msra.mxu0 %v8775_v13  ;;  %5458 = vmatpush1.bf16.msra.mxu1 %v8777_v20  ;;  %v908_v13 = vld [vmem:[#allocation6 + $0x368] sm:$0xff]  ;;  %v910_v20 = vld [vmem:[#allocation6 + $0x378] sm:$0xff]  ;;  %10640 = vst [vmem:[#allocation117_spill] sm:$0xff] %v8823_v47 }
 0x188   : > { %5396 = vmatprep.subr.bf16.mxu0 %v8781_v60  ;;  %5460 = vmatprep.subr.bf16.mxu1 %v8783_v51  ;;  %v8805_v62 = vpack.c.bf16 %v908_v13, %v904_v44  ;;  %v8807_v52 = vpack.c.bf16 %v910_v20, %v906_v23  ;;  %v912_v51 = vld [vmem:[#allocation6 + $0x388] sm:$0xff]  ;;  %v914_v60 = vld [vmem:[#allocation6 + $0x398] sm:$0xff]  ;;  %10637 = vst [vmem:[#allocation114_spill] sm:$0xff] %v8813_v11  ;;  %v913_v13 = vld [vmem:[#allocation6 + $0x390] sm:$0xff] }
 0x189   : > { %v917_v20 = vld [vmem:[#allocation6 + $0x3b0] sm:$0xff] }
 0x18a   : > { %10634 = vst [vmem:[#allocation111_spill] sm:$0xff] %v8805_v62  ;;  %10635 = vst [vmem:[#allocation112_spill] sm:$0xff] %v8807_v52  ;;  %v8825_v49 = vpack.c.bf16 %v917_v20, %v913_v13 }
 0x18b   : > { %5398 = vmatpush1.bf16.msra.mxu0 %v8787_v34  ;;  %5462 = vmatpush1.bf16.msra.mxu1 %v8789_v45  ;;  %v916_v34 = vld [vmem:[#allocation6 + $0x3a8] sm:$0xff]  ;;  %v918_v45 = vld [vmem:[#allocation6 + $0x3b8] sm:$0xff] }
 0x18c   : > { %5400 = vmatprep.subr.bf16.mxu0 %v8793_v29  ;;  %5464 = vmatprep.subr.bf16.mxu1 %v8795_v40  ;;  %v8817_v23 = vpack.c.bf16 %v916_v34, %v912_v51  ;;  %v8819_v44 = vpack.c.bf16 %v918_v45, %v914_v60  ;;  %v920_v40 = vld [vmem:[#allocation6 + $0x3c8] sm:$0xff]  ;;  %v922_v29 = vld [vmem:[#allocation6 + $0x3d8] sm:$0xff]  ;;  %10641 = vst [vmem:[#allocation118_spill] sm:$0xff] %v8825_v49  ;;  %v923_v34 = vld [vmem:[#allocation6 + $0x3e0] sm:$0xff] }
 0x18d   : > { %v921_v45 = vld [vmem:[#allocation6 + $0x3d0] sm:$0xff]  ;;  %v8835_v0 = vpack.c.bf16 %v923_v34, %v919_v61 }
 0x18e   : > { %10638 = vst [vmem:[#allocation115_spill] sm:$0xff] %v8817_v23  ;;  %10639 = vst [vmem:[#allocation116_spill] sm:$0xff] %v8819_v44  ;;  %v8837_v7 = vpack.c.bf16 %v925_v58, %v921_v45 }
 0x18f   : > { %5402 = vmatpush1.bf16.msra.mxu0 %v8799_v28  ;;  %5466 = vmatpush1.bf16.msra.mxu1 %v8801_v12  ;;  %v924_v28 = vld [vmem:[#allocation6 + $0x3e8] sm:$0xff]  ;;  %v926_v12 = vld [vmem:[#allocation6 + $0x3f8] sm:$0xff]  ;;  %10644 = vst [vmem:[#allocation121_spill] sm:$0xff] %v8835_v0 }
 0x190   : > { %5404 = vmatprep.subr.bf16.mxu0 %v8805_v62  ;;  %5468 = vmatprep.subr.bf16.mxu1 %v8807_v52  ;;  %v8829_v60 = vpack.c.bf16 %v924_v28, %v920_v40  ;;  %v8831_v51 = vpack.c.bf16 %v926_v12, %v922_v29  ;;  %10645 = vst [vmem:[#allocation122_spill] sm:$0xff] %v8837_v7 }
 0x192   : > { %10642 = vst [vmem:[#allocation119_spill] sm:$0xff] %v8829_v60  ;;  %10643 = vst [vmem:[#allocation120_spill] sm:$0xff] %v8831_v51 }
 0x193   : > { %5406 = vmatpush1.bf16.msra.mxu0 %v8811_v57  ;;  %5470 = vmatpush1.bf16.msra.mxu1 %v8813_v11 }
 0x194   : > { %5408 = vmatprep.subr.bf16.mxu0 %v8817_v23  ;;  %5472 = vmatprep.subr.bf16.mxu1 %v8819_v44 }
 0x197   : > { %5410 = vmatpush1.bf16.msra.mxu0 %v8823_v47  ;;  %5474 = vmatpush1.bf16.msra.mxu1 %v8825_v49 }
 0x198   : > { %5412 = vmatprep.subr.bf16.mxu0 %v8829_v60  ;;  %5476 = vmatprep.subr.bf16.mxu1 %v8831_v51 }
 0x19b   : > { %5414 = vmatpush1.bf16.msra.mxu0 %v8835_v0  ;;  %5478 = vmatpush1.bf16.msra.mxu1 %v8837_v7 }
 0x19c   : > { %5480 = vmatprep.subr.bf16.mxu0 %v8468_v24  ;;  %5512 = vmatprep.subr.bf16.mxu1 %v8471_v26 }
 0x19e   : > { %1219 = vmatmul.mubr.f32.vlgmr.msra.gmra.mrb[16].mxu0 %v8655_v17  ;;  %1290 = vmatmul.mubr.f32.vlgmr.msra.gmra.mrb[32].mxu1 %v8655_v17 }
 0x19f   : > { %5482 = vmatpush1.bf16.msra.mxu0 %v8474_v30  ;;  %5514 = vmatpush1.bf16.msra.mxu1 %v8478_v33 }
 0x1a0   : > { %5484 = vmatprep.subr.bf16.mxu0 %v8484_v37  ;;  %5516 = vmatprep.subr.bf16.mxu1 %v8486_v41 }
 0x1a1   : > { %1391 = vmatprep.mubr.f32.mxu0 %v10591_v1  ;;  %1462 = vmatprep.mubr.f32.mxu1 %v10591_v1 }
 0x1a3   : > { %5486 = vmatpush1.bf16.msra.mxu0 %v8488_v42  ;;  %5518 = vmatpush1.bf16.msra.mxu1 %v8493_v46 }
 0x1a4   : > { %5488 = vmatprep.subr.bf16.mxu0 %v8500_v50  ;;  %5520 = vmatprep.subr.bf16.mxu1 %v8503_v54 }
 0x1a7   : > { %5490 = vmatpush1.bf16.msra.mxu0 %v8505_v55  ;;  %5522 = vmatpush1.bf16.msra.mxu1 %v8510_v59 }
 0x1a8   : > { %5492 = vmatprep.subr.bf16.mxu0 %v8517_v63  ;;  %5524 = vmatprep.subr.bf16.mxu1 %v8520_v4 }
 0x1ab   : > { %5494 = vmatpush1.bf16.msra.mxu0 %v8522_v5  ;;  %5526 = vmatpush1.bf16.msra.mxu1 %v8527_v9 }
 0x1ac   : > { %5496 = vmatprep.subr.bf16.mxu0 %v8534_v14  ;;  %5528 = vmatprep.subr.bf16.mxu1 %v8537_v21 }
 0x1af   : > { %5498 = vmatpush1.bf16.msra.mxu0 %v8539_v22  ;;  %5530 = vmatpush1.bf16.msra.mxu1 %v8543_v27 }
 0x1b0   : > { %5500 = vmatprep.subr.bf16.mxu0 %v8551_v32  ;;  %5532 = vmatprep.subr.bf16.mxu1 %v8554_v38 }
 0x1b3   : > { %5502 = vmatpush1.bf16.msra.mxu0 %v8556_v39  ;;  %5534 = vmatpush1.bf16.msra.mxu1 %v8559_v43 }
 0x1b4   : > { %5504 = vmatprep.subr.bf16.mxu0 %v8564_v48  ;;  %5536 = vmatprep.subr.bf16.mxu1 %v8568_v53 }
 0x1b7   : > { %5506 = vmatpush1.bf16.msra.mxu0 %v8570_v56  ;;  %5538 = vmatpush1.bf16.msra.mxu1 %v8574_v15 }
 0x1b8   : > { %5508 = vmatprep.subr.bf16.mxu0 %v8577_v2  ;;  %5540 = vmatprep.subr.bf16.mxu1 %v8579_v3 }
 0x1bb   : > { %5510 = vmatpush1.bf16.msra.mxu0 %v8585_v18  ;;  %5542 = vmatpush1.bf16.msra.mxu1 %v8587_v19 }
 0x1bc   : > { %5544 = vmatprep.subr.bf16.mxu0 %v8591_v25  ;;  %5608 = vmatprep.subr.bf16.mxu1 %v8594_v16 }
 0x231   : > { %v1029_v17 = vpop.f32.mrb[2].mxu0  ;;  %v1100_v29 = vpop.f32.mrb[10].mxu1 }
 0x232   : > { %v7553_v40 = vadd.f32 %v1029_v17, %v8612_v35  ;;  %v1031_v28 = vpop.f32.mrb[3].mxu0  ;;  %v1102_v12 = vpop.f32.mrb[11].mxu1  ;;  %v7583_v58 = vadd.f32 %v1100_v29, %v8640_v8 }
 0x233   : > { %v7554_v13 = vadd.f32 %v1031_v28, %v8616_v36  ;;  %v7584_v34 = vadd.f32 %v1102_v12, %v8644_v10  ;;  %v10673_v10 = vld [vmem:[#allocation81_spill] sm:$0xff] }
 0x234   : > { %v5153_v20 = vmul.f32 -1.442695, %v7553_v40 }
 0x235   : > { %v5154_v61 = vmul.f32 -1.442695, %v7554_v13  ;;  %v5155_v45 = vmul.f32 -1.442695, %v7584_v34 }
 0x236   : > { %7723 = vpow2.f32 %v5153_v20 }
 0x237   : > { %7725 = vpow2.f32 %v5154_v61 }
 0x238   : > { %7727 = vpow2.f32 %v5155_v45  ;;  %v10652_v45 = vld [vmem:[#allocation67_spill] sm:$0xff] }
 0x239   : > { %7729 = vtanh.f32 %v7583_v58  ;;  %v10653_v58 = vld [vmem:[#allocation68_spill] sm:$0xff] }
 0x240   : > { %v7724_v25 = vpop.eup %7723 }
 0x241   : > { %v7726_v19 = vpop.eup %7725  ;;  %v1112_v16 = vadd.f32 1.0, %v7724_v25 }
 0x242   : > { %v1118_v18 = vadd.f32 1.0, %v7726_v19  ;;  %v7728_v17 = vpop.eup %7727  ;;  %v10648_v19 = vld [vmem:[#allocation63_spill] sm:$0xff] }
 0x243   : > { %7731 = vrcp.f32 %v1112_v16  ;;  %v7730_v35 = vpop.eup %7729  ;;  %v1125_v20 = vadd.f32 1.0, %v7728_v17  ;;  %v10649_v16 = vld [vmem:[#allocation64_spill] sm:$0xff]  ;;  %v10654_v17 = vld [vmem:[#allocation69_spill] sm:$0xff] }
 0x244   : > { %7733 = vrcp.f32 %v1118_v18  ;;  %v10647_v18 = vld [vmem:[#allocation62_spill] sm:$0xff] }
 0x245   : > { %7735 = vrcp.f32 %v1125_v20  ;;  %v927_v20 = vld [vmem:[%s10257_s5] sm:$0xf] }
 0x24d   : > { %v7732_v28 = vpop.eup %7731 }
 0x24e   : > { %v7734_v40 = vpop.eup %7733  ;;  %v1129_v13 = vmul.f32 %v7732_v28, %v7730_v35  ;;  %v10651_v35 = vld [vmem:[#allocation66_spill] sm:$0xff] }
 0x24f   : > { %v1128_v61 = vmul.f32 %v7734_v40, %v8648_v31  ;;  %v7736_v29 = vpop.eup %7735  ;;  %v10650_v31 = vld [vmem:[#allocation65_spill] sm:$0xff]  ;;  %v10655_v28 = vld [vmem:[#allocation70_spill] sm:$0xff]  ;;  %v10656_v40 = vld [vmem:[#allocation71_spill] sm:$0xff] }
 0x251   : > { %v8886_v12 = vadd.f32 %v1129_v13, %v1128_v61  ;;  %v10657_v13 = vld [vmem:[#allocation72_spill] sm:$0xff]  ;;  %v10658_v61 = vld [vmem:[#allocation73_spill] sm:$0xff] }
 0x253   : > { %10646 = vst [vmem:[#allocation123_spill] sm:$0xff] %v8886_v12  ;;  %7737 = vtanh.f32 %v8886_v12 }
 0x25d   : > { %v7738_v25 = vpop.eup %7737 }
 0x25e   : > { %v8889_v34 = vmul.f32 %v7738_v25, %v7736_v29  ;;  %v10659_v29 = vld [vmem:[#allocation74_spill] sm:$0xff]  ;;  %v10660_v25 = vld [vmem:[#allocation48_spill] sm:$0xff] }
 0x260   : > { %1392 = vmatmul.mubr.f32.vlgmr.msra.gmra.mrb[4].mxu0 %v8889_v34  ;;  %1463 = vmatmul.mubr.f32.vlgmr.msra.gmra.mrb[12].mxu1 %v8889_v34 }
 0x261   : > { %5546 = vmatpush1.bf16.msra.mxu0 %v8651_v6  ;;  %5610 = vmatpush1.bf16.msra.mxu1 %v10647_v18  ;;  %v10670_v6 = vld [vmem:[#allocation80_spill] sm:$0xff] }
 0x262   : > { %5548 = vmatprep.subr.bf16.mxu0 %v10648_v19  ;;  %5612 = vmatprep.subr.bf16.mxu1 %v10649_v16  ;;  %v10667_v16 = vld [vmem:[#allocation77_spill] sm:$0xff]  ;;  %v10668_v19 = vld [vmem:[#allocation78_spill] sm:$0xff] }
 0x265   : > { %5550 = vmatpush1.bf16.msra.mxu0 %v10650_v31  ;;  %5614 = vmatpush1.bf16.msra.mxu1 %v10651_v35 }
 0x266   : > { %5552 = vmatprep.subr.bf16.mxu0 %v10652_v45  ;;  %5616 = vmatprep.subr.bf16.mxu1 %v10653_v58  ;;  %v10661_v45 = vsub.s32 0, %v10660_v25  ;;  %v10663_v58 = vld [vmem:[#allocation75_spill] sm:$0xff] }
 0x268   : > { %v8912_v35 = vrot.slane %v927_v20, %v10661_v45  ;;  %v10669_v45 = vld [vmem:[#allocation79_spill] sm:$0xff] }
 0x269   : > { %5554 = vmatpush1.bf16.msra.mxu0 %v10654_v17  ;;  %5618 = vmatpush1.bf16.msra.mxu1 %v10655_v28  ;;  %v10664_v17 = vld [vmem:[#allocation76_spill] sm:$0xff] }
 0x26a   : > { %5556 = vmatprep.subr.bf16.mxu0 %v10656_v40  ;;  %5620 = vmatprep.subr.bf16.mxu1 %v10657_v13  ;;  %10662 = vst [vmem:[#allocation48_spill] sm:$0xff] %v8912_v35  ;;  %v10665_v40 = vsub.s32 1, %v10660_v25 }
 0x26c   : > { %v8918_v28 = vrot.slane %v927_v20, %v10665_v40  ;;  %v10671_v40 = vsub.s32 3, %v10660_v25 }
 0x26d   : > { %5558 = vmatpush1.bf16.msra.mxu0 %v10658_v61  ;;  %5622 = vmatpush1.bf16.msra.mxu1 %v10659_v29 }
 0x26e   : > { %5560 = vmatprep.subr.bf16.mxu0 %v10663_v58  ;;  %5624 = vmatprep.subr.bf16.mxu1 %v10664_v17  ;;  %10666 = vst [vmem:[#allocation124_spill] sm:$0xff] %v8918_v28  ;;  %v8928_v8 = vrot.slane %v927_v20, %v10671_v40  ;;  %v10681_v40 = vld [vmem:[#allocation87_spill] sm:$0xff] }
 0x270   : > { %10672 = vst [vmem:[#allocation125_spill] sm:$0xff] %v8928_v8 }
 0x271   : > { %v1220_v13 = vpop.f32.mrb[16].mxu0  ;;  %v1291_v31 = vpop.f32.mrb[32].mxu1  ;;  %5562 = vmatpush1.bf16.msra.mxu0 %v10667_v16  ;;  %5626 = vmatpush1.bf16.msra.mxu1 %v10668_v19  ;;  %v10674_v16 = vld [vmem:[#allocation82_spill] sm:$0xff] }
 0x272   : > { %v1221_v29 = vadd.f32 %v1220_v13, %v8912_v35  ;;  %v1222_v61 = vpop.f32.mrb[17].mxu0  ;;  %v1293_v18 = vpop.f32.mrb[33].mxu1  ;;  %5564 = vmatprep.subr.bf16.mxu0 %v10669_v45  ;;  %5628 = vmatprep.subr.bf16.mxu1 %v10670_v6  ;;  %v10675_v13 = vld [vmem:[#allocation83_spill] sm:$0xff]  ;;  %v10676_v35 = vld [vmem:[#allocation84_spill] sm:$0xff]  ;;  %v10677_v45 = vld [vmem:[#allocation85_spill] sm:$0xff] }
 0x273   : > { %v1223_v17 = vadd.f32 %v1222_v61, %v8918_v28  ;;  %v1294_v6 = vadd.f32 %v1293_v18, %v8928_v8  ;;  %v10678_v61 = vld [vmem:[#allocation86_spill] sm:$0xff]  ;;  %v10685_v18 = vld [vmem:[#allocation91_spill] sm:$0xff]  ;;  %v10686_v8 = vld [vmem:[#allocation92_spill] sm:$0xff] }
 0x274   : > { %v5156_v58 = vmul.f32 -1.442695, %v1221_v29 }
 0x275   : > { %v5157_v12 = vmul.f32 -1.442695, %v1223_v17  ;;  %5566 = vmatpush1.bf16.msra.mxu0 %v10673_v10  ;;  %5630 = vmatpush1.bf16.msra.mxu1 %v10674_v16  ;;  %v10679_v17 = vsub.s32 2, %v10660_v25  ;;  %v10682_v10 = vld [vmem:[#allocation88_spill] sm:$0xff]  ;;  %v10683_v16 = vld [vmem:[#allocation89_spill] sm:$0xff] }
 0x276   : > { %7739 = vpow2.f32 %v5156_v58  ;;  %5568 = vmatprep.subr.bf16.mxu0 %v10675_v13  ;;  %5632 = vmatprep.subr.bf16.mxu1 %v10676_v35  ;;  %v5158_v58 = vmul.f32 -1.442695, %v1294_v6  ;;  %v10684_v13 = vld [vmem:[#allocation90_spill] sm:$0xff] }
 0x277   : > { %7741 = vpow2.f32 %v5157_v12  ;;  %v8939_v29 = vrot.slane %v927_v20, %v10679_v17  ;;  %v10687_v20 = vld [vmem:[#allocation93_spill] sm:$0xff]  ;;  %v10688_v17 = vld [vmem:[#allocation94_spill] sm:$0xff] }
 0x278   : > { %7743 = vpow2.f32 %v5158_v58  ;;  %v10695_v58 = vld [vmem:[#allocation101_spill] sm:$0xff] }
 0x279   : > { %5570 = vmatpush1.bf16.msra.mxu0 %v10677_v45  ;;  %5634 = vmatpush1.bf16.msra.mxu1 %v10678_v61  ;;  %10680 = vst [vmem:[#allocation126_spill] sm:$0xff] %v8939_v29  ;;  %v1292_v12 = vadd.f32 %v1291_v31, %v8939_v29  ;;  %v10691_v31 = vld [vmem:[#allocation97_spill] sm:$0xff]  ;;  %v10692_v29 = vld [vmem:[#allocation98_spill] sm:$0xff] }
 0x27a   : > { %5572 = vmatprep.subr.bf16.mxu0 %v10681_v40  ;;  %5636 = vmatprep.subr.bf16.mxu1 %v10682_v10  ;;  %v10689_v10 = vld [vmem:[#allocation95_spill] sm:$0xff] }
 0x27b   : > { %7745 = vtanh.f32 %v1292_v12  ;;  %v10697_v12 = vld [vmem:[#allocation103_spill] sm:$0xff] }
 0x27d   : > { %5574 = vmatpush1.bf16.msra.mxu0 %v10683_v16  ;;  %5638 = vmatpush1.bf16.msra.mxu1 %v10684_v13  ;;  %v10690_v16 = vld [vmem:[#allocation96_spill] sm:$0xff] }
 0x27e   : > { %5576 = vmatprep.subr.bf16.mxu0 %v10685_v18  ;;  %5640 = vmatprep.subr.bf16.mxu1 %v10686_v8  ;;  %v10693_v8 = vld [vmem:[#allocation99_spill] sm:$0xff] }
 0x27f   : > { %v10701_v18 = vld [vmem:[#allocation107_spill] sm:$0xff] }
 0x280   : > { %v7740_v61 = vpop.eup %7739 }
 0x281   : > { %v7742_v45 = vpop.eup %7741  ;;  %v1299_v25 = vadd.f32 1.0, %v7740_v61  ;;  %5578 = vmatpush1.bf16.msra.mxu0 %v10687_v20  ;;  %5642 = vmatpush1.bf16.msra.mxu1 %v10688_v17  ;;  %v10694_v61 = vld [vmem:[#allocation100_spill] sm:$0xff]  ;;  %v10696_v20 = vld [vmem:[#allocation102_spill] sm:$0xff] }
 0x282   : > { %v1305_v6 = vadd.f32 1.0, %v7742_v45  ;;  %5580 = vmatprep.subr.bf16.mxu0 %v10689_v10  ;;  %5644 = vmatprep.subr.bf16.mxu1 %v10690_v16  ;;  %v10698_v45 = vld [vmem:[#allocation104_spill] sm:$0xff]  ;;  %v7744_v10 = vpop.eup %7743 }
 0x283   : > { %7747 = vrcp.f32 %v1299_v25 }
 0x284   : > { %7749 = vrcp.f32 %v1305_v6  ;;  %v10699_v6 = vld [vmem:[#allocation105_spill] sm:$0xff] }
 0x285   : > { %5582 = vmatpush1.bf16.msra.mxu0 %v10691_v31  ;;  %5646 = vmatpush1.bf16.msra.mxu1 %v10692_v29  ;;  %v7746_v16 = vpop.eup %7745  ;;  %v10700_v31 = vld [vmem:[#allocation106_spill] sm:$0xff] }
 0x286   : > { %5584 = vmatprep.subr.bf16.mxu0 %v10693_v8  ;;  %5648 = vmatprep.subr.bf16.mxu1 %v10694_v61  ;;  %v1312_v8 = vadd.f32 1.0, %v7744_v10  ;;  %v10702_v61 = vld [vmem:[#allocation108_spill] sm:$0xff] }
 0x288   : > { %7751 = vrcp.f32 %v1312_v8 }
 0x289   : > { %5586 = vmatpush1.bf16.msra.mxu0 %v10695_v58  ;;  %5650 = vmatpush1.bf16.msra.mxu1 %v10696_v20 }
 0x28a   : > { %5588 = vmatprep.subr.bf16.mxu0 %v10697_v12  ;;  %5652 = vmatprep.subr.bf16.mxu1 %v10698_v45  ;;  %v10703_v12 = vld [vmem:[#allocation109_spill] sm:$0xff]  ;;  %v10704_v45 = vld [vmem:[#allocation110_spill] sm:$0xff] }
 0x28d   : > { %v7748_v25 = vpop.eup %7747  ;;  %5590 = vmatpush1.bf16.msra.mxu0 %v10699_v6  ;;  %5654 = vmatpush1.bf16.msra.mxu1 %v10700_v31 }
 0x28e   : > { %v7750_v29 = vpop.eup %7749  ;;  %v1316_v17 = vmul.f32 %v7748_v25, %v7746_v16  ;;  %5592 = vmatprep.subr.bf16.mxu0 %v10701_v18  ;;  %5656 = vmatprep.subr.bf16.mxu1 %v10702_v61 }
 0x28f   : > { %v1315_v58 = vmul.f32 0.0, %v7750_v29  ;;  %v10706_v29 = vld [vmem:[#allocation45_spill] sm:$0xff] }
 0x291   : > { %v8964_v20 = vadd.f32 %v1316_v17, %v1315_v58  ;;  %5594 = vmatpush1.bf16.msra.mxu0 %v10703_v12  ;;  %5658 = vmatpush1.bf16.msra.mxu1 %v10704_v45  ;;  %v10707_v17 = vld [vmem:[#allocation46_spill] sm:$0xff]  ;;  %v10708_v58 = vld [vmem:[#allocation47_spill] sm:$0xff] }
 0x292   : > { %5596 = vmatprep.subr.bf16.mxu0 %v8805_v62  ;;  %5660 = vmatprep.subr.bf16.mxu1 %v8807_v52  ;;  %v7752_v8 = vpop.eup %7751 }
 0x293   : > { %7753 = vtanh.f32 %v8964_v20 }
 0x295   : > { %5598 = vmatpush1.bf16.msra.mxu0 %v8811_v57  ;;  %5662 = vmatpush1.bf16.msra.mxu1 %v8813_v11 }
 0x296   : > { %5600 = vmatprep.subr.bf16.mxu0 %v8817_v23  ;;  %5664 = vmatprep.subr.bf16.mxu1 %v8819_v44 }
 0x299   : > { %5602 = vmatpush1.bf16.msra.mxu0 %v8823_v47  ;;  %5666 = vmatpush1.bf16.msra.mxu1 %v8825_v49 }
 0x29a   : > { %5604 = vmatprep.subr.bf16.mxu0 %v8829_v60  ;;  %5668 = vmatprep.subr.bf16.mxu1 %v8831_v51 }
 0x29d   : > { %v7754_v10 = vpop.eup %7753  ;;  %5606 = vmatpush1.bf16.msra.mxu0 %v8835_v0  ;;  %5670 = vmatpush1.bf16.msra.mxu1 %v8837_v7 }
 0x29e   : > { %v1319_v16 = vmul.f32 %v7754_v10, %v7752_v8  ;;  %5672 = vmatprep.subr.bf16.mxu0 %v8468_v24  ;;  %5704 = vmatprep.subr.bf16.mxu1 %v8471_v26  ;;  %v10709_v10 = vld [vmem:[#allocation49_spill] sm:$0xff] }
 0x2a0   : > { %1561 = vmatprep.mubr.f32.mxu0 %v1319_v16  ;;  %1632 = vmatprep.mubr.f32.mxu1 %v1319_v16 }
 0x2a1   : > { %1562 = vmatmul.mubr.f32.vlgmr.msra.gmra.mrb[18].mxu0 %v8889_v34  ;;  %1633 = vmatmul.mubr.f32.vlgmr.msra.gmra.mrb[34].mxu1 %v8889_v34  ;;  %v10705_v34 = vld [vmem:[#allocation44_spill] sm:$0xff] }
 0x2a2   : > { %5674 = vmatpush1.bf16.msra.mxu0 %v8474_v30  ;;  %5706 = vmatpush1.bf16.msra.mxu1 %v8478_v33 }
 0x2a3   : > { %5676 = vmatprep.subr.bf16.mxu0 %v8484_v37  ;;  %5708 = vmatprep.subr.bf16.mxu1 %v8486_v41 }
 0x2a4   : > { %1734 = vmatprep.mubr.f32.mxu0 %v10591_v1  ;;  %1805 = vmatprep.mubr.f32.mxu1 %v10591_v1 }
 0x2a6   : > { %5678 = vmatpush1.bf16.msra.mxu0 %v8488_v42  ;;  %5710 = vmatpush1.bf16.msra.mxu1 %v8493_v46 }
 0x2a7   : > { %5680 = vmatprep.subr.bf16.mxu0 %v8500_v50  ;;  %5712 = vmatprep.subr.bf16.mxu1 %v8503_v54 }
 0x2aa   : > { %5682 = vmatpush1.bf16.msra.mxu0 %v8505_v55  ;;  %5714 = vmatpush1.bf16.msra.mxu1 %v8510_v59 }
 0x2ab   : > { %5684 = vmatprep.subr.bf16.mxu0 %v8517_v63  ;;  %5716 = vmatprep.subr.bf16.mxu1 %v8520_v4 }
 0x2ae   : > { %5686 = vmatpush1.bf16.msra.mxu0 %v8522_v5  ;;  %5718 = vmatpush1.bf16.msra.mxu1 %v8527_v9 }
 0x2af   : > { %5688 = vmatprep.subr.bf16.mxu0 %v8534_v14  ;;  %5720 = vmatprep.subr.bf16.mxu1 %v8537_v21 }
 0x2b2   : > { %5690 = vmatpush1.bf16.msra.mxu0 %v8539_v22  ;;  %5722 = vmatpush1.bf16.msra.mxu1 %v8543_v27 }
 0x2b3   : > { %5692 = vmatprep.subr.bf16.mxu0 %v8551_v32  ;;  %5724 = vmatprep.subr.bf16.mxu1 %v8554_v38 }
 0x2b6   : > { %5694 = vmatpush1.bf16.msra.mxu0 %v8556_v39  ;;  %5726 = vmatpush1.bf16.msra.mxu1 %v8559_v43 }
 0x2b7   : > { %5696 = vmatprep.subr.bf16.mxu0 %v8564_v48  ;;  %5728 = vmatprep.subr.bf16.mxu1 %v8568_v53 }
 0x2ba   : > { %5698 = vmatpush1.bf16.msra.mxu0 %v8570_v56  ;;  %5730 = vmatpush1.bf16.msra.mxu1 %v8574_v15 }
 0x2bb   : > { %5700 = vmatprep.subr.bf16.mxu0 %v8577_v2  ;;  %5732 = vmatprep.subr.bf16.mxu1 %v8579_v3  ;;  %v10710_v3 = vld [vmem:[#allocation60_spill] sm:$0xff] }
 0x2be   : > { %5702 = vmatpush1.bf16.msra.mxu0 %v10705_v34  ;;  %5734 = vmatpush1.bf16.msra.mxu1 %v10706_v29  ;;  %v10711_v29 = vld [vmem:[#allocation59_spill] sm:$0xff] }
 0x2bf   : > { %5736 = vmatprep.subr.bf16.mxu0 %v10707_v17  ;;  %5800 = vmatprep.subr.bf16.mxu1 %v10708_v58 }
 0x333   : > { %v1393_v25 = vpop.f32.mrb[4].mxu0  ;;  %v1464_v8 = vpop.f32.mrb[12].mxu1 }
 0x334   : > { %v7555_v16 = vadd.f32 %v1393_v25, %v10709_v10  ;;  %v1395_v53 = vpop.f32.mrb[5].mxu0  ;;  %v1466_v56 = vpop.f32.mrb[13].mxu1  ;;  %v7585_v39 = vadd.f32 %v1464_v8, %v10711_v29  ;;  %v10718_v8 = vld [vmem:[#allocation66_spill] sm:$0xff] }
 0x335   : > { %v7556_v15 = vadd.f32 %v1395_v53, %v8616_v36  ;;  %v7586_v34 = vadd.f32 %v1466_v56, %v10710_v3 }
 0x336   : > { %v5159_v48 = vmul.f32 -1.442695, %v7555_v16 }
 0x337   : > { %v5160_v2 = vmul.f32 -1.442695, %v7556_v15  ;;  %v5161_v43 = vmul.f32 -1.442695, %v7586_v34 }
 0x338   : > { %7755 = vpow2.f32 %v5159_v48 }
 0x339   : > { %7757 = vpow2.f32 %v5160_v2  ;;  %v10712_v2 = vld [vmem:[#allocation123_spill] sm:$0xff] }
 0x33a   : > { %7759 = vpow2.f32 %v5161_v43 }
 0x33b   : > { %7761 = vtanh.f32 %v7585_v39  ;;  %v10715_v39 = vld [vmem:[#allocation63_spill] sm:$0xff] }
 0x342   : > { %v7756_v17 = vpop.eup %7755 }
 0x343   : > { %v7758_v38 = vpop.eup %7757  ;;  %v1476_v58 = vadd.f32 1.0, %v7756_v17 }
 0x344   : > { %v1482_v32 = vadd.f32 1.0, %v7758_v38  ;;  %v7760_v25 = vpop.eup %7759  ;;  %v10714_v38 = vld [vmem:[#allocation62_spill] sm:$0xff] }
 0x345   : > { %7763 = vrcp.f32 %v1476_v58  ;;  %v7762_v10 = vpop.eup %7761  ;;  %v1489_v48 = vadd.f32 1.0, %v7760_v25  ;;  %v10716_v58 = vld [vmem:[#allocation64_spill] sm:$0xff] }
 0x346   : > { %7765 = vrcp.f32 %v1482_v32  ;;  %v10713_v32 = vld [vmem:[#allocation61_spill] sm:$0xff]  ;;  %v10720_v25 = vld [vmem:[#allocation68_spill] sm:$0xff] }
 0x347   : > { %7767 = vrcp.f32 %v1489_v48  ;;  %v10724_v48 = vld [vmem:[#allocation72_spill] sm:$0xff] }
 0x34f   : > { %v7764_v53 = vpop.eup %7763 }
 0x350   : > { %v7766_v16 = vpop.eup %7765  ;;  %v1493_v15 = vmul.f32 %v7764_v53, %v7762_v10  ;;  %v10719_v10 = vld [vmem:[#allocation67_spill] sm:$0xff]  ;;  %v10721_v53 = vld [vmem:[#allocation69_spill] sm:$0xff] }
 0x351   : > { %v1492_v36 = vmul.f32 %v7766_v16, %v10712_v2  ;;  %v7768_v34 = vpop.eup %7767  ;;  %v10722_v16 = vld [vmem:[#allocation70_spill] sm:$0xff]  ;;  %v10725_v2 = vld [vmem:[#allocation73_spill] sm:$0xff] }
 0x353   : > { %v9024_v56 = vadd.f32 %v1493_v15, %v1492_v36  ;;  %v10717_v36 = vld [vmem:[#allocation65_spill] sm:$0xff]  ;;  %v10723_v15 = vld [vmem:[#allocation71_spill] sm:$0xff] }
 0x355   : > { %7769 = vtanh.f32 %v9024_v56 }
 0x35f   : > { %v7770_v17 = vpop.eup %7769 }
 0x360   : > { %v9027_v43 = vmul.f32 %v7770_v17, %v7768_v34  ;;  %v10726_v34 = vld [vmem:[#allocation74_spill] sm:$0xff]  ;;  %v10727_v17 = vld [vmem:[#allocation75_spill] sm:$0xff] }
 0x362   : > { %1735 = vmatmul.mubr.f32.vlgmr.msra.gmra.mrb[6].mxu0 %v9027_v43  ;;  %1806 = vmatmul.mubr.f32.vlgmr.msra.gmra.mrb[14].mxu1 %v9027_v43 }
 0x363   : > { %5738 = vmatpush1.bf16.msra.mxu0 %v10713_v32  ;;  %5802 = vmatpush1.bf16.msra.mxu1 %v10714_v38  ;;  %v10735_v38 = vld [vmem:[#allocation83_spill] sm:$0xff] }
 0x364   : > { %5740 = vmatprep.subr.bf16.mxu0 %v10715_v39  ;;  %5804 = vmatprep.subr.bf16.mxu1 %v10716_v58 }
 0x367   : > { %5742 = vmatpush1.bf16.msra.mxu0 %v10717_v36  ;;  %5806 = vmatpush1.bf16.msra.mxu1 %v10718_v8  ;;  %v10728_v36 = vld [vmem:[#allocation76_spill] sm:$0xff]  ;;  %v10729_v8 = vld [vmem:[#allocation77_spill] sm:$0xff] }
 0x368   : > { %5744 = vmatprep.subr.bf16.mxu0 %v10719_v10  ;;  %5808 = vmatprep.subr.bf16.mxu1 %v10720_v25  ;;  %v10730_v10 = vld [vmem:[#allocation79_spill] sm:$0xff] }
 0x36b   : > { %5746 = vmatpush1.bf16.msra.mxu0 %v10721_v53  ;;  %5810 = vmatpush1.bf16.msra.mxu1 %v10722_v16  ;;  %v10731_v16 = vld [vmem:[#allocation80_spill] sm:$0xff] }
 0x36c   : > { %5748 = vmatprep.subr.bf16.mxu0 %v10723_v15  ;;  %5812 = vmatprep.subr.bf16.mxu1 %v10724_v48  ;;  %v10732_v15 = vld [vmem:[#allocation48_spill] sm:$0xff] }
 0x36f   : > { %5750 = vmatpush1.bf16.msra.mxu0 %v10725_v2  ;;  %5814 = vmatpush1.bf16.msra.mxu1 %v10726_v34 }
 0x370   : > { %5752 = vmatprep.subr.bf16.mxu0 %v10727_v17  ;;  %5816 = vmatprep.subr.bf16.mxu1 %v10728_v36  ;;  %v10733_v17 = vld [vmem:[#allocation81_spill] sm:$0xff]  ;;  %v10734_v36 = vld [vmem:[#allocation82_spill] sm:$0xff] }
 0x373   : > { %5754 = vmatpush1.bf16.msra.mxu0 %v10729_v8  ;;  %5818 = vmatpush1.bf16.msra.mxu1 %v10668_v19 }
 0x374   : > { %v1563_v25 = vpop.f32.mrb[18].mxu0  ;;  %v1634_v53 = vpop.f32.mrb[34].mxu1  ;;  %5756 = vmatprep.subr.bf16.mxu0 %v10730_v10  ;;  %5820 = vmatprep.subr.bf16.mxu1 %v10731_v16  ;;  %v10736_v10 = vld [vmem:[#allocation85_spill] sm:$0xff]  ;;  %v10737_v16 = vld [vmem:[#allocation86_spill] sm:$0xff] }
 0x375   : > { %v1564_v48 = vadd.f32 %v1563_v25, %v10732_v15  ;;  %v1565_v58 = vpop.f32.mrb[19].mxu0  ;;  %v1636_v2 = vpop.f32.mrb[35].mxu1  ;;  %v10738_v25 = vld [vmem:[#allocation125_spill] sm:$0xff] }
 0x376   : > { %v1566_v34 = vadd.f32 %v1565_v58, %v8918_v28  ;;  %v1637_v15 = vadd.f32 %v1636_v2, %v10738_v25  ;;  %v10739_v58 = vld [vmem:[#allocation88_spill] sm:$0xff] }
 0x377   : > { %v5162_v39 = vmul.f32 -1.442695, %v1564_v48  ;;  %5758 = vmatpush1.bf16.msra.mxu0 %v10733_v17  ;;  %5822 = vmatpush1.bf16.msra.mxu1 %v10734_v36  ;;  %v10740_v48 = vld [vmem:[#allocation89_spill] sm:$0xff] }
 0x378   : > { %v5163_v8 = vmul.f32 -1.442695, %v1566_v34  ;;  %5760 = vmatprep.subr.bf16.mxu0 %v10735_v38  ;;  %5824 = vmatprep.subr.bf16.mxu1 %v10676_v35  ;;  %v5164_v34 = vmul.f32 -1.442695, %v1637_v15  ;;  %v10741_v38 = vld [vmem:[#allocation91_spill] sm:$0xff]  ;;  %v10742_v35 = vld [vmem:[#allocation92_spill] sm:$0xff] }
 0x379   : > { %7771 = vpow2.f32 %v5162_v39  ;;  %v10743_v39 = vld [vmem:[#allocation126_spill] sm:$0xff]  ;;  %v10744_v36 = vld [vmem:[#allocation93_spill] sm:$0xff] }
 0x37a   : > { %7773 = vpow2.f32 %v5163_v8  ;;  %v1635_v8 = vadd.f32 %v1634_v53, %v10743_v39  ;;  %v10750_v53 = vld [vmem:[#allocation99_spill] sm:$0xff] }
 0x37b   : > { %5762 = vmatpush1.bf16.msra.mxu0 %v10736_v10  ;;  %5826 = vmatpush1.bf16.msra.mxu1 %v10737_v16  ;;  %v10745_v16 = vld [vmem:[#allocation94_spill] sm:$0xff]  ;;  %7775 = vpow2.f32 %v5164_v34  ;;  %v10754_v34 = vld [vmem:[#allocation103_spill] sm:$0xff] }
 0x37c   : > { %5764 = vmatprep.subr.bf16.mxu0 %v10681_v40  ;;  %5828 = vmatprep.subr.bf16.mxu1 %v10739_v58  ;;  %v10746_v58 = vld [vmem:[#allocation95_spill] sm:$0xff]  ;;  %7777 = vtanh.f32 %v1635_v8 }
 0x37f   : > { %5766 = vmatpush1.bf16.msra.mxu0 %v10740_v48  ;;  %5830 = vmatpush1.bf16.msra.mxu1 %v10684_v13  ;;  %v10747_v48 = vld [vmem:[#allocation96_spill] sm:$0xff] }
 0x380   : > { %5768 = vmatprep.subr.bf16.mxu0 %v10741_v38  ;;  %5832 = vmatprep.subr.bf16.mxu1 %v10742_v35  ;;  %v10748_v38 = vld [vmem:[#allocation97_spill] sm:$0xff]  ;;  %v10749_v35 = vld [vmem:[#allocation98_spill] sm:$0xff] }
 0x383   : > { %v7772_v10 = vpop.eup %7771  ;;  %5770 = vmatpush1.bf16.msra.mxu0 %v10744_v36  ;;  %5834 = vmatpush1.bf16.msra.mxu1 %v10745_v16  ;;  %v10751_v36 = vld [vmem:[#allocation100_spill] sm:$0xff]  ;;  %v10752_v16 = vld [vmem:[#allocation101_spill] sm:$0xff] }
 0x384   : > { %v7774_v2 = vpop.eup %7773  ;;  %v1642_v25 = vadd.f32 1.0, %v7772_v10  ;;  %5772 = vmatprep.subr.bf16.mxu0 %v10746_v58  ;;  %5836 = vmatprep.subr.bf16.mxu1 %v10747_v48  ;;  %v10753_v10 = vld [vmem:[#allocation102_spill] sm:$0xff]  ;;  %v10755_v58 = vld [vmem:[#allocation104_spill] sm:$0xff] }
 0x385   : > { %v1648_v15 = vadd.f32 1.0, %v7774_v2  ;;  %v7776_v8 = vpop.eup %7775 }
 0x386   : > { %7779 = vrcp.f32 %v1642_v25  ;;  %v7778_v2 = vpop.eup %7777 }
 0x387   : > { %7781 = vrcp.f32 %v1648_v15  ;;  %5774 = vmatpush1.bf16.msra.mxu0 %v10748_v38  ;;  %5838 = vmatpush1.bf16.msra.mxu1 %v10749_v35 }
 0x388   : > { %5776 = vmatprep.subr.bf16.mxu0 %v10750_v53  ;;  %5840 = vmatprep.subr.bf16.mxu1 %v10751_v36 }
 0x38b   : > { %5778 = vmatpush1.bf16.msra.mxu0 %v10752_v16  ;;  %5842 = vmatpush1.bf16.msra.mxu1 %v10753_v10  ;;  %v1655_v16 = vadd.f32 1.0, %v7776_v8  ;;  %v10758_v8 = vld [vmem:[#allocation36_spill] sm:$0xff] }
 0x38c   : > { %5780 = vmatprep.subr.bf16.mxu0 %v10754_v34  ;;  %5844 = vmatprep.subr.bf16.mxu1 %v10755_v58 }
 0x38d   : > { %7783 = vrcp.f32 %v1655_v16 }
 0x38f   : > { %5782 = vmatpush1.bf16.msra.mxu0 %v10699_v6  ;;  %5846 = vmatpush1.bf16.msra.mxu1 %v10700_v31 }
 0x390   : > { %v7780_v25 = vpop.eup %7779  ;;  %5784 = vmatprep.subr.bf16.mxu0 %v10701_v18  ;;  %5848 = vmatprep.subr.bf16.mxu1 %v10702_v61 }
 0x391   : > { %v7782_v15 = vpop.eup %7781  ;;  %v1659_v36 = vmul.f32 %v7780_v25, %v7778_v2  ;;  %v10759_v2 = vld [vmem:[#allocation37_spill] sm:$0xff]  ;;  %v10760_v25 = vld [vmem:[#allocation38_spill] sm:$0xff] }
 0x392   : > { %v1658_v10 = vmul.f32 %v7782_v15, %v8964_v20  ;;  %v10761_v15 = vld [vmem:[#allocation39_spill] sm:$0xff] }
 0x393   : > { %5786 = vmatpush1.bf16.msra.mxu0 %v10703_v12  ;;  %5850 = vmatpush1.bf16.msra.mxu1 %v10704_v45 }
 0x394   : > { %5788 = vmatprep.subr.bf16.mxu0 %v8805_v62  ;;  %5852 = vmatprep.subr.bf16.mxu1 %v8807_v52  ;;  %v9088_v6 = vadd.f32 %v1659_v36, %v1658_v10  ;;  %v10757_v10 = vld [vmem:[#allocation35_spill] sm:$0xff] }
 0x396   : > { %7785 = vtanh.f32 %v9088_v6 }
 0x397   : > { %5790 = vmatpush1.bf16.msra.mxu0 %v8811_v57  ;;  %5854 = vmatpush1.bf16.msra.mxu1 %v8813_v11  ;;  %v7784_v20 = vpop.eup %7783 }
 0x398   : > { %5792 = vmatprep.subr.bf16.mxu0 %v8817_v23  ;;  %5856 = vmatprep.subr.bf16.mxu1 %v8819_v44 }
 0x39b   : > { %5794 = vmatpush1.bf16.msra.mxu0 %v8823_v47  ;;  %5858 = vmatpush1.bf16.msra.mxu1 %v8825_v49 }
 0x39c   : > { %5796 = vmatprep.subr.bf16.mxu0 %v8829_v60  ;;  %5860 = vmatprep.subr.bf16.mxu1 %v8831_v51 }
 0x39f   : > { %5798 = vmatpush1.bf16.msra.mxu0 %v8835_v0  ;;  %5862 = vmatpush1.bf16.msra.mxu1 %v8837_v7 }
 0x3a0   : > { %v7786_v36 = vpop.eup %7785  ;;  %5864 = vmatprep.subr.bf16.mxu0 %v8468_v24  ;;  %5896 = vmatprep.subr.bf16.mxu1 %v8471_v26 }
 0x3a1   : > { %v1662_v16 = vmul.f32 %v7786_v36, %v7784_v20  ;;  %v10762_v20 = vld [vmem:[#allocation40_spill] sm:$0xff]  ;;  %v10763_v36 = vld [vmem:[#allocation41_spill] sm:$0xff] }
 0x3a3   : > { %1904 = vmatprep.mubr.f32.mxu0 %v1662_v16  ;;  %1975 = vmatprep.mubr.f32.mxu1 %v1662_v16  ;;  %v10764_v16 = vld [vmem:[#allocation42_spill] sm:$0xff] }
 0x3a4   : > { %1905 = vmatmul.mubr.f32.vlgmr.msra.gmra.mrb[20].mxu0 %v9027_v43  ;;  %1976 = vmatmul.mubr.f32.vlgmr.msra.gmra.mrb[36].mxu1 %v9027_v43  ;;  %v10756_v43 = vld [vmem:[#allocation34_spill] sm:$0xff] }
 0x3a5   : > { %5866 = vmatpush1.bf16.msra.mxu0 %v8474_v30  ;;  %5898 = vmatpush1.bf16.msra.mxu1 %v8478_v33 }
 0x3a6   : > { %5868 = vmatprep.subr.bf16.mxu0 %v8484_v37  ;;  %5900 = vmatprep.subr.bf16.mxu1 %v8486_v41 }
 0x3a7   : > { %2077 = vmatprep.mubr.f32.mxu0 %v10591_v1  ;;  %2148 = vmatprep.mubr.f32.mxu1 %v10591_v1 }
 0x3a9   : > { %5870 = vmatpush1.bf16.msra.mxu0 %v8488_v42  ;;  %5902 = vmatpush1.bf16.msra.mxu1 %v8493_v46 }
 0x3aa   : > { %5872 = vmatprep.subr.bf16.mxu0 %v8500_v50  ;;  %5904 = vmatprep.subr.bf16.mxu1 %v8503_v54 }
 0x3ad   : > { %5874 = vmatpush1.bf16.msra.mxu0 %v8505_v55  ;;  %5906 = vmatpush1.bf16.msra.mxu1 %v8510_v59 }
 0x3ae   : > { %5876 = vmatprep.subr.bf16.mxu0 %v8517_v63  ;;  %5908 = vmatprep.subr.bf16.mxu1 %v8520_v4 }
 0x3b1   : > { %5878 = vmatpush1.bf16.msra.mxu0 %v8522_v5  ;;  %5910 = vmatpush1.bf16.msra.mxu1 %v8527_v9  ;;  %v10771_v9 = vld [vmem:[#allocation50_spill] sm:$0xff] }
 0x3b2   : > { %5880 = vmatprep.subr.bf16.mxu0 %v8534_v14  ;;  %5912 = vmatprep.subr.bf16.mxu1 %v8537_v21  ;;  %v10770_v21 = vld [vmem:[#allocation49_spill] sm:$0xff] }
 0x3b5   : > { %5882 = vmatpush1.bf16.msra.mxu0 %v8539_v22  ;;  %5914 = vmatpush1.bf16.msra.mxu1 %v8543_v27  ;;  %v10765_v22 = vld [vmem:[#allocation43_spill] sm:$0xff]  ;;  %v10766_v27 = vld [vmem:[#allocation44_spill] sm:$0xff] }
 0x3b6   : > { %5884 = vmatprep.subr.bf16.mxu0 %v10756_v43  ;;  %5916 = vmatprep.subr.bf16.mxu1 %v10757_v10  ;;  %v10767_v43 = vld [vmem:[#allocation45_spill] sm:$0xff]  ;;  %v10768_v10 = vld [vmem:[#allocation46_spill] sm:$0xff] }
 0x3b9   : > { %5886 = vmatpush1.bf16.msra.mxu0 %v10758_v8  ;;  %5918 = vmatpush1.bf16.msra.mxu1 %v10759_v2  ;;  %v10769_v8 = vld [vmem:[#allocation47_spill] sm:$0xff] }
 0x3ba   : > { %5888 = vmatprep.subr.bf16.mxu0 %v10760_v25  ;;  %5920 = vmatprep.subr.bf16.mxu1 %v10761_v15 }
 0x3bd   : > { %5890 = vmatpush1.bf16.msra.mxu0 %v10762_v20  ;;  %5922 = vmatpush1.bf16.msra.mxu1 %v10763_v36 }
 0x3be   : > { %5892 = vmatprep.subr.bf16.mxu0 %v10764_v16  ;;  %5924 = vmatprep.subr.bf16.mxu1 %v10765_v22 }
 0x3c1   : > { %5894 = vmatpush1.bf16.msra.mxu0 %v10766_v27  ;;  %5926 = vmatpush1.bf16.msra.mxu1 %v10767_v43 }
 0x3c2   : > { %5928 = vmatprep.subr.bf16.mxu0 %v10768_v10  ;;  %5992 = vmatprep.subr.bf16.mxu1 %v10769_v8 }
 0x435   : > { %v1736_v2 = vpop.f32.mrb[6].mxu0  ;;  %v1807_v25 = vpop.f32.mrb[14].mxu1 }
 0x436   : > { %v7557_v15 = vadd.f32 %v1736_v2, %v10770_v21  ;;  %v1738_v14 = vpop.f32.mrb[7].mxu0  ;;  %v1809_v20 = vpop.f32.mrb[15].mxu1  ;;  %v7587_v43 = vadd.f32 %v1807_v25, %v10711_v29  ;;  %v10778_v25 = vld [vmem:[#allocation68_spill] sm:$0xff] }
 0x437   : > { %v7558_v36 = vadd.f32 %v1738_v14, %v10771_v9  ;;  %v7588_v27 = vadd.f32 %v1809_v20, %v10710_v3 }
 0x438   : > { %v5165_v5 = vmul.f32 -1.442695, %v7557_v15 }
 0x439   : > { %v5166_v16 = vmul.f32 -1.442695, %v7558_v36  ;;  %v5167_v22 = vmul.f32 -1.442695, %v7588_v27 }
 0x43a   : > { %7787 = vpow2.f32 %v5165_v5 }
 0x43b   : > { %7789 = vpow2.f32 %v5166_v16 }
 0x43c   : > { %7791 = vpow2.f32 %v5167_v22 }
 0x43d   : > { %7793 = vtanh.f32 %v7587_v43  ;;  %v10776_v43 = vld [vmem:[#allocation66_spill] sm:$0xff] }
 0x444   : > { %v7788_v10 = vpop.eup %7787 }
 0x445   : > { %v7790_v4 = vpop.eup %7789  ;;  %v1819_v8 = vadd.f32 1.0, %v7788_v10 }
 0x446   : > { %v1825_v63 = vadd.f32 1.0, %v7790_v4  ;;  %v7792_v2 = vpop.eup %7791  ;;  %v10773_v4 = vld [vmem:[#allocation63_spill] sm:$0xff] }
 0x447   : > { %7795 = vrcp.f32 %v1819_v8  ;;  %v7794_v21 = vpop.eup %7793  ;;  %v1832_v5 = vadd.f32 1.0, %v7792_v2  ;;  %v10777_v8 = vld [vmem:[#allocation67_spill] sm:$0xff]  ;;  %v10779_v2 = vld [vmem:[#allocation69_spill] sm:$0xff] }
 0x448   : > { %7797 = vrcp.f32 %v1825_v63  ;;  %v10772_v63 = vld [vmem:[#allocation62_spill] sm:$0xff] }
 0x449   : > { %7799 = vrcp.f32 %v1832_v5  ;;  %v10783_v5 = vld [vmem:[#allocation73_spill] sm:$0xff] }
 0x451   : > { %v7796_v14 = vpop.eup %7795 }
 0x452   : > { %v7798_v15 = vpop.eup %7797  ;;  %v1836_v36 = vmul.f32 %v7796_v14, %v7794_v21  ;;  %v10774_v21 = vld [vmem:[#allocation64_spill] sm:$0xff]  ;;  %v10780_v14 = vld [vmem:[#allocation70_spill] sm:$0xff] }
 0x453   : > { %v1835_v16 = vmul.f32 %v7798_v15, %v9024_v56  ;;  %v7800_v27 = vpop.eup %7799  ;;  %v10775_v56 = vld [vmem:[#allocation65_spill] sm:$0xff]  ;;  %v10781_v15 = vld [vmem:[#allocation71_spill] sm:$0xff] }
 0x455   : > { %v9144_v20 = vadd.f32 %v1836_v36, %v1835_v16  ;;  %v10782_v36 = vld [vmem:[#allocation72_spill] sm:$0xff]  ;;  %v10784_v16 = vld [vmem:[#allocation74_spill] sm:$0xff] }
 0x457   : > { %7801 = vtanh.f32 %v9144_v20 }
 0x461   : > { %v7802_v10 = vpop.eup %7801 }
 0x462   : > { %v9147_v22 = vmul.f32 %v7802_v10, %v7800_v27  ;;  %v10785_v27 = vld [vmem:[#allocation75_spill] sm:$0xff]  ;;  %v10786_v10 = vld [vmem:[#allocation76_spill] sm:$0xff] }
 0x464   : > { %2078 = vmatmul.mubr.f32.vlgmr.msra.gmra.mrb[8].mxu0 %v9147_v22  ;;  %2149 = vmatmul.mubr.f32.vlgmr.msra.gmra.mrb[16].mxu1 %v9147_v22 }
 0x465   : > { %5930 = vmatpush1.bf16.msra.mxu0 %v10713_v32  ;;  %5994 = vmatpush1.bf16.msra.mxu1 %v10772_v63 }
 0x466   : > { %5932 = vmatprep.subr.bf16.mxu0 %v10773_v4  ;;  %5996 = vmatprep.subr.bf16.mxu1 %v10774_v21  ;;  %v10795_v21 = vld [vmem:[#allocation86_spill] sm:$0xff] }
 0x469   : > { %5934 = vmatpush1.bf16.msra.mxu0 %v10775_v56  ;;  %5998 = vmatpush1.bf16.msra.mxu1 %v10776_v43  ;;  %v10787_v43 = vld [vmem:[#allocation77_spill] sm:$0xff] }
 0x46a   : > { %5936 = vmatprep.subr.bf16.mxu0 %v10777_v8  ;;  %6000 = vmatprep.subr.bf16.mxu1 %v10778_v25  ;;  %v10788_v25 = vld [vmem:[#allocation79_spill] sm:$0xff]  ;;  %v10790_v8 = vld [vmem:[#allocation48_spill] sm:$0xff] }
 0x46d   : > { %5938 = vmatpush1.bf16.msra.mxu0 %v10779_v2  ;;  %6002 = vmatpush1.bf16.msra.mxu1 %v10780_v14  ;;  %v10789_v2 = vld [vmem:[#allocation80_spill] sm:$0xff] }
 0x46e   : > { %5940 = vmatprep.subr.bf16.mxu0 %v10781_v15  ;;  %6004 = vmatprep.subr.bf16.mxu1 %v10782_v36 }
 0x471   : > { %5942 = vmatpush1.bf16.msra.mxu0 %v10783_v5  ;;  %6006 = vmatpush1.bf16.msra.mxu1 %v10784_v16 }
 0x472   : > { %5944 = vmatprep.subr.bf16.mxu0 %v10785_v27  ;;  %6008 = vmatprep.subr.bf16.mxu1 %v10786_v10  ;;  %v10791_v27 = vld [vmem:[#allocation82_spill] sm:$0xff] }
 0x475   : > { %5946 = vmatpush1.bf16.msra.mxu0 %v10787_v43  ;;  %6010 = vmatpush1.bf16.msra.mxu1 %v10668_v19  ;;  %v10792_v43 = vld [vmem:[#allocation83_spill] sm:$0xff]  ;;  %v10793_v19 = vld [vmem:[#allocation84_spill] sm:$0xff] }
 0x476   : > { %5948 = vmatprep.subr.bf16.mxu0 %v10788_v25  ;;  %6012 = vmatprep.subr.bf16.mxu1 %v10789_v2  ;;  %v10794_v2 = vld [vmem:[#allocation85_spill] sm:$0xff] }
 0x477   : > { %v1906_v14 = vpop.f32.mrb[20].mxu0  ;;  %v1977_v15 = vpop.f32.mrb[36].mxu1 }
 0x478   : > { %v1907_v36 = vadd.f32 %v1906_v14, %v10790_v8  ;;  %v1908_v56 = vpop.f32.mrb[21].mxu0  ;;  %v1979_v5 = vpop.f32.mrb[37].mxu1  ;;  %v10796_v14 = vld [vmem:[#allocation88_spill] sm:$0xff] }
 0x479   : > { %v1909_v16 = vadd.f32 %v1908_v56, %v8918_v28  ;;  %5950 = vmatpush1.bf16.msra.mxu0 %v10733_v17  ;;  %6014 = vmatpush1.bf16.msra.mxu1 %v10791_v27  ;;  %v10797_v56 = vld [vmem:[#allocation125_spill] sm:$0xff] }
 0x47a   : > { %v5168_v10 = vmul.f32 -1.442695, %v1907_v36  ;;  %5952 = vmatprep.subr.bf16.mxu0 %v10792_v43  ;;  %6016 = vmatprep.subr.bf16.mxu1 %v10793_v19  ;;  %v1980_v28 = vadd.f32 %v1979_v5, %v10797_v56  ;;  %v10798_v17 = vld [vmem:[#allocation89_spill] sm:$0xff]  ;;  %v10799_v36 = vld [vmem:[#allocation91_spill] sm:$0xff]  ;;  %v10800_v19 = vld [vmem:[#allocation92_spill] sm:$0xff] }
 0x47b   : > { %v5169_v25 = vmul.f32 -1.442695, %v1909_v16 }
 0x47c   : > { %7803 = vpow2.f32 %v5168_v10  ;;  %v5170_v16 = vmul.f32 -1.442695, %v1980_v28  ;;  %v10801_v10 = vld [vmem:[#allocation93_spill] sm:$0xff]  ;;  %v10804_v28 = vld [vmem:[#allocation100_spill] sm:$0xff] }
 0x47d   : > { %7805 = vpow2.f32 %v5169_v25  ;;  %5954 = vmatpush1.bf16.msra.mxu0 %v10794_v2  ;;  %6018 = vmatpush1.bf16.msra.mxu1 %v10795_v21  ;;  %v1978_v25 = vadd.f32 %v1977_v15, %v10743_v39  ;;  %v10802_v21 = vld [vmem:[#allocation94_spill] sm:$0xff]  ;;  %v10803_v2 = vld [vmem:[#allocation95_spill] sm:$0xff]  ;;  %v10805_v15 = vld [vmem:[#allocation101_spill] sm:$0xff] }
 0x47e   : > { %5956 = vmatprep.subr.bf16.mxu0 %v10681_v40  ;;  %6020 = vmatprep.subr.bf16.mxu1 %v10796_v14  ;;  %7807 = vpow2.f32 %v5170_v16  ;;  %v10807_v16 = vld [vmem:[#allocation105_spill] sm:$0xff] }
 0x47f   : > { %7809 = vtanh.f32 %v1978_v25 }
 0x481   : > { %5958 = vmatpush1.bf16.msra.mxu0 %v10798_v17  ;;  %6022 = vmatpush1.bf16.msra.mxu1 %v10684_v13 }
 0x482   : > { %5960 = vmatprep.subr.bf16.mxu0 %v10799_v36  ;;  %6024 = vmatprep.subr.bf16.mxu1 %v10800_v19 }
 0x485   : > { %5962 = vmatpush1.bf16.msra.mxu0 %v10801_v10  ;;  %6026 = vmatpush1.bf16.msra.mxu1 %v10802_v21 }
 0x486   : > { %v7804_v40 = vpop.eup %7803  ;;  %5964 = vmatprep.subr.bf16.mxu0 %v10803_v2  ;;  %6028 = vmatprep.subr.bf16.mxu1 %v10747_v48  ;;  %v10806_v2 = vld [vmem:[#allocation102_spill] sm:$0xff] }
 0x487   : > { %v7806_v5 = vpop.eup %7805  ;;  %v1985_v17 = vadd.f32 1.0, %v7804_v40 }
 0x488   : > { %v1991_v13 = vadd.f32 1.0, %v7806_v5  ;;  %v7808_v40 = vpop.eup %7807 }
 0x489   : > { %7811 = vrcp.f32 %v1985_v17  ;;  %5966 = vmatpush1.bf16.msra.mxu0 %v10748_v38  ;;  %6030 = vmatpush1.bf16.msra.mxu1 %v10749_v35  ;;  %v7810_v17 = vpop.eup %7809 }
 0x48a   : > { %7813 = vrcp.f32 %v1991_v13  ;;  %5968 = vmatprep.subr.bf16.mxu0 %v10750_v53  ;;  %6032 = vmatprep.subr.bf16.mxu1 %v10804_v28 }
 0x48d   : > { %5970 = vmatpush1.bf16.msra.mxu0 %v10805_v15  ;;  %6034 = vmatpush1.bf16.msra.mxu1 %v10806_v2  ;;  %v1998_v15 = vadd.f32 1.0, %v7808_v40  ;;  %v10809_v40 = vld [vmem:[#allocation27_spill] sm:$0xff] }
 0x48e   : > { %5972 = vmatprep.subr.bf16.mxu0 %v10754_v34  ;;  %6036 = vmatprep.subr.bf16.mxu1 %v10755_v58 }
 0x48f   : > { %7815 = vrcp.f32 %v1998_v15 }
 0x491   : > { %5974 = vmatpush1.bf16.msra.mxu0 %v10807_v16  ;;  %6038 = vmatpush1.bf16.msra.mxu1 %v10700_v31 }
 0x492   : > { %5976 = vmatprep.subr.bf16.mxu0 %v10701_v18  ;;  %6040 = vmatprep.subr.bf16.mxu1 %v10702_v61 }
 0x493   : > { %v7812_v13 = vpop.eup %7811 }
 0x494   : > { %v7814_v25 = vpop.eup %7813  ;;  %v2002_v5 = vmul.f32 %v7812_v13, %v7810_v17  ;;  %v10810_v17 = vld [vmem:[#allocation28_spill] sm:$0xff]  ;;  %v10811_v13 = vld [vmem:[#allocation29_spill] sm:$0xff] }
 0x495   : > { %v2001_v2 = vmul.f32 %v7814_v25, %v9088_v6  ;;  %5978 = vmatpush1.bf16.msra.mxu0 %v10703_v12  ;;  %6042 = vmatpush1.bf16.msra.mxu1 %v10704_v45  ;;  %v10812_v25 = vld [vmem:[#allocation30_spill] sm:$0xff] }
 0x496   : > { %5980 = vmatprep.subr.bf16.mxu0 %v8805_v62  ;;  %6044 = vmatprep.subr.bf16.mxu1 %v8807_v52 }
 0x497   : > { %v9208_v31 = vadd.f32 %v2002_v5, %v2001_v2  ;;  %v10813_v5 = vld [vmem:[#allocation31_spill] sm:$0xff] }
 0x499   : > { %5982 = vmatpush1.bf16.msra.mxu0 %v8811_v57  ;;  %6046 = vmatpush1.bf16.msra.mxu1 %v8813_v11  ;;  %7817 = vtanh.f32 %v9208_v31  ;;  %v7816_v6 = vpop.eup %7815 }
 0x49a   : > { %5984 = vmatprep.subr.bf16.mxu0 %v8817_v23  ;;  %6048 = vmatprep.subr.bf16.mxu1 %v8819_v44 }
 0x49d   : > { %5986 = vmatpush1.bf16.msra.mxu0 %v8823_v47  ;;  %6050 = vmatpush1.bf16.msra.mxu1 %v8825_v49 }
 0x49e   : > { %5988 = vmatprep.subr.bf16.mxu0 %v8829_v60  ;;  %6052 = vmatprep.subr.bf16.mxu1 %v8831_v51 }
 0x4a1   : > { %5990 = vmatpush1.bf16.msra.mxu0 %v8835_v0  ;;  %6054 = vmatpush1.bf16.msra.mxu1 %v8837_v7 }
 0x4a2   : > { %6056 = vmatprep.subr.bf16.mxu0 %v8468_v24  ;;  %6088 = vmatprep.subr.bf16.mxu1 %v8471_v26 }
 0x4a3   : > { %v7818_v2 = vpop.eup %7817 }
 0x4a4   : > { %v2005_v15 = vmul.f32 %v7818_v2, %v7816_v6  ;;  %v10814_v6 = vld [vmem:[#allocation32_spill] sm:$0xff]  ;;  %v10815_v2 = vld [vmem:[#allocation33_spill] sm:$0xff] }
 0x4a6   : > { %2247 = vmatprep.mubr.f32.mxu0 %v2005_v15  ;;  %2318 = vmatprep.mubr.f32.mxu1 %v2005_v15  ;;  %v10816_v15 = vld [vmem:[#allocation34_spill] sm:$0xff] }
 0x4a7   : > { %2248 = vmatmul.mubr.f32.vlgmr.msra.gmra.mrb[22].mxu0 %v9147_v22  ;;  %2319 = vmatmul.mubr.f32.vlgmr.msra.gmra.mrb[38].mxu1 %v9147_v22  ;;  %v10808_v22 = vld [vmem:[#allocation26_spill] sm:$0xff] }
 0x4a8   : > { %6058 = vmatpush1.bf16.msra.mxu0 %v8474_v30  ;;  %6090 = vmatpush1.bf16.msra.mxu1 %v8478_v33 }
 0x4a9   : > { %6060 = vmatprep.subr.bf16.mxu0 %v8484_v37  ;;  %6092 = vmatprep.subr.bf16.mxu1 %v8486_v41 }
 0x4aa   : > { %2420 = vmatprep.mubr.f32.mxu0 %v10591_v1  ;;  %2491 = vmatprep.mubr.f32.mxu1 %v10591_v1 }
 0x4ac   : > { %6062 = vmatpush1.bf16.msra.mxu0 %v8488_v42  ;;  %6094 = vmatpush1.bf16.msra.mxu1 %v8493_v46 }
 0x4ad   : > { %6064 = vmatprep.subr.bf16.mxu0 %v8500_v50  ;;  %6096 = vmatprep.subr.bf16.mxu1 %v8503_v54  ;;  %v10830_v54 = vld [vmem:[#allocation49_spill] sm:$0xff] }
 0x4b0   : > { %6066 = vmatpush1.bf16.msra.mxu0 %v8505_v55  ;;  %6098 = vmatpush1.bf16.msra.mxu1 %v8510_v59  ;;  %v10817_v55 = vld [vmem:[#allocation35_spill] sm:$0xff]  ;;  %v10818_v59 = vld [vmem:[#allocation36_spill] sm:$0xff] }
 0x4b1   : > { %6068 = vmatprep.subr.bf16.mxu0 %v10808_v22  ;;  %6100 = vmatprep.subr.bf16.mxu1 %v10809_v40  ;;  %v10819_v22 = vld [vmem:[#allocation37_spill] sm:$0xff]  ;;  %v10820_v40 = vld [vmem:[#allocation38_spill] sm:$0xff] }
 0x4b4   : > { %6070 = vmatpush1.bf16.msra.mxu0 %v10810_v17  ;;  %6102 = vmatpush1.bf16.msra.mxu1 %v10811_v13  ;;  %v10821_v17 = vld [vmem:[#allocation39_spill] sm:$0xff]  ;;  %v10822_v13 = vld [vmem:[#allocation40_spill] sm:$0xff] }
 0x4b5   : > { %6072 = vmatprep.subr.bf16.mxu0 %v10812_v25  ;;  %6104 = vmatprep.subr.bf16.mxu1 %v10813_v5  ;;  %v10823_v25 = vld [vmem:[#allocation41_spill] sm:$0xff]  ;;  %v10824_v5 = vld [vmem:[#allocation42_spill] sm:$0xff] }
 0x4b8   : > { %6074 = vmatpush1.bf16.msra.mxu0 %v10814_v6  ;;  %6106 = vmatpush1.bf16.msra.mxu1 %v10815_v2  ;;  %v10825_v6 = vld [vmem:[#allocation43_spill] sm:$0xff]  ;;  %v10826_v2 = vld [vmem:[#allocation44_spill] sm:$0xff] }
 0x4b9   : > { %6076 = vmatprep.subr.bf16.mxu0 %v10816_v15  ;;  %6108 = vmatprep.subr.bf16.mxu1 %v10817_v55  ;;  %v10827_v15 = vld [vmem:[#allocation45_spill] sm:$0xff]  ;;  %v10828_v55 = vld [vmem:[#allocation46_spill] sm:$0xff] }
 0x4bc   : > { %6078 = vmatpush1.bf16.msra.mxu0 %v10818_v59  ;;  %6110 = vmatpush1.bf16.msra.mxu1 %v10819_v22  ;;  %v10829_v59 = vld [vmem:[#allocation47_spill] sm:$0xff] }
 0x4bd   : > { %6080 = vmatprep.subr.bf16.mxu0 %v10820_v40  ;;  %6112 = vmatprep.subr.bf16.mxu1 %v10821_v17 }
 0x4c0   : > { %6082 = vmatpush1.bf16.msra.mxu0 %v10822_v13  ;;  %6114 = vmatpush1.bf16.msra.mxu1 %v10823_v25 }
 0x4c1   : > { %6084 = vmatprep.subr.bf16.mxu0 %v10824_v5  ;;  %6116 = vmatprep.subr.bf16.mxu1 %v10825_v6 }
 0x4c4   : > { %6086 = vmatpush1.bf16.msra.mxu0 %v10826_v2  ;;  %6118 = vmatpush1.bf16.msra.mxu1 %v10827_v15 }
 0x4c5   : > { %6120 = vmatprep.subr.bf16.mxu0 %v10828_v55  ;;  %6184 = vmatprep.subr.bf16.mxu1 %v10829_v59 }
 0x537   : > { %v2079_v22 = vpop.f32.mrb[8].mxu0  ;;  %v2150_v40 = vpop.f32.mrb[16].mxu1 }
 0x538   : > { %v7559_v17 = vadd.f32 %v2079_v22, %v10830_v54  ;;  %v2081_v50 = vpop.f32.mrb[9].mxu0  ;;  %v2152_v13 = vpop.f32.mrb[17].mxu1  ;;  %v7589_v15 = vadd.f32 %v2150_v40, %v10711_v29 }
 0x539   : > { %v7560_v25 = vadd.f32 %v2081_v50, %v10771_v9  ;;  %v7590_v2 = vadd.f32 %v2152_v13, %v10710_v3 }
 0x53a   : > { %v5171_v46 = vmul.f32 -1.442695, %v7559_v17 }
 0x53b   : > { %v5172_v5 = vmul.f32 -1.442695, %v7560_v25  ;;  %v5173_v6 = vmul.f32 -1.442695, %v7590_v2  ;;  %v10836_v2 = vld [vmem:[#allocation69_spill] sm:$0xff] }
 0x53c   : > { %7819 = vpow2.f32 %v5171_v46 }
 0x53d   : > { %7821 = vpow2.f32 %v5172_v5 }
 0x53e   : > { %7823 = vpow2.f32 %v5173_v6 }
 0x53f   : > { %7825 = vtanh.f32 %v7589_v15  ;;  %v10837_v15 = vld [vmem:[#allocation70_spill] sm:$0xff] }
 0x546   : > { %v7820_v55 = vpop.eup %7819 }
 0x547   : > { %v7822_v42 = vpop.eup %7821  ;;  %v2162_v59 = vadd.f32 1.0, %v7820_v55 }
 0x548   : > { %v2168_v1 = vadd.f32 1.0, %v7822_v42  ;;  %v7824_v22 = vpop.eup %7823  ;;  %v10831_v42 = vld [vmem:[#allocation64_spill] sm:$0xff] }
 0x549   : > { %7827 = vrcp.f32 %v2162_v59  ;;  %v7826_v54 = vpop.eup %7825  ;;  %v2175_v46 = vadd.f32 1.0, %v7824_v22  ;;  %v10833_v59 = vld [vmem:[#allocation66_spill] sm:$0xff]  ;;  %v10838_v22 = vld [vmem:[#allocation71_spill] sm:$0xff] }
 0x54a   : > { %7829 = vrcp.f32 %v2168_v1  ;;  %v10834_v1 = vld [vmem:[#allocation67_spill] sm:$0xff] }
 0x54b   : > { %7831 = vrcp.f32 %v2175_v46  ;;  %v10842_v46 = vld [vmem:[#allocation75_spill] sm:$0xff] }
 0x553   : > { %v7828_v50 = vpop.eup %7827 }
 0x554   : > { %v7830_v17 = vpop.eup %7829  ;;  %v2179_v25 = vmul.f32 %v7828_v50, %v7826_v54  ;;  %v10832_v54 = vld [vmem:[#allocation65_spill] sm:$0xff]  ;;  %v10839_v50 = vld [vmem:[#allocation72_spill] sm:$0xff] }
 0x555   : > { %v2178_v5 = vmul.f32 %v7830_v17, %v9144_v20  ;;  %v7832_v40 = vpop.eup %7831  ;;  %v10835_v20 = vld [vmem:[#allocation68_spill] sm:$0xff]  ;;  %v10840_v17 = vld [vmem:[#allocation73_spill] sm:$0xff] }
 0x557   : > { %v9264_v13 = vadd.f32 %v2179_v25, %v2178_v5  ;;  %v10841_v25 = vld [vmem:[#allocation74_spill] sm:$0xff]  ;;  %v10843_v5 = vld [vmem:[#allocation76_spill] sm:$0xff] }
 0x559   : > { %7833 = vtanh.f32 %v9264_v13 }
 0x563   : > { %v7834_v55 = vpop.eup %7833 }
 0x564   : > { %v9267_v6 = vmul.f32 %v7834_v55, %v7832_v40  ;;  %v10844_v40 = vld [vmem:[#allocation77_spill] sm:$0xff]  ;;  %v10845_v55 = vld [vmem:[#allocation78_spill] sm:$0xff] }
 0x566   : > { %2421 = vmatmul.mubr.f32.vlgmr.msra.gmra.mrb[10].mxu0 %v9267_v6  ;;  %2492 = vmatmul.mubr.f32.vlgmr.msra.gmra.mrb[18].mxu1 %v9267_v6 }
 0x567   : > { %6122 = vmatpush1.bf16.msra.mxu0 %v10713_v32  ;;  %6186 = vmatpush1.bf16.msra.mxu1 %v10772_v63 }
 0x568   : > { %6124 = vmatprep.subr.bf16.mxu0 %v10773_v4  ;;  %6188 = vmatprep.subr.bf16.mxu1 %v10831_v42 }
 0x56b   : > { %6126 = vmatpush1.bf16.msra.mxu0 %v10832_v54  ;;  %6190 = vmatpush1.bf16.msra.mxu1 %v10833_v59  ;;  %v10848_v59 = vld [vmem:[#allocation81_spill] sm:$0xff] }
 0x56c   : > { %6128 = vmatprep.subr.bf16.mxu0 %v10834_v1  ;;  %6192 = vmatprep.subr.bf16.mxu1 %v10835_v20  ;;  %v10846_v20 = vld [vmem:[#allocation79_spill] sm:$0xff] }
 0x56f   : > { %6130 = vmatpush1.bf16.msra.mxu0 %v10836_v2  ;;  %6194 = vmatpush1.bf16.msra.mxu1 %v10837_v15  ;;  %v10847_v2 = vld [vmem:[#allocation80_spill] sm:$0xff] }
 0x570   : > { %6132 = vmatprep.subr.bf16.mxu0 %v10838_v22  ;;  %6196 = vmatprep.subr.bf16.mxu1 %v10839_v50 }
 0x573   : > { %6134 = vmatpush1.bf16.msra.mxu0 %v10840_v17  ;;  %6198 = vmatpush1.bf16.msra.mxu1 %v10841_v25  ;;  %v10852_v25 = vld [vmem:[#allocation86_spill] sm:$0xff] }
 0x574   : > { %6136 = vmatprep.subr.bf16.mxu0 %v10842_v46  ;;  %6200 = vmatprep.subr.bf16.mxu1 %v10843_v5  ;;  %v10849_v46 = vld [vmem:[#allocation124_spill] sm:$0xff] }
 0x577   : > { %6138 = vmatpush1.bf16.msra.mxu0 %v10844_v40  ;;  %6202 = vmatpush1.bf16.msra.mxu1 %v10845_v55  ;;  %v10850_v40 = vld [vmem:[#allocation84_spill] sm:$0xff] }
 0x578   : > { %6140 = vmatprep.subr.bf16.mxu0 %v10846_v20  ;;  %6204 = vmatprep.subr.bf16.mxu1 %v10847_v2  ;;  %v10851_v2 = vld [vmem:[#allocation85_spill] sm:$0xff] }
 0x57a   : > { %v2249_v15 = vpop.f32.mrb[22].mxu0  ;;  %v2320_v22 = vpop.f32.mrb[38].mxu1 }
 0x57b   : > { %v2250_v50 = vadd.f32 %v2249_v15, %v10790_v8  ;;  %v2251_v1 = vpop.f32.mrb[23].mxu0  ;;  %v2322_v17 = vpop.f32.mrb[39].mxu1  ;;  %6142 = vmatpush1.bf16.msra.mxu0 %v10848_v59  ;;  %6206 = vmatpush1.bf16.msra.mxu1 %v10791_v27  ;;  %v10853_v15 = vld [vmem:[#allocation87_spill] sm:$0xff]  ;;  %v10854_v27 = vld [vmem:[#allocation89_spill] sm:$0xff] }
 0x57c   : > { %v2252_v5 = vadd.f32 %v2251_v1, %v10849_v46  ;;  %6144 = vmatprep.subr.bf16.mxu0 %v10792_v43  ;;  %6208 = vmatprep.subr.bf16.mxu1 %v10850_v40  ;;  %v2323_v8 = vadd.f32 %v2322_v17, %v10797_v56  ;;  %v10855_v1 = vld [vmem:[#allocation90_spill] sm:$0xff] }
 0x57d   : > { %v5174_v55 = vmul.f32 -1.442695, %v2250_v50 }
 0x57e   : > { %v5175_v20 = vmul.f32 -1.442695, %v2252_v5  ;;  %v5176_v50 = vmul.f32 -1.442695, %v2323_v8  ;;  %v2321_v5 = vadd.f32 %v2320_v22, %v10743_v39  ;;  %v10857_v8 = vld [vmem:[#allocation101_spill] sm:$0xff]  ;;  %v10858_v22 = vld [vmem:[#allocation102_spill] sm:$0xff] }
 0x57f   : > { %7835 = vpow2.f32 %v5174_v55  ;;  %6146 = vmatpush1.bf16.msra.mxu0 %v10851_v2  ;;  %6210 = vmatpush1.bf16.msra.mxu1 %v10852_v25 }
 0x580   : > { %7837 = vpow2.f32 %v5175_v20  ;;  %6148 = vmatprep.subr.bf16.mxu0 %v10853_v15  ;;  %6212 = vmatprep.subr.bf16.mxu1 %v10796_v14  ;;  %v10856_v20 = vld [vmem:[#allocation95_spill] sm:$0xff] }
 0x581   : > { %7839 = vpow2.f32 %v5176_v50  ;;  %v10859_v50 = vld [vmem:[#allocation106_spill] sm:$0xff] }
 0x582   : > { %7841 = vtanh.f32 %v2321_v5 }
 0x583   : > { %6150 = vmatpush1.bf16.msra.mxu0 %v10854_v27  ;;  %6214 = vmatpush1.bf16.msra.mxu1 %v10855_v1 }
 0x584   : > { %6152 = vmatprep.subr.bf16.mxu0 %v10799_v36  ;;  %6216 = vmatprep.subr.bf16.mxu1 %v10800_v19 }
 0x587   : > { %6154 = vmatpush1.bf16.msra.mxu0 %v10801_v10  ;;  %6218 = vmatpush1.bf16.msra.mxu1 %v10802_v21 }
 0x588   : > { %6156 = vmatprep.subr.bf16.mxu0 %v10856_v20  ;;  %6220 = vmatprep.subr.bf16.mxu1 %v10747_v48 }
 0x589   : > { %v7836_v17 = vpop.eup %7835 }
 0x58a   : > { %v7838_v55 = vpop.eup %7837  ;;  %v2328_v27 = vadd.f32 1.0, %v7836_v17 }
 0x58b   : > { %v2334_v1 = vadd.f32 1.0, %v7838_v55  ;;  %6158 = vmatpush1.bf16.msra.mxu0 %v10748_v38  ;;  %6222 = vmatpush1.bf16.msra.mxu1 %v10749_v35  ;;  %v7840_v5 = vpop.eup %7839 }
 0x58c   : > { %7843 = vrcp.f32 %v2328_v27  ;;  %6160 = vmatprep.subr.bf16.mxu0 %v10750_v53  ;;  %6224 = vmatprep.subr.bf16.mxu1 %v10804_v28  ;;  %v7842_v27 = vpop.eup %7841 }
 0x58d   : > { %7845 = vrcp.f32 %v2334_v1 }
 0x58f   : > { %6162 = vmatpush1.bf16.msra.mxu0 %v10857_v8  ;;  %6226 = vmatpush1.bf16.msra.mxu1 %v10858_v22  ;;  %v2341_v8 = vadd.f32 1.0, %v7840_v5  ;;  %v10860_v5 = vmov 0.0  }
 0x590   : > { %6164 = vmatprep.subr.bf16.mxu0 %v10754_v34  ;;  %6228 = vmatprep.subr.bf16.mxu1 %v10755_v58 }
 0x591   : > { %7847 = vrcp.f32 %v2341_v8 }
 0x593   : > { %6166 = vmatpush1.bf16.msra.mxu0 %v10807_v16  ;;  %6230 = vmatpush1.bf16.msra.mxu1 %v10859_v50 }
 0x594   : > { %6168 = vmatprep.subr.bf16.mxu0 %v10701_v18  ;;  %6232 = vmatprep.subr.bf16.mxu1 %v10702_v61 }
 0x596   : > { %v7844_v17 = vpop.eup %7843 }
 0x597   : > { %v7846_v1 = vpop.eup %7845  ;;  %v2345_v55 = vmul.f32 %v7844_v17, %v7842_v27  ;;  %6170 = vmatpush1.bf16.msra.mxu0 %v10703_v12  ;;  %6234 = vmatpush1.bf16.msra.mxu1 %v10704_v45  ;;  %v10861_v27 = vld [vmem:[#allocation20_spill] sm:$0xff]  ;;  %v10862_v17 = vld [vmem:[#allocation21_spill] sm:$0xff] }
 0x598   : > { %v2344_v58 = vmul.f32 %v7846_v1, %v9208_v31  ;;  %6172 = vmatprep.subr.bf16.mxu0 %v8805_v62  ;;  %6236 = vmatprep.subr.bf16.mxu1 %v8807_v52  ;;  %v10863_v1 = vld [vmem:[#allocation22_spill] sm:$0xff] }
 0x59a   : > { %v9328_v50 = vadd.f32 %v2345_v55, %v2344_v58  ;;  %v10864_v55 = vld [vmem:[#allocation23_spill] sm:$0xff] }
 0x59b   : > { %6174 = vmatpush1.bf16.msra.mxu0 %v8811_v57  ;;  %6238 = vmatpush1.bf16.msra.mxu1 %v8813_v11  ;;  %v7848_v31 = vpop.eup %7847 }
 0x59c   : > { %6176 = vmatprep.subr.bf16.mxu0 %v8817_v23  ;;  %6240 = vmatprep.subr.bf16.mxu1 %v8819_v44  ;;  %7849 = vtanh.f32 %v9328_v50 }
 0x59f   : > { %6178 = vmatpush1.bf16.msra.mxu0 %v8823_v47  ;;  %6242 = vmatpush1.bf16.msra.mxu1 %v8825_v49 }
 0x5a0   : > { %6180 = vmatprep.subr.bf16.mxu0 %v8829_v60  ;;  %6244 = vmatprep.subr.bf16.mxu1 %v8831_v51 }
 0x5a3   : > { %6182 = vmatpush1.bf16.msra.mxu0 %v8835_v0  ;;  %6246 = vmatpush1.bf16.msra.mxu1 %v8837_v7 }
 0x5a4   : > { %6248 = vmatprep.subr.bf16.mxu0 %v8468_v24  ;;  %6280 = vmatprep.subr.bf16.mxu1 %v8471_v26 }
 0x5a6   : > { %v7850_v58 = vpop.eup %7849 }
 0x5a7   : > { %v2348_v8 = vmul.f32 %v7850_v58, %v7848_v31  ;;  %v10866_v31 = vld [vmem:[#allocation25_spill] sm:$0xff]  ;;  %v10867_v58 = vld [vmem:[#allocation26_spill] sm:$0xff] }
 0x5a9   : > { %2590 = vmatprep.mubr.f32.mxu0 %v2348_v8  ;;  %2661 = vmatprep.mubr.f32.mxu1 %v2348_v8  ;;  %v10868_v8 = vld [vmem:[#allocation27_spill] sm:$0xff] }
 0x5aa   : > { %2591 = vmatmul.mubr.f32.vlgmr.msra.gmra.mrb[24].mxu0 %v9267_v6  ;;  %2662 = vmatmul.mubr.f32.vlgmr.msra.gmra.mrb[40].mxu1 %v9267_v6  ;;  %v10865_v6 = vld [vmem:[#allocation24_spill] sm:$0xff] }
 0x5ab   : > { %6250 = vmatpush1.bf16.msra.mxu0 %v8474_v30  ;;  %6282 = vmatpush1.bf16.msra.mxu1 %v8478_v33  ;;  %v10889_v33 = vld [vmem:[#allocation49_spill] sm:$0xff] }
 0x5ac   : > { %6252 = vmatprep.subr.bf16.mxu0 %v8484_v37  ;;  %6284 = vmatprep.subr.bf16.mxu1 %v8486_v41  ;;  %v10869_v41 = vld [vmem:[#allocation28_spill] sm:$0xff]  ;;  %v10870_v37 = vld [vmem:[#allocation29_spill] sm:$0xff] }
 0x5ad   : > { %2763 = vmatprep.mubr.f32.mxu0 %v10860_v5  ;;  %2834 = vmatprep.mubr.f32.mxu1 %v10860_v5  ;;  %v10871_v5 = vld [vmem:[#allocation30_spill] sm:$0xff] }
 0x5af   : > { %6254 = vmatpush1.bf16.msra.mxu0 %v10861_v27  ;;  %6286 = vmatpush1.bf16.msra.mxu1 %v10862_v17  ;;  %v10872_v27 = vld [vmem:[#allocation31_spill] sm:$0xff]  ;;  %v10873_v17 = vld [vmem:[#allocation32_spill] sm:$0xff] }
 0x5b0   : > { %6256 = vmatprep.subr.bf16.mxu0 %v10863_v1  ;;  %6288 = vmatprep.subr.bf16.mxu1 %v10864_v55  ;;  %v10874_v1 = vld [vmem:[#allocation33_spill] sm:$0xff]  ;;  %v10875_v55 = vld [vmem:[#allocation34_spill] sm:$0xff] }
 0x5b3   : > { %6258 = vmatpush1.bf16.msra.mxu0 %v10865_v6  ;;  %6290 = vmatpush1.bf16.msra.mxu1 %v10866_v31  ;;  %v10876_v6 = vld [vmem:[#allocation35_spill] sm:$0xff]  ;;  %v10877_v31 = vld [vmem:[#allocation36_spill] sm:$0xff] }
 0x5b4   : > { %6260 = vmatprep.subr.bf16.mxu0 %v10867_v58  ;;  %6292 = vmatprep.subr.bf16.mxu1 %v10868_v8  ;;  %v10878_v58 = vld [vmem:[#allocation37_spill] sm:$0xff]  ;;  %v10879_v8 = vld [vmem:[#allocation38_spill] sm:$0xff] }
 0x5b7   : > { %6262 = vmatpush1.bf16.msra.mxu0 %v10869_v41  ;;  %6294 = vmatpush1.bf16.msra.mxu1 %v10870_v37  ;;  %v10880_v41 = vld [vmem:[#allocation39_spill] sm:$0xff]  ;;  %v10881_v37 = vld [vmem:[#allocation40_spill] sm:$0xff] }
 0x5b8   : > { %6264 = vmatprep.subr.bf16.mxu0 %v10871_v5  ;;  %6296 = vmatprep.subr.bf16.mxu1 %v10872_v27  ;;  %v10882_v5 = vld [vmem:[#allocation41_spill] sm:$0xff]  ;;  %v10883_v27 = vld [vmem:[#allocation42_spill] sm:$0xff] }
 0x5bb   : > { %6266 = vmatpush1.bf16.msra.mxu0 %v10873_v17  ;;  %6298 = vmatpush1.bf16.msra.mxu1 %v10874_v1  ;;  %v10884_v17 = vld [vmem:[#allocation43_spill] sm:$0xff]  ;;  %v10885_v1 = vld [vmem:[#allocation44_spill] sm:$0xff] }
 0x5bc   : > { %6268 = vmatprep.subr.bf16.mxu0 %v10875_v55  ;;  %6300 = vmatprep.subr.bf16.mxu1 %v10876_v6  ;;  %v10886_v55 = vld [vmem:[#allocation45_spill] sm:$0xff]  ;;  %v10887_v6 = vld [vmem:[#allocation46_spill] sm:$0xff] }
 0x5bf   : > { %6270 = vmatpush1.bf16.msra.mxu0 %v10877_v31  ;;  %6302 = vmatpush1.bf16.msra.mxu1 %v10878_v58  ;;  %v10888_v31 = vld [vmem:[#allocation47_spill] sm:$0xff] }
 0x5c0   : > { %6272 = vmatprep.subr.bf16.mxu0 %v10879_v8  ;;  %6304 = vmatprep.subr.bf16.mxu1 %v10880_v41 }
 0x5c3   : > { %6274 = vmatpush1.bf16.msra.mxu0 %v10881_v37  ;;  %6306 = vmatpush1.bf16.msra.mxu1 %v10882_v5 }
 0x5c4   : > { %6276 = vmatprep.subr.bf16.mxu0 %v10883_v27  ;;  %6308 = vmatprep.subr.bf16.mxu1 %v10884_v17 }
 0x5c7   : > { %6278 = vmatpush1.bf16.msra.mxu0 %v10885_v1  ;;  %6310 = vmatpush1.bf16.msra.mxu1 %v10886_v55 }
 0x5c8   : > { %6312 = vmatprep.subr.bf16.mxu0 %v10887_v6  ;;  %6376 = vmatprep.subr.bf16.mxu1 %v10888_v31 }
 0x639   : > { %v2422_v58 = vpop.f32.mrb[10].mxu0  ;;  %v2493_v8 = vpop.f32.mrb[18].mxu1 }
 0x63a   : > { %v7561_v41 = vadd.f32 %v2422_v58, %v10889_v33  ;;  %v2424_v30 = vpop.f32.mrb[11].mxu0  ;;  %v2495_v37 = vpop.f32.mrb[19].mxu1  ;;  %v7591_v55 = vadd.f32 %v2493_v8, %v10711_v29  ;;  %v10896_v8 = vld [vmem:[#allocation72_spill] sm:$0xff] }
 0x63b   : > { %v7562_v5 = vadd.f32 %v2424_v30, %v10771_v9  ;;  %v7592_v1 = vadd.f32 %v2495_v37, %v10710_v3 }
 0x63c   : > { %v5177_v26 = vmul.f32 -1.442695, %v7561_v41 }
 0x63d   : > { %v5178_v27 = vmul.f32 -1.442695, %v7562_v5  ;;  %v5179_v17 = vmul.f32 -1.442695, %v7592_v1 }
 0x63e   : > { %7851 = vpow2.f32 %v5177_v26 }
 0x63f   : > { %7853 = vpow2.f32 %v5178_v27 }
 0x640   : > { %7855 = vpow2.f32 %v5179_v17 }
 0x641   : > { %7857 = vtanh.f32 %v7591_v55  ;;  %v10894_v55 = vld [vmem:[#allocation70_spill] sm:$0xff] }
 0x648   : > { %v7852_v6 = vpop.eup %7851 }
 0x649   : > { %v7854_v24 = vpop.eup %7853  ;;  %v2505_v31 = vadd.f32 1.0, %v7852_v6 }
 0x64a   : > { %v2511_v7 = vadd.f32 1.0, %v7854_v24  ;;  %v7856_v58 = vpop.eup %7855  ;;  %v10890_v24 = vld [vmem:[#allocation66_spill] sm:$0xff] }
 0x64b   : > { %7859 = vrcp.f32 %v2505_v31  ;;  %v7858_v33 = vpop.eup %7857  ;;  %v2518_v26 = vadd.f32 1.0, %v7856_v58  ;;  %v10895_v31 = vld [vmem:[#allocation71_spill] sm:$0xff]  ;;  %v10897_v58 = vld [vmem:[#allocation73_spill] sm:$0xff] }
 0x64c   : > { %7861 = vrcp.f32 %v2511_v7  ;;  %v10892_v7 = vld [vmem:[#allocation68_spill] sm:$0xff] }
 0x64d   : > { %7863 = vrcp.f32 %v2518_v26  ;;  %v10901_v26 = vld [vmem:[#allocation77_spill] sm:$0xff] }
 0x655   : > { %v7860_v30 = vpop.eup %7859 }
 0x656   : > { %v7862_v41 = vpop.eup %7861  ;;  %v2522_v5 = vmul.f32 %v7860_v30, %v7858_v33  ;;  %v10891_v33 = vld [vmem:[#allocation67_spill] sm:$0xff]  ;;  %v10898_v30 = vld [vmem:[#allocation74_spill] sm:$0xff] }
 0x657   : > { %v2521_v27 = vmul.f32 %v7862_v41, %v9264_v13  ;;  %v7864_v1 = vpop.eup %7863  ;;  %v10893_v13 = vld [vmem:[#allocation69_spill] sm:$0xff]  ;;  %v10899_v41 = vld [vmem:[#allocation75_spill] sm:$0xff] }
 0x659   : > { %v9384_v37 = vadd.f32 %v2522_v5, %v2521_v27  ;;  %v10900_v5 = vld [vmem:[#allocation76_spill] sm:$0xff]  ;;  %v10902_v27 = vld [vmem:[#allocation78_spill] sm:$0xff] }
 0x65b   : > { %7865 = vtanh.f32 %v9384_v37 }
 0x665   : > { %v7866_v6 = vpop.eup %7865 }
 0x666   : > { %v9387_v17 = vmul.f32 %v7866_v6, %v7864_v1  ;;  %v10903_v1 = vld [vmem:[#allocation79_spill] sm:$0xff]  ;;  %v10904_v6 = vld [vmem:[#allocation80_spill] sm:$0xff] }
 0x668   : > { %2764 = vmatmul.mubr.f32.vlgmr.msra.gmra.mrb[12].mxu0 %v9387_v17  ;;  %2835 = vmatmul.mubr.f32.vlgmr.msra.gmra.mrb[20].mxu1 %v9387_v17 }
 0x669   : > { %6314 = vmatpush1.bf16.msra.mxu0 %v10713_v32  ;;  %6378 = vmatpush1.bf16.msra.mxu1 %v10772_v63 }
 0x66a   : > { %6316 = vmatprep.subr.bf16.mxu0 %v10773_v4  ;;  %6380 = vmatprep.subr.bf16.mxu1 %v10831_v42 }
 0x66d   : > { %6318 = vmatpush1.bf16.msra.mxu0 %v10832_v54  ;;  %6382 = vmatpush1.bf16.msra.mxu1 %v10890_v24 }
 0x66e   : > { %6320 = vmatprep.subr.bf16.mxu0 %v10891_v33  ;;  %6384 = vmatprep.subr.bf16.mxu1 %v10892_v7 }
 0x671   : > { %6322 = vmatpush1.bf16.msra.mxu0 %v10893_v13  ;;  %6386 = vmatpush1.bf16.msra.mxu1 %v10894_v55 }
 0x672   : > { %6324 = vmatprep.subr.bf16.mxu0 %v10895_v31  ;;  %6388 = vmatprep.subr.bf16.mxu1 %v10896_v8  ;;  %v10905_v8 = vld [vmem:[#allocation82_spill] sm:$0xff] }
 0x675   : > { %6326 = vmatpush1.bf16.msra.mxu0 %v10897_v58  ;;  %6390 = vmatpush1.bf16.msra.mxu1 %v10898_v30  ;;  %v10906_v58 = vld [vmem:[#allocation48_spill] sm:$0xff] }
 0x676   : > { %6328 = vmatprep.subr.bf16.mxu0 %v10899_v41  ;;  %6392 = vmatprep.subr.bf16.mxu1 %v10900_v5 }
 0x679   : > { %6330 = vmatpush1.bf16.msra.mxu0 %v10901_v26  ;;  %6394 = vmatpush1.bf16.msra.mxu1 %v10902_v27 }
 0x67a   : > { %6332 = vmatprep.subr.bf16.mxu0 %v10903_v1  ;;  %6396 = vmatprep.subr.bf16.mxu1 %v10904_v6 }
 0x67d   : > { %v2592_v55 = vpop.f32.mrb[24].mxu0  ;;  %v2663_v31 = vpop.f32.mrb[40].mxu1  ;;  %6334 = vmatpush1.bf16.msra.mxu0 %v10848_v59  ;;  %6398 = vmatpush1.bf16.msra.mxu1 %v10905_v8 }
 0x67e   : > { %v2593_v30 = vadd.f32 %v2592_v55, %v10906_v58  ;;  %v2594_v13 = vpop.f32.mrb[25].mxu0  ;;  %v2665_v41 = vpop.f32.mrb[41].mxu1  ;;  %6336 = vmatprep.subr.bf16.mxu0 %v10792_v43  ;;  %6400 = vmatprep.subr.bf16.mxu1 %v10850_v40  ;;  %v10907_v58 = vld [vmem:[#allocation89_spill] sm:$0xff]  ;;  %v10908_v43 = vld [vmem:[#allocation90_spill] sm:$0xff] }
 0x67f   : > { %v2595_v27 = vadd.f32 %v2594_v13, %v10849_v46  ;;  %v2666_v55 = vadd.f32 %v2665_v41, %v10797_v56 }
 0x680   : > { %v5180_v26 = vmul.f32 -1.442695, %v2593_v30  ;;  %v2664_v30 = vadd.f32 %v2663_v31, %v10743_v39  ;;  %v10909_v31 = vld [vmem:[#allocation101_spill] sm:$0xff] }
 0x681   : > { %v5181_v1 = vmul.f32 -1.442695, %v2595_v27  ;;  %6338 = vmatpush1.bf16.msra.mxu0 %v10851_v2  ;;  %6402 = vmatpush1.bf16.msra.mxu1 %v10852_v25  ;;  %v5182_v13 = vmul.f32 -1.442695, %v2666_v55  ;;  %v10910_v55 = vld [vmem:[#allocation104_spill] sm:$0xff] }
 0x682   : > { %7867 = vpow2.f32 %v5180_v26  ;;  %6340 = vmatprep.subr.bf16.mxu0 %v10853_v15  ;;  %6404 = vmatprep.subr.bf16.mxu1 %v10796_v14 }
 0x683   : > { %7869 = vpow2.f32 %v5181_v1 }
 0x684   : > { %7871 = vpow2.f32 %v5182_v13  ;;  %v10911_v13 = vld [vmem:[#allocation106_spill] sm:$0xff] }
 0x685   : > { %6342 = vmatpush1.bf16.msra.mxu0 %v10907_v58  ;;  %6406 = vmatpush1.bf16.msra.mxu1 %v10908_v43  ;;  %7873 = vtanh.f32 %v2664_v30 }
 0x686   : > { %6344 = vmatprep.subr.bf16.mxu0 %v10799_v36  ;;  %6408 = vmatprep.subr.bf16.mxu1 %v10800_v19 }
 0x689   : > { %6346 = vmatpush1.bf16.msra.mxu0 %v10801_v10  ;;  %6410 = vmatpush1.bf16.msra.mxu1 %v10802_v21 }
 0x68a   : > { %6348 = vmatprep.subr.bf16.mxu0 %v10856_v20  ;;  %6412 = vmatprep.subr.bf16.mxu1 %v10747_v48 }
 0x68c   : > { %v7868_v41 = vpop.eup %7867 }
 0x68d   : > { %v7870_v26 = vpop.eup %7869  ;;  %v2671_v27 = vadd.f32 1.0, %v7868_v41  ;;  %6350 = vmatpush1.bf16.msra.mxu0 %v10748_v38  ;;  %6414 = vmatpush1.bf16.msra.mxu1 %v10749_v35 }
 0x68e   : > { %v2677_v1 = vadd.f32 1.0, %v7870_v26  ;;  %6352 = vmatprep.subr.bf16.mxu0 %v10750_v53  ;;  %6416 = vmatprep.subr.bf16.mxu1 %v10804_v28  ;;  %v7872_v30 = vpop.eup %7871 }
 0x68f   : > { %7875 = vrcp.f32 %v2671_v27  ;;  %v7874_v41 = vpop.eup %7873 }
 0x690   : > { %7877 = vrcp.f32 %v2677_v1 }
 0x691   : > { %6354 = vmatpush1.bf16.msra.mxu0 %v10909_v31  ;;  %6418 = vmatpush1.bf16.msra.mxu1 %v10858_v22 }
 0x692   : > { %6356 = vmatprep.subr.bf16.mxu0 %v10754_v34  ;;  %6420 = vmatprep.subr.bf16.mxu1 %v10910_v55  ;;  %v2684_v34 = vadd.f32 1.0, %v7872_v30 }
 0x694   : > { %7879 = vrcp.f32 %v2684_v34  ;;  %v10914_v34 = vld [vmem:[#allocation15_spill] sm:$0xff] }
 0x695   : > { %6358 = vmatpush1.bf16.msra.mxu0 %v10807_v16  ;;  %6422 = vmatpush1.bf16.msra.mxu1 %v10911_v13 }
 0x696   : > { %6360 = vmatprep.subr.bf16.mxu0 %v10701_v18  ;;  %6424 = vmatprep.subr.bf16.mxu1 %v10702_v61 }
 0x699   : > { %v7876_v26 = vpop.eup %7875  ;;  %6362 = vmatpush1.bf16.msra.mxu0 %v10703_v12  ;;  %6426 = vmatpush1.bf16.msra.mxu1 %v10704_v45 }
 0x69a   : > { %v7878_v27 = vpop.eup %7877  ;;  %v2688_v1 = vmul.f32 %v7876_v26, %v7874_v41  ;;  %6364 = vmatprep.subr.bf16.mxu0 %v8805_v62  ;;  %6428 = vmatprep.subr.bf16.mxu1 %v8807_v52 }
 0x69b   : > { %v2687_v13 = vmul.f32 %v7878_v27, %v9328_v50  ;;  %v10912_v50 = vld [vmem:[#allocation122_spill] sm:$0xff]  ;;  %v10915_v27 = vld [vmem:[#allocation16_spill] sm:$0xff] }
 0x69d   : > { %6366 = vmatpush1.bf16.msra.mxu0 %v8811_v57  ;;  %6430 = vmatpush1.bf16.msra.mxu1 %v8813_v11  ;;  %v9450_v61 = vadd.f32 %v2688_v1, %v2687_v13  ;;  %v10913_v13 = vld [vmem:[#allocation14_spill] sm:$0xff]  ;;  %v10916_v1 = vld [vmem:[#allocation17_spill] sm:$0xff] }
 0x69e   : > { %6368 = vmatprep.subr.bf16.mxu0 %v8817_v23  ;;  %6432 = vmatprep.subr.bf16.mxu1 %v8819_v44  ;;  %v7880_v30 = vpop.eup %7879 }
 0x69f   : > { %7881 = vtanh.f32 %v9450_v61 }
 0x6a1   : > { %6370 = vmatpush1.bf16.msra.mxu0 %v8823_v47  ;;  %6434 = vmatpush1.bf16.msra.mxu1 %v8825_v49 }
 0x6a2   : > { %6372 = vmatprep.subr.bf16.mxu0 %v8829_v60  ;;  %6436 = vmatprep.subr.bf16.mxu1 %v8831_v51  ;;  %v10929_v51 = vld [vmem:[#allocation29_spill] sm:$0xff] }
 0x6a3   : > { %v10948_v60 = vld [vmem:[#allocation49_spill] sm:$0xff] }
 0x6a5   : > { %6374 = vmatpush1.bf16.msra.mxu0 %v8835_v0  ;;  %6438 = vmatpush1.bf16.msra.mxu1 %v10912_v50  ;;  %v10917_v0 = vld [vmem:[#allocation18_spill] sm:$0xff]  ;;  %v10918_v50 = vld [vmem:[#allocation19_spill] sm:$0xff] }
 0x6a6   : > { %6440 = vmatprep.subr.bf16.mxu0 %v10913_v13  ;;  %6472 = vmatprep.subr.bf16.mxu1 %v10914_v34  ;;  %v10919_v13 = vmov 0.0   ;;  %v10920_v34 = vld [vmem:[#allocation20_spill] sm:$0xff] }
 0x6a9   : > { %v7882_v41 = vpop.eup %7881 }
 0x6aa   : > { %v2691_v26 = vmul.f32 %v7882_v41, %v7880_v30  ;;  %v10921_v30 = vld [vmem:[#allocation21_spill] sm:$0xff]  ;;  %v10922_v41 = vld [vmem:[#allocation22_spill] sm:$0xff] }
 0x6ac   : > { %2933 = vmatprep.mubr.f32.mxu0 %v2691_v26  ;;  %3004 = vmatprep.mubr.f32.mxu1 %v2691_v26  ;;  %v10923_v26 = vld [vmem:[#allocation23_spill] sm:$0xff] }
 0x6ad   : > { %2934 = vmatmul.mubr.f32.vlgmr.msra.gmra.mrb[26].mxu0 %v9387_v17  ;;  %3005 = vmatmul.mubr.f32.vlgmr.msra.gmra.mrb[42].mxu1 %v9387_v17  ;;  %v10924_v17 = vld [vmem:[#allocation24_spill] sm:$0xff] }
 0x6ae   : > { %6442 = vmatpush1.bf16.msra.mxu0 %v10915_v27  ;;  %6474 = vmatpush1.bf16.msra.mxu1 %v10916_v1  ;;  %v10925_v27 = vld [vmem:[#allocation25_spill] sm:$0xff]  ;;  %v10926_v1 = vld [vmem:[#allocation26_spill] sm:$0xff] }
 0x6af   : > { %6444 = vmatprep.subr.bf16.mxu0 %v10917_v0  ;;  %6476 = vmatprep.subr.bf16.mxu1 %v10918_v50  ;;  %v10927_v0 = vld [vmem:[#allocation27_spill] sm:$0xff]  ;;  %v10928_v50 = vld [vmem:[#allocation28_spill] sm:$0xff] }
 0x6b0   : > { %3106 = vmatprep.mubr.f32.mxu0 %v10919_v13  ;;  %3177 = vmatprep.mubr.f32.mxu1 %v10919_v13  ;;  %v10930_v13 = vld [vmem:[#allocation30_spill] sm:$0xff] }
 0x6b2   : > { %6446 = vmatpush1.bf16.msra.mxu0 %v10920_v34  ;;  %6478 = vmatpush1.bf16.msra.mxu1 %v10921_v30  ;;  %v10931_v34 = vld [vmem:[#allocation31_spill] sm:$0xff]  ;;  %v10932_v30 = vld [vmem:[#allocation32_spill] sm:$0xff] }
 0x6b3   : > { %6448 = vmatprep.subr.bf16.mxu0 %v10922_v41  ;;  %6480 = vmatprep.subr.bf16.mxu1 %v10923_v26  ;;  %v10933_v41 = vld [vmem:[#allocation33_spill] sm:$0xff]  ;;  %v10934_v26 = vld [vmem:[#allocation34_spill] sm:$0xff] }
 0x6b6   : > { %6450 = vmatpush1.bf16.msra.mxu0 %v10924_v17  ;;  %6482 = vmatpush1.bf16.msra.mxu1 %v10925_v27  ;;  %v10935_v17 = vld [vmem:[#allocation35_spill] sm:$0xff]  ;;  %v10936_v27 = vld [vmem:[#allocation36_spill] sm:$0xff] }
 0x6b7   : > { %6452 = vmatprep.subr.bf16.mxu0 %v10926_v1  ;;  %6484 = vmatprep.subr.bf16.mxu1 %v10927_v0  ;;  %v10937_v1 = vld [vmem:[#allocation37_spill] sm:$0xff]  ;;  %v10938_v0 = vld [vmem:[#allocation38_spill] sm:$0xff] }
 0x6ba   : > { %6454 = vmatpush1.bf16.msra.mxu0 %v10928_v50  ;;  %6486 = vmatpush1.bf16.msra.mxu1 %v10929_v51  ;;  %v10939_v50 = vld [vmem:[#allocation39_spill] sm:$0xff]  ;;  %v10940_v51 = vld [vmem:[#allocation40_spill] sm:$0xff] }
 0x6bb   : > { %6456 = vmatprep.subr.bf16.mxu0 %v10930_v13  ;;  %6488 = vmatprep.subr.bf16.mxu1 %v10931_v34  ;;  %v10941_v13 = vld [vmem:[#allocation41_spill] sm:$0xff]  ;;  %v10942_v34 = vld [vmem:[#allocation42_spill] sm:$0xff] }
 0x6be   : > { %6458 = vmatpush1.bf16.msra.mxu0 %v10932_v30  ;;  %6490 = vmatpush1.bf16.msra.mxu1 %v10933_v41  ;;  %v10943_v30 = vld [vmem:[#allocation43_spill] sm:$0xff]  ;;  %v10944_v41 = vld [vmem:[#allocation44_spill] sm:$0xff] }
 0x6bf   : > { %6460 = vmatprep.subr.bf16.mxu0 %v10934_v26  ;;  %6492 = vmatprep.subr.bf16.mxu1 %v10935_v17  ;;  %v10945_v26 = vld [vmem:[#allocation45_spill] sm:$0xff]  ;;  %v10946_v17 = vld [vmem:[#allocation46_spill] sm:$0xff] }
 0x6c2   : > { %6462 = vmatpush1.bf16.msra.mxu0 %v10936_v27  ;;  %6494 = vmatpush1.bf16.msra.mxu1 %v10937_v1  ;;  %v10947_v27 = vld [vmem:[#allocation47_spill] sm:$0xff] }
 0x6c3   : > { %6464 = vmatprep.subr.bf16.mxu0 %v10938_v0  ;;  %6496 = vmatprep.subr.bf16.mxu1 %v10939_v50 }
 0x6c6   : > { %6466 = vmatpush1.bf16.msra.mxu0 %v10940_v51  ;;  %6498 = vmatpush1.bf16.msra.mxu1 %v10941_v13 }
 0x6c7   : > { %6468 = vmatprep.subr.bf16.mxu0 %v10942_v34  ;;  %6500 = vmatprep.subr.bf16.mxu1 %v10943_v30 }
 0x6ca   : > { %6470 = vmatpush1.bf16.msra.mxu0 %v10944_v41  ;;  %6502 = vmatpush1.bf16.msra.mxu1 %v10945_v26 }
 0x6cb   : > { %6504 = vmatprep.subr.bf16.mxu0 %v10946_v17  ;;  %6568 = vmatprep.subr.bf16.mxu1 %v10947_v27 }
 0x73b   : > { %v2765_v1 = vpop.f32.mrb[12].mxu0  ;;  %v2836_v0 = vpop.f32.mrb[20].mxu1 }
 0x73c   : > { %v7563_v50 = vadd.f32 %v2765_v1, %v10948_v60  ;;  %v2767_v49 = vpop.f32.mrb[13].mxu0  ;;  %v2838_v51 = vpop.f32.mrb[21].mxu1  ;;  %v7593_v26 = vadd.f32 %v2836_v0, %v10711_v29 }
 0x73d   : > { %v7564_v13 = vadd.f32 %v2767_v49, %v10771_v9  ;;  %v7594_v41 = vadd.f32 %v2838_v51, %v10710_v3 }
 0x73e   : > { %v5183_v47 = vmul.f32 -1.442695, %v7563_v50 }
 0x73f   : > { %v5184_v34 = vmul.f32 -1.442695, %v7564_v13  ;;  %v5185_v30 = vmul.f32 -1.442695, %v7594_v41 }
 0x740   : > { %7883 = vpow2.f32 %v5183_v47 }
 0x741   : > { %7885 = vpow2.f32 %v5184_v34 }
 0x742   : > { %7887 = vpow2.f32 %v5185_v30 }
 0x743   : > { %7889 = vtanh.f32 %v7593_v26  ;;  %v10954_v26 = vld [vmem:[#allocation74_spill] sm:$0xff] }
 0x74a   : > { %v7884_v17 = vpop.eup %7883 }
 0x74b   : > { %v7886_v44 = vpop.eup %7885  ;;  %v2848_v27 = vadd.f32 1.0, %v7884_v17  ;;  %v10955_v17 = vld [vmem:[#allocation75_spill] sm:$0xff] }
 0x74c   : > { %v2854_v23 = vadd.f32 1.0, %v7886_v44  ;;  %v7888_v1 = vpop.eup %7887  ;;  %v10950_v44 = vld [vmem:[#allocation70_spill] sm:$0xff] }
 0x74d   : > { %7891 = vrcp.f32 %v2848_v27  ;;  %v7890_v60 = vpop.eup %7889  ;;  %v2861_v47 = vadd.f32 1.0, %v7888_v1  ;;  %v10953_v27 = vld [vmem:[#allocation73_spill] sm:$0xff] }
 0x74e   : > { %7893 = vrcp.f32 %v2854_v23  ;;  %v10949_v23 = vld [vmem:[#allocation69_spill] sm:$0xff] }
 0x74f   : > { %7895 = vrcp.f32 %v2861_v47  ;;  %v10956_v1 = vld [vmem:[#allocation77_spill] sm:$0xff] }
 0x757   : > { %v7892_v49 = vpop.eup %7891 }
 0x758   : > { %v7894_v50 = vpop.eup %7893  ;;  %v2865_v13 = vmul.f32 %v7892_v49, %v7890_v60  ;;  %v10951_v60 = vld [vmem:[#allocation71_spill] sm:$0xff]  ;;  %v10957_v49 = vld [vmem:[#allocation78_spill] sm:$0xff] }
 0x759   : > { %v2864_v34 = vmul.f32 %v7894_v50, %v9384_v37  ;;  %v7896_v0 = vpop.eup %7895  ;;  %v10952_v37 = vld [vmem:[#allocation72_spill] sm:$0xff]  ;;  %v10958_v50 = vld [vmem:[#allocation79_spill] sm:$0xff] }
 0x75b   : > { %v9504_v51 = vadd.f32 %v2865_v13, %v2864_v34  ;;  %v10959_v34 = vld [vmem:[#allocation83_spill] sm:$0xff] }
 0x75d   : > { %7897 = vtanh.f32 %v9504_v51 }
 0x767   : > { %v7898_v41 = vpop.eup %7897 }
 0x768   : > { %v9507_v30 = vmul.f32 %v7898_v41, %v7896_v0  ;;  %v10960_v0 = vld [vmem:[#allocation48_spill] sm:$0xff] }
 0x76a   : > { %3107 = vmatmul.mubr.f32.vlgmr.msra.gmra.mrb[14].mxu0 %v9507_v30  ;;  %3178 = vmatmul.mubr.f32.vlgmr.msra.gmra.mrb[22].mxu1 %v9507_v30 }
 0x76b   : > { %6506 = vmatpush1.bf16.msra.mxu0 %v10713_v32  ;;  %6570 = vmatpush1.bf16.msra.mxu1 %v10772_v63 }
 0x76c   : > { %6508 = vmatprep.subr.bf16.mxu0 %v10773_v4  ;;  %6572 = vmatprep.subr.bf16.mxu1 %v10831_v42 }
 0x76f   : > { %6510 = vmatpush1.bf16.msra.mxu0 %v10832_v54  ;;  %6574 = vmatpush1.bf16.msra.mxu1 %v10890_v24 }
 0x770   : > { %6512 = vmatprep.subr.bf16.mxu0 %v10891_v33  ;;  %6576 = vmatprep.subr.bf16.mxu1 %v10892_v7 }
 0x773   : > { %6514 = vmatpush1.bf16.msra.mxu0 %v10949_v23  ;;  %6578 = vmatpush1.bf16.msra.mxu1 %v10950_v44 }
 0x774   : > { %6516 = vmatprep.subr.bf16.mxu0 %v10951_v60  ;;  %6580 = vmatprep.subr.bf16.mxu1 %v10952_v37 }
 0x777   : > { %6518 = vmatpush1.bf16.msra.mxu0 %v10953_v27  ;;  %6582 = vmatpush1.bf16.msra.mxu1 %v10954_v26 }
 0x778   : > { %6520 = vmatprep.subr.bf16.mxu0 %v10955_v17  ;;  %6584 = vmatprep.subr.bf16.mxu1 %v10900_v5 }
 0x77b   : > { %6522 = vmatpush1.bf16.msra.mxu0 %v10956_v1  ;;  %6586 = vmatpush1.bf16.msra.mxu1 %v10957_v49 }
 0x77c   : > { %6524 = vmatprep.subr.bf16.mxu0 %v10958_v50  ;;  %6588 = vmatprep.subr.bf16.mxu1 %v10904_v6 }
 0x77f   : > { %6526 = vmatpush1.bf16.msra.mxu0 %v10848_v59  ;;  %6590 = vmatpush1.bf16.msra.mxu1 %v10905_v8 }
 0x780   : > { %v2935_v13 = vpop.f32.mrb[26].mxu0  ;;  %v3006_v47 = vpop.f32.mrb[42].mxu1  ;;  %6528 = vmatprep.subr.bf16.mxu0 %v10959_v34  ;;  %6592 = vmatprep.subr.bf16.mxu1 %v10850_v40 }
 0x781   : > { %v2936_v41 = vadd.f32 %v2935_v13, %v10960_v0  ;;  %v2937_v5 = vpop.f32.mrb[27].mxu0  ;;  %v3008_v1 = vpop.f32.mrb[43].mxu1 }
 0x782   : > { %v2938_v49 = vadd.f32 %v2937_v5, %v10849_v46  ;;  %v3009_v13 = vadd.f32 %v3008_v1, %v10797_v56 }
 0x783   : > { %v5186_v17 = vmul.f32 -1.442695, %v2936_v41  ;;  %6530 = vmatpush1.bf16.msra.mxu0 %v10851_v2  ;;  %6594 = vmatpush1.bf16.msra.mxu1 %v10852_v25 }
 0x784   : > { %v5187_v59 = vmul.f32 -1.442695, %v2938_v49  ;;  %6532 = vmatprep.subr.bf16.mxu0 %v10853_v15  ;;  %6596 = vmatprep.subr.bf16.mxu1 %v10796_v14  ;;  %v5188_v5 = vmul.f32 -1.442695, %v3009_v13  ;;  %v10962_v13 = vld [vmem:[#allocation106_spill] sm:$0xff] }
 0x785   : > { %7899 = vpow2.f32 %v5186_v17 }
 0x786   : > { %7901 = vpow2.f32 %v5187_v59  ;;  %v3007_v59 = vadd.f32 %v3006_v47, %v10743_v39  ;;  %v10961_v47 = vld [vmem:[#allocation103_spill] sm:$0xff] }
 0x787   : > { %6534 = vmatpush1.bf16.msra.mxu0 %v10907_v58  ;;  %6598 = vmatpush1.bf16.msra.mxu1 %v10908_v43  ;;  %7903 = vpow2.f32 %v5188_v5  ;;  %v10963_v5 = vld [vmem:[#allocation108_spill] sm:$0xff] }
 0x788   : > { %6536 = vmatprep.subr.bf16.mxu0 %v10799_v36  ;;  %6600 = vmatprep.subr.bf16.mxu1 %v10800_v19  ;;  %7905 = vtanh.f32 %v3007_v59 }
 0x78b   : > { %6538 = vmatpush1.bf16.msra.mxu0 %v10801_v10  ;;  %6602 = vmatpush1.bf16.msra.mxu1 %v10802_v21 }
 0x78c   : > { %6540 = vmatprep.subr.bf16.mxu0 %v10856_v20  ;;  %6604 = vmatprep.subr.bf16.mxu1 %v10747_v48 }
 0x78f   : > { %v7900_v17 = vpop.eup %7899  ;;  %6542 = vmatpush1.bf16.msra.mxu0 %v10748_v38  ;;  %6606 = vmatpush1.bf16.msra.mxu1 %v10749_v35 }
 0x790   : > { %v7902_v1 = vpop.eup %7901  ;;  %v3014_v49 = vadd.f32 1.0, %v7900_v17  ;;  %6544 = vmatprep.subr.bf16.mxu0 %v10750_v53  ;;  %6608 = vmatprep.subr.bf16.mxu1 %v10804_v28 }
 0x791   : > { %v3020_v41 = vadd.f32 1.0, %v7902_v1  ;;  %v7904_v59 = vpop.eup %7903 }
 0x792   : > { %7907 = vrcp.f32 %v3014_v49  ;;  %v7906_v17 = vpop.eup %7905 }
 0x793   : > { %7909 = vrcp.f32 %v3020_v41  ;;  %6546 = vmatpush1.bf16.msra.mxu0 %v10909_v31  ;;  %6610 = vmatpush1.bf16.msra.mxu1 %v10858_v22 }
 0x794   : > { %6548 = vmatprep.subr.bf16.mxu0 %v10961_v47  ;;  %6612 = vmatprep.subr.bf16.mxu1 %v10910_v55 }
 0x797   : > { %6550 = vmatpush1.bf16.msra.mxu0 %v10807_v16  ;;  %6614 = vmatpush1.bf16.msra.mxu1 %v10962_v13  ;;  %v3027_v16 = vadd.f32 1.0, %v7904_v59  ;;  %v10969_v59 = vld [vmem:[#allocation119_spill] sm:$0xff] }
 0x798   : > { %6552 = vmatprep.subr.bf16.mxu0 %v10701_v18  ;;  %6616 = vmatprep.subr.bf16.mxu1 %v10963_v5  ;;  %v10964_v5 = vld [vmem:[#allocation115_spill] sm:$0xff]  ;;  %v10965_v18 = vld [vmem:[#allocation116_spill] sm:$0xff] }
 0x799   : > { %7911 = vrcp.f32 %v3027_v16 }
 0x79b   : > { %6554 = vmatpush1.bf16.msra.mxu0 %v10703_v12  ;;  %6618 = vmatpush1.bf16.msra.mxu1 %v10704_v45 }
 0x79c   : > { %v7908_v1 = vpop.eup %7907  ;;  %6556 = vmatprep.subr.bf16.mxu0 %v8805_v62  ;;  %6620 = vmatprep.subr.bf16.mxu1 %v8807_v52  ;;  %v10967_v62 = vld [vmem:[#allocation117_spill] sm:$0xff]  ;;  %v10968_v52 = vld [vmem:[#allocation118_spill] sm:$0xff] }
 0x79d   : > { %v7910_v49 = vpop.eup %7909  ;;  %v3031_v41 = vmul.f32 %v7908_v1, %v7906_v17  ;;  %v10971_v17 = vld [vmem:[#allocation121_spill] sm:$0xff]  ;;  %v10972_v1 = vld [vmem:[#allocation122_spill] sm:$0xff] }
 0x79e   : > { %v3030_v13 = vmul.f32 %v7910_v49, %v9450_v61  ;;  %v10970_v61 = vld [vmem:[#allocation120_spill] sm:$0xff]  ;;  %v10973_v49 = vld [vmem:[#allocation14_spill] sm:$0xff] }
 0x79f   : > { %6558 = vmatpush1.bf16.msra.mxu0 %v8811_v57  ;;  %6622 = vmatpush1.bf16.msra.mxu1 %v8813_v11 }
 0x7a0   : > { %6560 = vmatprep.subr.bf16.mxu0 %v10964_v5  ;;  %6624 = vmatprep.subr.bf16.mxu1 %v10965_v18  ;;  %v9572_v12 = vadd.f32 %v3031_v41, %v3030_v13  ;;  %v10974_v18 = vld [vmem:[#allocation15_spill] sm:$0xff] }
 0x7a2   : > { %10966 = vst [vmem:[#allocation123_spill] sm:$0xff] %v9572_v12  ;;  %7913 = vtanh.f32 %v9572_v12 }
 0x7a3   : > { %6562 = vmatpush1.bf16.msra.mxu0 %v10967_v62  ;;  %6626 = vmatpush1.bf16.msra.mxu1 %v10968_v52  ;;  %v7912_v13 = vpop.eup %7911  ;;  %v10989_v52 = vld [vmem:[#allocation29_spill] sm:$0xff] }
 0x7a4   : > { %6564 = vmatprep.subr.bf16.mxu0 %v10969_v59  ;;  %6628 = vmatprep.subr.bf16.mxu1 %v10970_v61  ;;  %v10975_v59 = vld [vmem:[#allocation16_spill] sm:$0xff]  ;;  %v10976_v61 = vld [vmem:[#allocation17_spill] sm:$0xff] }
 0x7a5   : > { %v11008_v62 = vld [vmem:[#allocation49_spill] sm:$0xff] }
 0x7a7   : > { %6566 = vmatpush1.bf16.msra.mxu0 %v10971_v17  ;;  %6630 = vmatpush1.bf16.msra.mxu1 %v10972_v1  ;;  %v10977_v17 = vld [vmem:[#allocation18_spill] sm:$0xff]  ;;  %v10978_v1 = vld [vmem:[#allocation19_spill] sm:$0xff] }
 0x7a8   : > { %6632 = vmatprep.subr.bf16.mxu0 %v10973_v49  ;;  %6664 = vmatprep.subr.bf16.mxu1 %v10974_v18  ;;  %v10979_v49 = vmov 0.0   ;;  %v10980_v18 = vld [vmem:[#allocation20_spill] sm:$0xff] }
 0x7ac   : > { %v7914_v16 = vpop.eup %7913 }
 0x7ad   : > { %v3034_v41 = vmul.f32 %v7914_v16, %v7912_v13  ;;  %v10981_v13 = vld [vmem:[#allocation21_spill] sm:$0xff]  ;;  %v10982_v16 = vld [vmem:[#allocation22_spill] sm:$0xff] }
 0x7af   : > { %3276 = vmatprep.mubr.f32.mxu0 %v3034_v41  ;;  %3347 = vmatprep.mubr.f32.mxu1 %v3034_v41  ;;  %v10983_v41 = vld [vmem:[#allocation23_spill] sm:$0xff] }
 0x7b0   : > { %3277 = vmatmul.mubr.f32.vlgmr.msra.gmra.mrb[28].mxu0 %v9507_v30  ;;  %3348 = vmatmul.mubr.f32.vlgmr.msra.gmra.mrb[44].mxu1 %v9507_v30  ;;  %v10984_v30 = vld [vmem:[#allocation24_spill] sm:$0xff] }
 0x7b1   : > { %6634 = vmatpush1.bf16.msra.mxu0 %v10975_v59  ;;  %6666 = vmatpush1.bf16.msra.mxu1 %v10976_v61  ;;  %v10985_v59 = vld [vmem:[#allocation25_spill] sm:$0xff]  ;;  %v10986_v61 = vld [vmem:[#allocation26_spill] sm:$0xff] }
 0x7b2   : > { %6636 = vmatprep.subr.bf16.mxu0 %v10977_v17  ;;  %6668 = vmatprep.subr.bf16.mxu1 %v10978_v1  ;;  %v10987_v17 = vld [vmem:[#allocation27_spill] sm:$0xff]  ;;  %v10988_v1 = vld [vmem:[#allocation28_spill] sm:$0xff] }
 0x7b3   : > { %3449 = vmatprep.mubr.f32.mxu0 %v10979_v49  ;;  %3520 = vmatprep.mubr.f32.mxu1 %v10979_v49  ;;  %v10990_v49 = vld [vmem:[#allocation30_spill] sm:$0xff] }
 0x7b5   : > { %6638 = vmatpush1.bf16.msra.mxu0 %v10980_v18  ;;  %6670 = vmatpush1.bf16.msra.mxu1 %v10981_v13  ;;  %v10991_v18 = vld [vmem:[#allocation31_spill] sm:$0xff]  ;;  %v10992_v13 = vld [vmem:[#allocation32_spill] sm:$0xff] }
 0x7b6   : > { %6640 = vmatprep.subr.bf16.mxu0 %v10982_v16  ;;  %6672 = vmatprep.subr.bf16.mxu1 %v10983_v41  ;;  %v10993_v16 = vld [vmem:[#allocation33_spill] sm:$0xff]  ;;  %v10994_v41 = vld [vmem:[#allocation34_spill] sm:$0xff] }
 0x7b9   : > { %6642 = vmatpush1.bf16.msra.mxu0 %v10984_v30  ;;  %6674 = vmatpush1.bf16.msra.mxu1 %v10985_v59  ;;  %v10995_v30 = vld [vmem:[#allocation35_spill] sm:$0xff]  ;;  %v10996_v59 = vld [vmem:[#allocation36_spill] sm:$0xff] }
 0x7ba   : > { %6644 = vmatprep.subr.bf16.mxu0 %v10986_v61  ;;  %6676 = vmatprep.subr.bf16.mxu1 %v10987_v17  ;;  %v10997_v61 = vld [vmem:[#allocation37_spill] sm:$0xff]  ;;  %v10998_v17 = vld [vmem:[#allocation38_spill] sm:$0xff] }
 0x7bd   : > { %6646 = vmatpush1.bf16.msra.mxu0 %v10988_v1  ;;  %6678 = vmatpush1.bf16.msra.mxu1 %v10989_v52  ;;  %v10999_v1 = vld [vmem:[#allocation39_spill] sm:$0xff]  ;;  %v11000_v52 = vld [vmem:[#allocation40_spill] sm:$0xff] }
 0x7be   : > { %6648 = vmatprep.subr.bf16.mxu0 %v10990_v49  ;;  %6680 = vmatprep.subr.bf16.mxu1 %v10991_v18  ;;  %v11001_v49 = vld [vmem:[#allocation41_spill] sm:$0xff]  ;;  %v11002_v18 = vld [vmem:[#allocation42_spill] sm:$0xff] }
 0x7c1   : > { %6650 = vmatpush1.bf16.msra.mxu0 %v10992_v13  ;;  %6682 = vmatpush1.bf16.msra.mxu1 %v10993_v16  ;;  %v11003_v13 = vld [vmem:[#allocation43_spill] sm:$0xff]  ;;  %v11004_v16 = vld [vmem:[#allocation44_spill] sm:$0xff] }
 0x7c2   : > { %6652 = vmatprep.subr.bf16.mxu0 %v10994_v41  ;;  %6684 = vmatprep.subr.bf16.mxu1 %v10995_v30  ;;  %v11005_v41 = vld [vmem:[#allocation45_spill] sm:$0xff]  ;;  %v11006_v30 = vld [vmem:[#allocation46_spill] sm:$0xff] }
 0x7c5   : > { %6654 = vmatpush1.bf16.msra.mxu0 %v10996_v59  ;;  %6686 = vmatpush1.bf16.msra.mxu1 %v10997_v61  ;;  %v11007_v59 = vld [vmem:[#allocation47_spill] sm:$0xff] }
 0x7c6   : > { %6656 = vmatprep.subr.bf16.mxu0 %v10998_v17  ;;  %6688 = vmatprep.subr.bf16.mxu1 %v10999_v1 }
 0x7c9   : > { %6658 = vmatpush1.bf16.msra.mxu0 %v11000_v52  ;;  %6690 = vmatpush1.bf16.msra.mxu1 %v11001_v49 }
 0x7ca   : > { %6660 = vmatprep.subr.bf16.mxu0 %v11002_v18  ;;  %6692 = vmatprep.subr.bf16.mxu1 %v11003_v13 }
 0x7cd   : > { %6662 = vmatpush1.bf16.msra.mxu0 %v11004_v16  ;;  %6694 = vmatpush1.bf16.msra.mxu1 %v11005_v41 }
 0x7ce   : > { %6696 = vmatprep.subr.bf16.mxu0 %v11006_v30  ;;  %6760 = vmatprep.subr.bf16.mxu1 %v11007_v59 }
 0x83d   : > { %v3108_v61 = vpop.f32.mrb[14].mxu0  ;;  %v3179_v17 = vpop.f32.mrb[22].mxu1 }
 0x83e   : > { %v7565_v1 = vadd.f32 %v3108_v61, %v11008_v62  ;;  %v3110_v5 = vpop.f32.mrb[15].mxu0  ;;  %v3181_v52 = vpop.f32.mrb[23].mxu1  ;;  %v7595_v41 = vadd.f32 %v3179_v17, %v10711_v29 }
 0x83f   : > { %v7566_v49 = vadd.f32 %v3110_v5, %v10771_v9  ;;  %v7596_v16 = vadd.f32 %v3181_v52, %v10710_v3 }
 0x840   : > { %v5189_v11 = vmul.f32 -1.442695, %v7565_v1 }
 0x841   : > { %v5190_v18 = vmul.f32 -1.442695, %v7566_v49  ;;  %v5191_v13 = vmul.f32 -1.442695, %v7596_v16 }
 0x842   : > { %7915 = vpow2.f32 %v5189_v11 }
 0x843   : > { %7917 = vpow2.f32 %v5190_v18 }
 0x844   : > { %7919 = vpow2.f32 %v5191_v13 }
 0x845   : > { %7921 = vtanh.f32 %v7595_v41 }
 0x84c   : > { %v7916_v30 = vpop.eup %7915 }
 0x84d   : > { %v7918_v57 = vpop.eup %7917  ;;  %v3191_v59 = vadd.f32 1.0, %v7916_v30 }
 0x84e   : > { %v3197_v12 = vadd.f32 1.0, %v7918_v57  ;;  %v7920_v61 = vpop.eup %7919  ;;  %v11010_v57 = vld [vmem:[#allocation76_spill] sm:$0xff] }
 0x84f   : > { %7923 = vrcp.f32 %v3191_v59  ;;  %v7922_v62 = vpop.eup %7921  ;;  %v3204_v11 = vadd.f32 1.0, %v7920_v61  ;;  %v11013_v59 = vld [vmem:[#allocation81_spill] sm:$0xff] }
 0x850   : > { %7925 = vrcp.f32 %v3197_v12  ;;  %v11011_v12 = vld [vmem:[#allocation77_spill] sm:$0xff] }
 0x851   : > { %7927 = vrcp.f32 %v3204_v11 }
 0x859   : > { %v7924_v5 = vpop.eup %7923 }
 0x85a   : > { %v7926_v1 = vpop.eup %7925  ;;  %v3208_v49 = vmul.f32 %v7924_v5, %v7922_v62  ;;  %v11009_v62 = vld [vmem:[#allocation75_spill] sm:$0xff] }
 0x85b   : > { %v3207_v18 = vmul.f32 %v7926_v1, %v9504_v51  ;;  %v7928_v17 = vpop.eup %7927  ;;  %v11012_v51 = vld [vmem:[#allocation78_spill] sm:$0xff] }
 0x85d   : > { %v9624_v52 = vadd.f32 %v3208_v49, %v3207_v18 }
 0x85f   : > { %7929 = vtanh.f32 %v9624_v52 }
 0x869   : > { %v7930_v16 = vpop.eup %7929 }
 0x86a   : > { %v9627_v13 = vmul.f32 %v7930_v16, %v7928_v17 }
 0x86c   : > { %3450 = vmatmul.mubr.f32.vlgmr.msra.gmra.mrb[30].mxu0 %v9627_v13  ;;  %3521 = vmatmul.mubr.f32.vlgmr.msra.gmra.mrb[24].mxu1 %v9627_v13 }
 0x86d   : > { %6698 = vmatpush1.bf16.msra.mxu0 %v10713_v32  ;;  %6762 = vmatpush1.bf16.msra.mxu1 %v10772_v63 }
 0x86e   : > { %6700 = vmatprep.subr.bf16.mxu0 %v10773_v4  ;;  %6764 = vmatprep.subr.bf16.mxu1 %v10831_v42 }
 0x871   : > { %6702 = vmatpush1.bf16.msra.mxu0 %v10832_v54  ;;  %6766 = vmatpush1.bf16.msra.mxu1 %v10890_v24 }
 0x872   : > { %6704 = vmatprep.subr.bf16.mxu0 %v10891_v33  ;;  %6768 = vmatprep.subr.bf16.mxu1 %v10892_v7 }
 0x875   : > { %6706 = vmatpush1.bf16.msra.mxu0 %v10949_v23  ;;  %6770 = vmatpush1.bf16.msra.mxu1 %v10950_v44 }
 0x876   : > { %6708 = vmatprep.subr.bf16.mxu0 %v10951_v60  ;;  %6772 = vmatprep.subr.bf16.mxu1 %v10952_v37 }
 0x879   : > { %6710 = vmatpush1.bf16.msra.mxu0 %v10953_v27  ;;  %6774 = vmatpush1.bf16.msra.mxu1 %v10954_v26 }
 0x87a   : > { %6712 = vmatprep.subr.bf16.mxu0 %v11009_v62  ;;  %6776 = vmatprep.subr.bf16.mxu1 %v11010_v57 }
 0x87d   : > { %6714 = vmatpush1.bf16.msra.mxu0 %v11011_v12  ;;  %6778 = vmatpush1.bf16.msra.mxu1 %v11012_v51 }
 0x87e   : > { %6716 = vmatprep.subr.bf16.mxu0 %v10958_v50  ;;  %6780 = vmatprep.subr.bf16.mxu1 %v10904_v6 }
 0x881   : > { %6718 = vmatpush1.bf16.msra.mxu0 %v11013_v59  ;;  %6782 = vmatpush1.bf16.msra.mxu1 %v10905_v8 }
 0x882   : > { %6720 = vmatprep.subr.bf16.mxu0 %v10959_v34  ;;  %6784 = vmatprep.subr.bf16.mxu1 %v10850_v40 }
 0x883   : > { %v3278_v41 = vpop.f32.mrb[28].mxu0  ;;  %v3349_v30 = vpop.f32.mrb[44].mxu1 }
 0x884   : > { %v3279_v61 = vadd.f32 %v3278_v41, %v10960_v0  ;;  %v3280_v5 = vpop.f32.mrb[29].mxu0  ;;  %v3351_v1 = vpop.f32.mrb[45].mxu1  ;;  %v3350_v41 = vadd.f32 %v3349_v30, %v10743_v39  ;;  %v11014_v30 = vld [vmem:[#allocation105_spill] sm:$0xff] }
 0x885   : > { %v3281_v49 = vadd.f32 %v3280_v5, %v10849_v46  ;;  %6722 = vmatpush1.bf16.msra.mxu0 %v10851_v2  ;;  %6786 = vmatpush1.bf16.msra.mxu1 %v10852_v25  ;;  %v3352_v17 = vadd.f32 %v3351_v1, %v10797_v56 }
 0x886   : > { %v5192_v11 = vmul.f32 -1.442695, %v3279_v61  ;;  %6724 = vmatprep.subr.bf16.mxu0 %v10853_v15  ;;  %6788 = vmatprep.subr.bf16.mxu1 %v10796_v14 }
 0x887   : > { %v5193_v18 = vmul.f32 -1.442695, %v3281_v49  ;;  %v5194_v16 = vmul.f32 -1.442695, %v3352_v17  ;;  %v11017_v17 = vld [vmem:[#allocation108_spill] sm:$0xff] }
 0x888   : > { %7931 = vpow2.f32 %v5192_v11  ;;  %v11015_v11 = vld [vmem:[#allocation106_spill] sm:$0xff] }
 0x889   : > { %7933 = vpow2.f32 %v5193_v18  ;;  %6726 = vmatpush1.bf16.msra.mxu0 %v10907_v58  ;;  %6790 = vmatpush1.bf16.msra.mxu1 %v10908_v43  ;;  %v11016_v18 = vld [vmem:[#allocation107_spill] sm:$0xff] }
 0x88a   : > { %6728 = vmatprep.subr.bf16.mxu0 %v10799_v36  ;;  %6792 = vmatprep.subr.bf16.mxu1 %v10800_v19  ;;  %7935 = vpow2.f32 %v5194_v16 }
 0x88b   : > { %7937 = vtanh.f32 %v3350_v41  ;;  %v11018_v41 = vld [vmem:[#allocation109_spill] sm:$0xff] }
 0x88d   : > { %6730 = vmatpush1.bf16.msra.mxu0 %v10801_v10  ;;  %6794 = vmatpush1.bf16.msra.mxu1 %v10802_v21 }
 0x88e   : > { %6732 = vmatprep.subr.bf16.mxu0 %v10856_v20  ;;  %6796 = vmatprep.subr.bf16.mxu1 %v10747_v48 }
 0x891   : > { %6734 = vmatpush1.bf16.msra.mxu0 %v10748_v38  ;;  %6798 = vmatpush1.bf16.msra.mxu1 %v10749_v35 }
 0x892   : > { %v7932_v61 = vpop.eup %7931  ;;  %6736 = vmatprep.subr.bf16.mxu0 %v10750_v53  ;;  %6800 = vmatprep.subr.bf16.mxu1 %v10804_v28 }
 0x893   : > { %v7934_v5 = vpop.eup %7933  ;;  %v3357_v1 = vadd.f32 1.0, %v7932_v61 }
 0x894   : > { %v3363_v49 = vadd.f32 1.0, %v7934_v5  ;;  %v7936_v16 = vpop.eup %7935  ;;  %v11019_v5 = vld [vmem:[#allocation111_spill] sm:$0xff] }
 0x895   : > { %7939 = vrcp.f32 %v3357_v1  ;;  %6738 = vmatpush1.bf16.msra.mxu0 %v10909_v31  ;;  %6802 = vmatpush1.bf16.msra.mxu1 %v10858_v22  ;;  %v7938_v61 = vpop.eup %7937  ;;  %v11020_v1 = vld [vmem:[#allocation112_spill] sm:$0xff]  ;;  %v11021_v22 = vld [vmem:[#allocation123_spill] sm:$0xff]  ;;  %v11022_v31 = vld [vmem:[#allocation113_spill] sm:$0xff] }
 0x896   : > { %7941 = vrcp.f32 %v3363_v49  ;;  %6740 = vmatprep.subr.bf16.mxu0 %v10961_v47  ;;  %6804 = vmatprep.subr.bf16.mxu1 %v10910_v55 }
 0x899   : > { %6742 = vmatpush1.bf16.msra.mxu0 %v11014_v30  ;;  %6806 = vmatpush1.bf16.msra.mxu1 %v11015_v11  ;;  %v3370_v30 = vadd.f32 1.0, %v7936_v16  ;;  %v11029_v16 = vld [vmem:[#allocation119_spill] sm:$0xff] }
 0x89a   : > { %6744 = vmatprep.subr.bf16.mxu0 %v11016_v18  ;;  %6808 = vmatprep.subr.bf16.mxu1 %v11017_v17  ;;  %v11023_v18 = vld [vmem:[#allocation114_spill] sm:$0xff]  ;;  %v11024_v17 = vld [vmem:[#allocation115_spill] sm:$0xff] }
 0x89b   : > { %7943 = vrcp.f32 %v3370_v30 }
 0x89d   : > { %6746 = vmatpush1.bf16.msra.mxu0 %v11018_v41  ;;  %6810 = vmatpush1.bf16.msra.mxu1 %v10704_v45  ;;  %v11025_v41 = vld [vmem:[#allocation116_spill] sm:$0xff] }
 0x89e   : > { %6748 = vmatprep.subr.bf16.mxu0 %v11019_v5  ;;  %6812 = vmatprep.subr.bf16.mxu1 %v11020_v1  ;;  %v11027_v5 = vld [vmem:[#allocation117_spill] sm:$0xff]  ;;  %v11028_v1 = vld [vmem:[#allocation118_spill] sm:$0xff] }
 0x89f   : > { %v7940_v49 = vpop.eup %7939 }
 0x8a0   : > { %v7942_v55 = vpop.eup %7941  ;;  %v3374_v47 = vmul.f32 %v7940_v49, %v7938_v61  ;;  %v11032_v61 = vld [vmem:[#allocation122_spill] sm:$0xff] }
 0x8a1   : > { %v3373_v11 = vmul.f32 %v7942_v55, %v11021_v22  ;;  %6750 = vmatpush1.bf16.msra.mxu0 %v11022_v31  ;;  %6814 = vmatpush1.bf16.msra.mxu1 %v11023_v18  ;;  %v11030_v22 = vld [vmem:[#allocation120_spill] sm:$0xff]  ;;  %v11031_v55 = vld [vmem:[#allocation121_spill] sm:$0xff]  ;;  %v11033_v49 = vld [vmem:[#allocation14_spill] sm:$0xff] }
 0x8a2   : > { %6752 = vmatprep.subr.bf16.mxu0 %v11024_v17  ;;  %6816 = vmatprep.subr.bf16.mxu1 %v11025_v41  ;;  %v11034_v41 = vld [vmem:[#allocation15_spill] sm:$0xff] }
 0x8a3   : > { %v9692_v45 = vadd.f32 %v3374_v47, %v3373_v11 }
 0x8a5   : > { %11026 = vst [vmem:[#allocation61_spill] sm:$0xff] %v9692_v45  ;;  %6754 = vmatpush1.bf16.msra.mxu0 %v11027_v5  ;;  %6818 = vmatpush1.bf16.msra.mxu1 %v11028_v1  ;;  %7945 = vtanh.f32 %v9692_v45  ;;  %v7944_v47 = vpop.eup %7943  ;;  %v11049_v1 = vld [vmem:[#allocation29_spill] sm:$0xff] }
 0x8a6   : > { %6756 = vmatprep.subr.bf16.mxu0 %v11029_v16  ;;  %6820 = vmatprep.subr.bf16.mxu1 %v11030_v22  ;;  %v11035_v16 = vld [vmem:[#allocation16_spill] sm:$0xff]  ;;  %v11036_v22 = vld [vmem:[#allocation17_spill] sm:$0xff] }
 0x8a9   : > { %6758 = vmatpush1.bf16.msra.mxu0 %v11031_v55  ;;  %6822 = vmatpush1.bf16.msra.mxu1 %v11032_v61  ;;  %v11037_v55 = vld [vmem:[#allocation18_spill] sm:$0xff]  ;;  %v11038_v61 = vld [vmem:[#allocation19_spill] sm:$0xff] }
 0x8aa   : > { %6824 = vmatprep.subr.bf16.mxu0 %v11033_v49  ;;  %6856 = vmatprep.subr.bf16.mxu1 %v11034_v41  ;;  %v11039_v49 = vmov 0.0   ;;  %v11040_v41 = vld [vmem:[#allocation20_spill] sm:$0xff] }
 0x8af   : > { %v7946_v30 = vpop.eup %7945 }
 0x8b0   : > { %v3377_v11 = vmul.f32 %v7946_v30, %v7944_v47  ;;  %v11041_v47 = vld [vmem:[#allocation21_spill] sm:$0xff]  ;;  %v11042_v30 = vld [vmem:[#allocation22_spill] sm:$0xff] }
 0x8b2   : > { %3619 = vmatprep.mubr.f32.mxu0 %v3377_v11  ;;  %3690 = vmatprep.mubr.f32.mxu1 %v3377_v11  ;;  %v11043_v11 = vld [vmem:[#allocation23_spill] sm:$0xff] }
 0x8b3   : > { %3620 = vmatmul.mubr.f32.vlgmr.msra.gmra.mrb[32].mxu0 %v9627_v13  ;;  %3691 = vmatmul.mubr.f32.vlgmr.msra.gmra.mrb[46].mxu1 %v9627_v13  ;;  %v11044_v13 = vld [vmem:[#allocation24_spill] sm:$0xff] }
 0x8b4   : > { %6826 = vmatpush1.bf16.msra.mxu0 %v11035_v16  ;;  %6858 = vmatpush1.bf16.msra.mxu1 %v11036_v22  ;;  %v11045_v16 = vld [vmem:[#allocation25_spill] sm:$0xff]  ;;  %v11046_v22 = vld [vmem:[#allocation26_spill] sm:$0xff] }
 0x8b5   : > { %6828 = vmatprep.subr.bf16.mxu0 %v11037_v55  ;;  %6860 = vmatprep.subr.bf16.mxu1 %v11038_v61  ;;  %v11047_v55 = vld [vmem:[#allocation27_spill] sm:$0xff]  ;;  %v11048_v61 = vld [vmem:[#allocation28_spill] sm:$0xff] }
 0x8b6   : > { %3792 = vmatprep.mubr.f32.mxu0 %v11039_v49  ;;  %3863 = vmatprep.mubr.f32.mxu1 %v11039_v49  ;;  %v11050_v49 = vld [vmem:[#allocation30_spill] sm:$0xff] }
 0x8b8   : > { %6830 = vmatpush1.bf16.msra.mxu0 %v11040_v41  ;;  %6862 = vmatpush1.bf16.msra.mxu1 %v11041_v47  ;;  %v11051_v41 = vld [vmem:[#allocation31_spill] sm:$0xff]  ;;  %v11052_v47 = vld [vmem:[#allocation32_spill] sm:$0xff] }
 0x8b9   : > { %6832 = vmatprep.subr.bf16.mxu0 %v11042_v30  ;;  %6864 = vmatprep.subr.bf16.mxu1 %v11043_v11  ;;  %v11053_v30 = vld [vmem:[#allocation33_spill] sm:$0xff]  ;;  %v11054_v11 = vld [vmem:[#allocation34_spill] sm:$0xff] }
 0x8bc   : > { %6834 = vmatpush1.bf16.msra.mxu0 %v11044_v13  ;;  %6866 = vmatpush1.bf16.msra.mxu1 %v11045_v16  ;;  %v11055_v13 = vld [vmem:[#allocation35_spill] sm:$0xff]  ;;  %v11056_v16 = vld [vmem:[#allocation36_spill] sm:$0xff] }
 0x8bd   : > { %6836 = vmatprep.subr.bf16.mxu0 %v11046_v22  ;;  %6868 = vmatprep.subr.bf16.mxu1 %v11047_v55  ;;  %v11057_v22 = vld [vmem:[#allocation37_spill] sm:$0xff]  ;;  %v11058_v55 = vld [vmem:[#allocation38_spill] sm:$0xff] }
 0x8c0   : > { %6838 = vmatpush1.bf16.msra.mxu0 %v11048_v61  ;;  %6870 = vmatpush1.bf16.msra.mxu1 %v11049_v1  ;;  %v11059_v61 = vld [vmem:[#allocation39_spill] sm:$0xff]  ;;  %v11060_v1 = vld [vmem:[#allocation40_spill] sm:$0xff] }
 0x8c1   : > { %6840 = vmatprep.subr.bf16.mxu0 %v11050_v49  ;;  %6872 = vmatprep.subr.bf16.mxu1 %v11051_v41  ;;  %v11061_v49 = vld [vmem:[#allocation41_spill] sm:$0xff]  ;;  %v11062_v41 = vld [vmem:[#allocation42_spill] sm:$0xff] }
 0x8c4   : > { %6842 = vmatpush1.bf16.msra.mxu0 %v11052_v47  ;;  %6874 = vmatpush1.bf16.msra.mxu1 %v11053_v30  ;;  %v11063_v47 = vld [vmem:[#allocation43_spill] sm:$0xff]  ;;  %v11064_v30 = vld [vmem:[#allocation44_spill] sm:$0xff] }
 0x8c5   : > { %6844 = vmatprep.subr.bf16.mxu0 %v11054_v11  ;;  %6876 = vmatprep.subr.bf16.mxu1 %v11055_v13  ;;  %v11065_v11 = vld [vmem:[#allocation45_spill] sm:$0xff]  ;;  %v11066_v13 = vld [vmem:[#allocation46_spill] sm:$0xff] }
 0x8c8   : > { %6846 = vmatpush1.bf16.msra.mxu0 %v11056_v16  ;;  %6878 = vmatpush1.bf16.msra.mxu1 %v11057_v22  ;;  %v11067_v16 = vld [vmem:[#allocation47_spill] sm:$0xff]  ;;  %v11068_v22 = vld [vmem:[#allocation49_spill] sm:$0xff] }
 0x8c9   : > { %6848 = vmatprep.subr.bf16.mxu0 %v11058_v55  ;;  %6880 = vmatprep.subr.bf16.mxu1 %v11059_v61  ;;  %v11069_v55 = vld [vmem:[#allocation51_spill] sm:$0xff]  ;;  %v11070_v61 = vld [vmem:[#allocation52_spill] sm:$0xff] }
 0x8ca   : > { %v528_v5 = vadd.f32 %v11069_v55, %v11068_v22 }
 0x8cc   : > { %6850 = vmatpush1.bf16.msra.mxu0 %v11060_v1  ;;  %6882 = vmatpush1.bf16.msra.mxu1 %v11061_v49  ;;  %v530_v1 = vadd.f32 %v11070_v61, %v10771_v9 }
 0x8cd   : > { %6852 = vmatprep.subr.bf16.mxu0 %v11062_v41  ;;  %6884 = vmatprep.subr.bf16.mxu1 %v11063_v47 }
 0x8d0   : > { %6854 = vmatpush1.bf16.msra.mxu0 %v11064_v30  ;;  %6886 = vmatpush1.bf16.msra.mxu1 %v11065_v11 }
 0x8d1   : > { %6888 = vmatprep.subr.bf16.mxu0 %v11066_v13  ;;  %6952 = vmatprep.subr.bf16.mxu1 %v11067_v16 }
 0x93f   : > { %v3451_v17 = vpop.f32.mrb[30].mxu0  ;;  %v3522_v49 = vpop.f32.mrb[24].mxu1 }
 0x940   : > { %v3527_v45 = vadd.f32 %v3451_v17, %v528_v5  ;;  %v3453_v41 = vpop.f32.mrb[31].mxu0  ;;  %v3524_v18 = vpop.f32.mrb[25].mxu1  ;;  %v7597_v16 = vadd.f32 %v3522_v49, %v10711_v29 }
 0x941   : > { %v3528_v47 = vadd.f32 %v3453_v41, %v530_v1  ;;  %v7598_v13 = vadd.f32 %v3524_v18, %v10710_v3 }
 0x942   : > { %v5195_v31 = vmul.f32 -1.442695, %v3527_v45 }
 0x943   : > { %v5196_v30 = vmul.f32 -1.442695, %v3528_v47  ;;  %v5197_v11 = vmul.f32 -1.442695, %v7598_v13 }
 0x944   : > { %7947 = vpow2.f32 %v5195_v31 }
 0x945   : > { %7949 = vpow2.f32 %v5196_v30 }
 0x946   : > { %7951 = vpow2.f32 %v5197_v11 }
 0x947   : > { %7953 = vtanh.f32 %v7597_v16 }
 0x94e   : > { %v7948_v28 = vpop.eup %7947 }
 0x94f   : > { %v7950_v55 = vpop.eup %7949  ;;  %v3534_v22 = vadd.f32 1.0, %v7948_v28 }
 0x950   : > { %v3540_v61 = vadd.f32 1.0, %v7950_v55  ;;  %v7952_v17 = vpop.eup %7951 }
 0x951   : > { %7955 = vrcp.f32 %v3534_v22  ;;  %v7954_v5 = vpop.eup %7953  ;;  %v3547_v31 = vadd.f32 1.0, %v7952_v17 }
 0x952   : > { %7957 = vrcp.f32 %v3540_v61 }
 0x953   : > { %7959 = vrcp.f32 %v3547_v31 }
 0x95b   : > { %v7956_v41 = vpop.eup %7955 }
 0x95c   : > { %v7958_v45 = vpop.eup %7957  ;;  %v3551_v1 = vmul.f32 %v7956_v41, %v7954_v5 }
 0x95d   : > { %v3550_v47 = vmul.f32 %v7958_v45, %v9624_v52  ;;  %v7960_v49 = vpop.eup %7959 }
 0x95f   : > { %v9746_v18 = vadd.f32 %v3551_v1, %v3550_v47  ;;  %v11071_v1 = vld [vmem:[#allocation100_spill] sm:$0xff] }
 0x961   : > { %7961 = vtanh.f32 %v9746_v18 }
 0x96b   : > { %v7962_v28 = vpop.eup %7961 }
 0x96c   : > { %v9749_v30 = vmul.f32 %v7962_v28, %v7960_v49 }
 0x96e   : > { %3793 = vmatmul.mubr.f32.vlgmr.msra.gmra.mrb[34].mxu0 %v9749_v30  ;;  %3864 = vmatmul.mubr.f32.vlgmr.msra.gmra.mrb[26].mxu1 %v9749_v30 }
 0x96f   : > { %6890 = vmatpush1.bf16.msra.mxu0 %v10713_v32  ;;  %6954 = vmatpush1.bf16.msra.mxu1 %v10772_v63 }
 0x970   : > { %6892 = vmatprep.subr.bf16.mxu0 %v10773_v4  ;;  %6956 = vmatprep.subr.bf16.mxu1 %v10831_v42 }
 0x973   : > { %6894 = vmatpush1.bf16.msra.mxu0 %v10832_v54  ;;  %6958 = vmatpush1.bf16.msra.mxu1 %v10890_v24 }
 0x974   : > { %6896 = vmatprep.subr.bf16.mxu0 %v10891_v33  ;;  %6960 = vmatprep.subr.bf16.mxu1 %v10892_v7 }
 0x977   : > { %6898 = vmatpush1.bf16.msra.mxu0 %v10949_v23  ;;  %6962 = vmatpush1.bf16.msra.mxu1 %v10950_v44 }
 0x978   : > { %6900 = vmatprep.subr.bf16.mxu0 %v10951_v60  ;;  %6964 = vmatprep.subr.bf16.mxu1 %v10952_v37 }
 0x97b   : > { %6902 = vmatpush1.bf16.msra.mxu0 %v10953_v27  ;;  %6966 = vmatpush1.bf16.msra.mxu1 %v10954_v26 }
 0x97c   : > { %6904 = vmatprep.subr.bf16.mxu0 %v11009_v62  ;;  %6968 = vmatprep.subr.bf16.mxu1 %v11010_v57 }
 0x97f   : > { %6906 = vmatpush1.bf16.msra.mxu0 %v11011_v12  ;;  %6970 = vmatpush1.bf16.msra.mxu1 %v11012_v51 }
 0x980   : > { %6908 = vmatprep.subr.bf16.mxu0 %v10958_v50  ;;  %6972 = vmatprep.subr.bf16.mxu1 %v10904_v6 }
 0x983   : > { %6910 = vmatpush1.bf16.msra.mxu0 %v11013_v59  ;;  %6974 = vmatpush1.bf16.msra.mxu1 %v10905_v8 }
 0x984   : > { %6912 = vmatprep.subr.bf16.mxu0 %v10959_v34  ;;  %6976 = vmatprep.subr.bf16.mxu1 %v10850_v40 }
 0x986   : > { %v3621_v52 = vpop.f32.mrb[32].mxu0  ;;  %v3692_v16 = vpop.f32.mrb[46].mxu1 }
 0x987   : > { %v3622_v22 = vadd.f32 %v3621_v52, %v10960_v0  ;;  %v3623_v11 = vpop.f32.mrb[33].mxu0  ;;  %v3694_v13 = vpop.f32.mrb[47].mxu1  ;;  %6914 = vmatpush1.bf16.msra.mxu0 %v10851_v2  ;;  %6978 = vmatpush1.bf16.msra.mxu1 %v10852_v25  ;;  %v3693_v45 = vadd.f32 %v3692_v16, %v10743_v39  ;;  %v11072_v52 = vld [vmem:[#allocation101_spill] sm:$0xff]  ;;  %v11074_v16 = vld [vmem:[#allocation103_spill] sm:$0xff] }
 0x988   : > { %v3624_v55 = vadd.f32 %v3623_v11, %v10849_v46  ;;  %6916 = vmatprep.subr.bf16.mxu0 %v10853_v15  ;;  %6980 = vmatprep.subr.bf16.mxu1 %v10796_v14  ;;  %v3695_v5 = vadd.f32 %v3694_v13, %v10797_v56  ;;  %v11075_v11 = vld [vmem:[#allocation104_spill] sm:$0xff]  ;;  %v11076_v13 = vld [vmem:[#allocation105_spill] sm:$0xff] }
 0x989   : > { %v5198_v61 = vmul.f32 -1.442695, %v3622_v22  ;;  %v11073_v22 = vld [vmem:[#allocation102_spill] sm:$0xff] }
 0x98a   : > { %v5199_v17 = vmul.f32 -1.442695, %v3624_v55  ;;  %v5200_v41 = vmul.f32 -1.442695, %v3695_v5  ;;  %v11077_v55 = vld [vmem:[#allocation106_spill] sm:$0xff]  ;;  %v11080_v5 = vld [vmem:[#allocation109_spill] sm:$0xff] }
 0x98b   : > { %7963 = vpow2.f32 %v5198_v61  ;;  %6918 = vmatpush1.bf16.msra.mxu0 %v10907_v58  ;;  %6982 = vmatpush1.bf16.msra.mxu1 %v10908_v43  ;;  %v11078_v61 = vld [vmem:[#allocation107_spill] sm:$0xff] }
 0x98c   : > { %7965 = vpow2.f32 %v5199_v17  ;;  %6920 = vmatprep.subr.bf16.mxu0 %v10799_v36  ;;  %6984 = vmatprep.subr.bf16.mxu1 %v10800_v19  ;;  %v11079_v17 = vld [vmem:[#allocation108_spill] sm:$0xff] }
 0x98d   : > { %7967 = vpow2.f32 %v5200_v41  ;;  %v11081_v41 = vld [vmem:[#allocation110_spill] sm:$0xff] }
 0x98e   : > { %7969 = vtanh.f32 %v3693_v45 }
 0x98f   : > { %6922 = vmatpush1.bf16.msra.mxu0 %v10801_v10  ;;  %6986 = vmatpush1.bf16.msra.mxu1 %v10802_v21 }
 0x990   : > { %6924 = vmatprep.subr.bf16.mxu0 %v10856_v20  ;;  %6988 = vmatprep.subr.bf16.mxu1 %v10747_v48 }
 0x993   : > { %6926 = vmatpush1.bf16.msra.mxu0 %v10748_v38  ;;  %6990 = vmatpush1.bf16.msra.mxu1 %v10749_v35 }
 0x994   : > { %6928 = vmatprep.subr.bf16.mxu0 %v10750_v53  ;;  %6992 = vmatprep.subr.bf16.mxu1 %v11071_v1  ;;  %v11092_v1 = vld [vmem:[#allocation119_spill] sm:$0xff] }
 0x995   : > { %v7964_v31 = vpop.eup %7963 }
 0x996   : > { %v7966_v47 = vpop.eup %7965  ;;  %v3700_v49 = vadd.f32 1.0, %v7964_v31  ;;  %v11082_v31 = vld [vmem:[#allocation111_spill] sm:$0xff] }
 0x997   : > { %v3706_v28 = vadd.f32 1.0, %v7966_v47  ;;  %6930 = vmatpush1.bf16.msra.mxu0 %v11072_v52  ;;  %6994 = vmatpush1.bf16.msra.mxu1 %v11073_v22  ;;  %v7968_v45 = vpop.eup %7967  ;;  %v11083_v47 = vld [vmem:[#allocation112_spill] sm:$0xff]  ;;  %v11084_v22 = vld [vmem:[#allocation113_spill] sm:$0xff]  ;;  %v11087_v52 = vld [vmem:[#allocation115_spill] sm:$0xff] }
 0x998   : > { %7971 = vrcp.f32 %v3700_v49  ;;  %6932 = vmatprep.subr.bf16.mxu0 %v11074_v16  ;;  %6996 = vmatprep.subr.bf16.mxu1 %v11075_v11  ;;  %v7970_v49 = vpop.eup %7969 }
 0x999   : > { %7973 = vrcp.f32 %v3706_v28 }
 0x99b   : > { %6934 = vmatpush1.bf16.msra.mxu0 %v11076_v13  ;;  %6998 = vmatpush1.bf16.msra.mxu1 %v11077_v55  ;;  %v3713_v13 = vadd.f32 1.0, %v7968_v45  ;;  %v11085_v55 = vld [vmem:[#allocation114_spill] sm:$0xff]  ;;  %v11094_v45 = vld [vmem:[#allocation121_spill] sm:$0xff] }
 0x99c   : > { %6936 = vmatprep.subr.bf16.mxu0 %v11078_v61  ;;  %7000 = vmatprep.subr.bf16.mxu1 %v11079_v17  ;;  %v11086_v61 = vld [vmem:[#allocation61_spill] sm:$0xff] }
 0x99d   : > { %7975 = vrcp.f32 %v3713_v13 }
 0x99f   : > { %6938 = vmatpush1.bf16.msra.mxu0 %v11080_v5  ;;  %7002 = vmatpush1.bf16.msra.mxu1 %v11081_v41  ;;  %v11088_v5 = vld [vmem:[#allocation116_spill] sm:$0xff] }
 0x9a0   : > { %6940 = vmatprep.subr.bf16.mxu0 %v11082_v31  ;;  %7004 = vmatprep.subr.bf16.mxu1 %v11083_v47  ;;  %v11090_v31 = vld [vmem:[#allocation117_spill] sm:$0xff]  ;;  %v11091_v47 = vld [vmem:[#allocation118_spill] sm:$0xff] }
 0x9a2   : > { %v7972_v11 = vpop.eup %7971 }
 0x9a3   : > { %v7974_v28 = vpop.eup %7973  ;;  %v3717_v16 = vmul.f32 %v7972_v11, %v7970_v49  ;;  %6942 = vmatpush1.bf16.msra.mxu0 %v11084_v22  ;;  %7006 = vmatpush1.bf16.msra.mxu1 %v11085_v55  ;;  %v11093_v11 = vld [vmem:[#allocation120_spill] sm:$0xff]  ;;  %v11096_v49 = vld [vmem:[#allocation14_spill] sm:$0xff] }
 0x9a4   : > { %v3716_v17 = vmul.f32 %v7974_v28, %v11086_v61  ;;  %6944 = vmatprep.subr.bf16.mxu0 %v11087_v52  ;;  %7008 = vmatprep.subr.bf16.mxu1 %v11088_v5  ;;  %v11095_v61 = vld [vmem:[#allocation122_spill] sm:$0xff]  ;;  %v11097_v28 = vld [vmem:[#allocation15_spill] sm:$0xff] }
 0x9a6   : > { %v9814_v41 = vadd.f32 %v3717_v16, %v3716_v17 }
 0x9a7   : > { %6946 = vmatpush1.bf16.msra.mxu0 %v11090_v31  ;;  %7010 = vmatpush1.bf16.msra.mxu1 %v11091_v47  ;;  %v7976_v16 = vpop.eup %7975  ;;  %v11112_v47 = vld [vmem:[#allocation29_spill] sm:$0xff] }
 0x9a8   : > { %11089 = vst [vmem:[#allocation96_spill] sm:$0xff] %v9814_v41  ;;  %6948 = vmatprep.subr.bf16.mxu0 %v11092_v1  ;;  %7012 = vmatprep.subr.bf16.mxu1 %v11093_v11  ;;  %7977 = vtanh.f32 %v9814_v41  ;;  %v11098_v11 = vld [vmem:[#allocation16_spill] sm:$0xff]  ;;  %v11099_v1 = vld [vmem:[#allocation17_spill] sm:$0xff] }
 0x9ab   : > { %6950 = vmatpush1.bf16.msra.mxu0 %v11094_v45  ;;  %7014 = vmatpush1.bf16.msra.mxu1 %v11095_v61  ;;  %v11100_v45 = vld [vmem:[#allocation18_spill] sm:$0xff]  ;;  %v11101_v61 = vld [vmem:[#allocation19_spill] sm:$0xff] }
 0x9ac   : > { %7016 = vmatprep.subr.bf16.mxu0 %v11096_v49  ;;  %7048 = vmatprep.subr.bf16.mxu1 %v11097_v28  ;;  %v11102_v49 = vmov 0.0   ;;  %v11103_v28 = vld [vmem:[#allocation20_spill] sm:$0xff] }
 0x9b2   : > { %v7978_v13 = vpop.eup %7977 }
 0x9b3   : > { %v3720_v17 = vmul.f32 %v7978_v13, %v7976_v16  ;;  %v11104_v16 = vld [vmem:[#allocation21_spill] sm:$0xff]  ;;  %v11105_v13 = vld [vmem:[#allocation22_spill] sm:$0xff] }
 0x9b5   : > { %3962 = vmatprep.mubr.f32.mxu0 %v3720_v17  ;;  %4033 = vmatprep.mubr.f32.mxu1 %v3720_v17  ;;  %v11106_v17 = vld [vmem:[#allocation23_spill] sm:$0xff] }
 0x9b6   : > { %3963 = vmatmul.mubr.f32.vlgmr.msra.gmra.mrb[36].mxu0 %v9749_v30  ;;  %4034 = vmatmul.mubr.f32.vlgmr.msra.gmra.mrb[48].mxu1 %v9749_v30  ;;  %v11107_v30 = vld [vmem:[#allocation24_spill] sm:$0xff] }
 0x9b7   : > { %7018 = vmatpush1.bf16.msra.mxu0 %v11098_v11  ;;  %7050 = vmatpush1.bf16.msra.mxu1 %v11099_v1  ;;  %v11108_v11 = vld [vmem:[#allocation25_spill] sm:$0xff]  ;;  %v11109_v1 = vld [vmem:[#allocation26_spill] sm:$0xff] }
 0x9b8   : > { %7020 = vmatprep.subr.bf16.mxu0 %v11100_v45  ;;  %7052 = vmatprep.subr.bf16.mxu1 %v11101_v61  ;;  %v11110_v45 = vld [vmem:[#allocation27_spill] sm:$0xff]  ;;  %v11111_v61 = vld [vmem:[#allocation28_spill] sm:$0xff] }
 0x9b9   : > { %4135 = vmatprep.mubr.f32.mxu0 %v11102_v49  ;;  %4206 = vmatprep.mubr.f32.mxu1 %v11102_v49  ;;  %v11113_v49 = vld [vmem:[#allocation30_spill] sm:$0xff] }
 0x9bb   : > { %7022 = vmatpush1.bf16.msra.mxu0 %v11103_v28  ;;  %7054 = vmatpush1.bf16.msra.mxu1 %v11104_v16  ;;  %v11114_v28 = vld [vmem:[#allocation31_spill] sm:$0xff]  ;;  %v11115_v16 = vld [vmem:[#allocation32_spill] sm:$0xff] }
 0x9bc   : > { %7024 = vmatprep.subr.bf16.mxu0 %v11105_v13  ;;  %7056 = vmatprep.subr.bf16.mxu1 %v11106_v17  ;;  %v11116_v13 = vld [vmem:[#allocation33_spill] sm:$0xff]  ;;  %v11117_v17 = vld [vmem:[#allocation34_spill] sm:$0xff] }
 0x9bf   : > { %7026 = vmatpush1.bf16.msra.mxu0 %v11107_v30  ;;  %7058 = vmatpush1.bf16.msra.mxu1 %v11108_v11  ;;  %v11118_v30 = vld [vmem:[#allocation35_spill] sm:$0xff]  ;;  %v11119_v11 = vld [vmem:[#allocation36_spill] sm:$0xff] }
 0x9c0   : > { %7028 = vmatprep.subr.bf16.mxu0 %v11109_v1  ;;  %7060 = vmatprep.subr.bf16.mxu1 %v11110_v45  ;;  %v11120_v1 = vld [vmem:[#allocation37_spill] sm:$0xff]  ;;  %v11121_v45 = vld [vmem:[#allocation38_spill] sm:$0xff] }
 0x9c3   : > { %7030 = vmatpush1.bf16.msra.mxu0 %v11111_v61  ;;  %7062 = vmatpush1.bf16.msra.mxu1 %v11112_v47  ;;  %v11122_v61 = vld [vmem:[#allocation39_spill] sm:$0xff]  ;;  %v11123_v47 = vld [vmem:[#allocation40_spill] sm:$0xff] }
 0x9c4   : > { %7032 = vmatprep.subr.bf16.mxu0 %v11113_v49  ;;  %7064 = vmatprep.subr.bf16.mxu1 %v11114_v28  ;;  %v11124_v49 = vld [vmem:[#allocation41_spill] sm:$0xff]  ;;  %v11125_v28 = vld [vmem:[#allocation42_spill] sm:$0xff] }
 0x9c7   : > { %7034 = vmatpush1.bf16.msra.mxu0 %v11115_v16  ;;  %7066 = vmatpush1.bf16.msra.mxu1 %v11116_v13  ;;  %v11126_v16 = vld [vmem:[#allocation43_spill] sm:$0xff]  ;;  %v11127_v13 = vld [vmem:[#allocation44_spill] sm:$0xff] }
 0x9c8   : > { %7036 = vmatprep.subr.bf16.mxu0 %v11117_v17  ;;  %7068 = vmatprep.subr.bf16.mxu1 %v11118_v30  ;;  %v11128_v17 = vld [vmem:[#allocation45_spill] sm:$0xff]  ;;  %v11129_v30 = vld [vmem:[#allocation46_spill] sm:$0xff] }
 0x9cb   : > { %7038 = vmatpush1.bf16.msra.mxu0 %v11119_v11  ;;  %7070 = vmatpush1.bf16.msra.mxu1 %v11120_v1  ;;  %v11130_v11 = vld [vmem:[#allocation47_spill] sm:$0xff]  ;;  %v11131_v1 = vld [vmem:[#allocation49_spill] sm:$0xff] }
 0x9cc   : > { %7040 = vmatprep.subr.bf16.mxu0 %v11121_v45  ;;  %7072 = vmatprep.subr.bf16.mxu1 %v11122_v61  ;;  %v11132_v45 = vld [vmem:[#allocation53_spill] sm:$0xff]  ;;  %v11133_v61 = vld [vmem:[#allocation54_spill] sm:$0xff] }
 0x9cd   : > { %v534_v31 = vadd.f32 %v11132_v45, %v11131_v1 }
 0x9cf   : > { %7042 = vmatpush1.bf16.msra.mxu0 %v11123_v47  ;;  %7074 = vmatpush1.bf16.msra.mxu1 %v11124_v49  ;;  %v536_v47 = vadd.f32 %v11133_v61, %v10771_v9 }
 0x9d0   : > { %7044 = vmatprep.subr.bf16.mxu0 %v11125_v28  ;;  %7076 = vmatprep.subr.bf16.mxu1 %v11126_v16 }
 0x9d3   : > { %7046 = vmatpush1.bf16.msra.mxu0 %v11127_v13  ;;  %7078 = vmatpush1.bf16.msra.mxu1 %v11128_v17 }
 0x9d4   : > { %7080 = vmatprep.subr.bf16.mxu0 %v11129_v30  ;;  %7144 = vmatprep.subr.bf16.mxu1 %v11130_v11 }
 0xa41   : > { %v3794_v41 = vpop.f32.mrb[34].mxu0  ;;  %v3865_v49 = vpop.f32.mrb[26].mxu1 }
 0xa42   : > { %v3870_v5 = vadd.f32 %v3794_v41, %v534_v31  ;;  %v3796_v28 = vpop.f32.mrb[35].mxu0  ;;  %v3867_v52 = vpop.f32.mrb[27].mxu1  ;;  %v7599_v11 = vadd.f32 %v3865_v49, %v10711_v29 }
 0xa43   : > { %v3871_v16 = vadd.f32 %v3796_v28, %v536_v47  ;;  %v7600_v30 = vadd.f32 %v3867_v52, %v10710_v3 }
 0xa44   : > { %v5201_v55 = vmul.f32 -1.442695, %v3870_v5 }
 0xa45   : > { %v5202_v13 = vmul.f32 -1.442695, %v3871_v16  ;;  %v5203_v17 = vmul.f32 -1.442695, %v7600_v30 }
 0xa46   : > { %7979 = vpow2.f32 %v5201_v55 }
 0xa47   : > { %7981 = vpow2.f32 %v5202_v13 }
 0xa48   : > { %7983 = vpow2.f32 %v5203_v17 }
 0xa49   : > { %7985 = vtanh.f32 %v7599_v11 }
 0xa50   : > { %v7980_v22 = vpop.eup %7979 }
 0xa51   : > { %v7982_v45 = vpop.eup %7981  ;;  %v3877_v1 = vadd.f32 1.0, %v7980_v22 }
 0xa52   : > { %v3883_v61 = vadd.f32 1.0, %v7982_v45  ;;  %v7984_v41 = vpop.eup %7983 }
 0xa53   : > { %7987 = vrcp.f32 %v3877_v1  ;;  %v7986_v31 = vpop.eup %7985  ;;  %v3890_v55 = vadd.f32 1.0, %v7984_v41 }
 0xa54   : > { %7989 = vrcp.f32 %v3883_v61 }
 0xa55   : > { %7991 = vrcp.f32 %v3890_v55 }
 0xa5d   : > { %v7988_v47 = vpop.eup %7987 }
 0xa5e   : > { %v7990_v5 = vpop.eup %7989  ;;  %v3894_v28 = vmul.f32 %v7988_v47, %v7986_v31 }
 0xa5f   : > { %v3893_v16 = vmul.f32 %v7990_v5, %v9746_v18  ;;  %v7992_v49 = vpop.eup %7991 }
 0xa61   : > { %v9868_v52 = vadd.f32 %v3894_v28, %v3893_v16  ;;  %v11134_v28 = vld [vmem:[#allocation100_spill] sm:$0xff] }
 0xa63   : > { %7993 = vtanh.f32 %v9868_v52 }
 0xa6d   : > { %v7994_v22 = vpop.eup %7993 }
 0xa6e   : > { %v9871_v13 = vmul.f32 %v7994_v22, %v7992_v49  ;;  %v11135_v22 = vld [vmem:[#allocation101_spill] sm:$0xff] }
 0xa70   : > { %4136 = vmatmul.mubr.f32.vlgmr.msra.gmra.mrb[38].mxu0 %v9871_v13  ;;  %4207 = vmatmul.mubr.f32.vlgmr.msra.gmra.mrb[28].mxu1 %v9871_v13 }
 0xa71   : > { %7082 = vmatpush1.bf16.msra.mxu0 %v10713_v32  ;;  %7146 = vmatpush1.bf16.msra.mxu1 %v10772_v63 }
 0xa72   : > { %7084 = vmatprep.subr.bf16.mxu0 %v10773_v4  ;;  %7148 = vmatprep.subr.bf16.mxu1 %v10831_v42 }
 0xa75   : > { %7086 = vmatpush1.bf16.msra.mxu0 %v10832_v54  ;;  %7150 = vmatpush1.bf16.msra.mxu1 %v10890_v24 }
 0xa76   : > { %7088 = vmatprep.subr.bf16.mxu0 %v10891_v33  ;;  %7152 = vmatprep.subr.bf16.mxu1 %v10892_v7 }
 0xa79   : > { %7090 = vmatpush1.bf16.msra.mxu0 %v10949_v23  ;;  %7154 = vmatpush1.bf16.msra.mxu1 %v10950_v44 }
 0xa7a   : > { %7092 = vmatprep.subr.bf16.mxu0 %v10951_v60  ;;  %7156 = vmatprep.subr.bf16.mxu1 %v10952_v37 }
 0xa7d   : > { %7094 = vmatpush1.bf16.msra.mxu0 %v10953_v27  ;;  %7158 = vmatpush1.bf16.msra.mxu1 %v10954_v26 }
 0xa7e   : > { %7096 = vmatprep.subr.bf16.mxu0 %v11009_v62  ;;  %7160 = vmatprep.subr.bf16.mxu1 %v11010_v57 }
 0xa81   : > { %7098 = vmatpush1.bf16.msra.mxu0 %v11011_v12  ;;  %7162 = vmatpush1.bf16.msra.mxu1 %v11012_v51 }
 0xa82   : > { %7100 = vmatprep.subr.bf16.mxu0 %v10958_v50  ;;  %7164 = vmatprep.subr.bf16.mxu1 %v10904_v6 }
 0xa85   : > { %7102 = vmatpush1.bf16.msra.mxu0 %v11013_v59  ;;  %7166 = vmatpush1.bf16.msra.mxu1 %v10905_v8 }
 0xa86   : > { %7104 = vmatprep.subr.bf16.mxu0 %v10959_v34  ;;  %7168 = vmatprep.subr.bf16.mxu1 %v10850_v40 }
 0xa89   : > { %v3964_v18 = vpop.f32.mrb[36].mxu0  ;;  %v4035_v1 = vpop.f32.mrb[48].mxu1  ;;  %7106 = vmatpush1.bf16.msra.mxu0 %v10851_v2  ;;  %7170 = vmatpush1.bf16.msra.mxu1 %v10852_v25 }
 0xa8a   : > { %v3965_v11 = vadd.f32 %v3964_v18, %v10960_v0  ;;  %v3966_v17 = vpop.f32.mrb[37].mxu0  ;;  %v4037_v30 = vpop.f32.mrb[49].mxu1  ;;  %7108 = vmatprep.subr.bf16.mxu0 %v10853_v15  ;;  %7172 = vmatprep.subr.bf16.mxu1 %v10796_v14  ;;  %v4036_v5 = vadd.f32 %v4035_v1, %v10743_v39  ;;  %v11136_v18 = vld [vmem:[#allocation102_spill] sm:$0xff]  ;;  %v11139_v1 = vld [vmem:[#allocation105_spill] sm:$0xff]  ;;  %v11155_v39 = vld [vmem:[#allocation119_spill] sm:$0xff] }
 0xa8b   : > { %v3967_v45 = vadd.f32 %v3966_v17, %v10849_v46  ;;  %v4038_v31 = vadd.f32 %v4037_v30, %v10797_v56  ;;  %v11137_v17 = vld [vmem:[#allocation103_spill] sm:$0xff]  ;;  %v11138_v30 = vld [vmem:[#allocation104_spill] sm:$0xff] }
 0xa8c   : > { %v5204_v61 = vmul.f32 -1.442695, %v3965_v11 }
 0xa8d   : > { %v5205_v41 = vmul.f32 -1.442695, %v3967_v45  ;;  %7110 = vmatpush1.bf16.msra.mxu0 %v10907_v58  ;;  %7174 = vmatpush1.bf16.msra.mxu1 %v10908_v43  ;;  %v5206_v47 = vmul.f32 -1.442695, %v4038_v31  ;;  %v11140_v45 = vld [vmem:[#allocation106_spill] sm:$0xff]  ;;  %v11143_v31 = vld [vmem:[#allocation109_spill] sm:$0xff] }
 0xa8e   : > { %7995 = vpow2.f32 %v5204_v61  ;;  %7112 = vmatprep.subr.bf16.mxu0 %v10799_v36  ;;  %7176 = vmatprep.subr.bf16.mxu1 %v10800_v19  ;;  %v11141_v61 = vld [vmem:[#allocation107_spill] sm:$0xff] }
 0xa8f   : > { %7997 = vpow2.f32 %v5205_v41  ;;  %v11142_v41 = vld [vmem:[#allocation108_spill] sm:$0xff] }
 0xa90   : > { %7999 = vpow2.f32 %v5206_v47  ;;  %v11144_v47 = vld [vmem:[#allocation110_spill] sm:$0xff] }
 0xa91   : > { %7114 = vmatpush1.bf16.msra.mxu0 %v10801_v10  ;;  %7178 = vmatpush1.bf16.msra.mxu1 %v10802_v21  ;;  %8001 = vtanh.f32 %v4036_v5  ;;  %v11145_v5 = vld [vmem:[#allocation111_spill] sm:$0xff] }
 0xa92   : > { %7116 = vmatprep.subr.bf16.mxu0 %v10856_v20  ;;  %7180 = vmatprep.subr.bf16.mxu1 %v10747_v48 }
 0xa95   : > { %7118 = vmatpush1.bf16.msra.mxu0 %v10748_v38  ;;  %7182 = vmatpush1.bf16.msra.mxu1 %v10749_v35 }
 0xa96   : > { %7120 = vmatprep.subr.bf16.mxu0 %v10750_v53  ;;  %7184 = vmatprep.subr.bf16.mxu1 %v11134_v28 }
 0xa98   : > { %v7996_v55 = vpop.eup %7995 }
 0xa99   : > { %v7998_v16 = vpop.eup %7997  ;;  %v4043_v49 = vadd.f32 1.0, %v7996_v55  ;;  %7122 = vmatpush1.bf16.msra.mxu0 %v11135_v22  ;;  %7186 = vmatpush1.bf16.msra.mxu1 %v11136_v18  ;;  %v11146_v55 = vld [vmem:[#allocation112_spill] sm:$0xff]  ;;  %v11149_v18 = vld [vmem:[#allocation115_spill] sm:$0xff]  ;;  %v11152_v22 = vld [vmem:[#allocation117_spill] sm:$0xff] }
 0xa9a   : > { %v4049_v11 = vadd.f32 1.0, %v7998_v16  ;;  %7124 = vmatprep.subr.bf16.mxu0 %v11137_v17  ;;  %7188 = vmatprep.subr.bf16.mxu1 %v11138_v30  ;;  %v8000_v16 = vpop.eup %7999 }
 0xa9b   : > { %8003 = vrcp.f32 %v4043_v49  ;;  %v8002_v30 = vpop.eup %8001 }
 0xa9c   : > { %8005 = vrcp.f32 %v4049_v11  ;;  %v11147_v11 = vld [vmem:[#allocation113_spill] sm:$0xff] }
 0xa9d   : > { %7126 = vmatpush1.bf16.msra.mxu0 %v11139_v1  ;;  %7190 = vmatpush1.bf16.msra.mxu1 %v11140_v45  ;;  %v11148_v1 = vld [vmem:[#allocation114_spill] sm:$0xff] }
 0xa9e   : > { %7128 = vmatprep.subr.bf16.mxu0 %v11141_v61  ;;  %7192 = vmatprep.subr.bf16.mxu1 %v11142_v41  ;;  %v4056_v61 = vadd.f32 1.0, %v8000_v16  ;;  %v11150_v41 = vld [vmem:[#allocation116_spill] sm:$0xff]  ;;  %v11158_v16 = vld [vmem:[#allocation122_spill] sm:$0xff] }
 0xaa0   : > { %8007 = vrcp.f32 %v4056_v61  ;;  %v11162_v61 = vld [vmem:[#allocation17_spill] sm:$0xff] }
 0xaa1   : > { %7130 = vmatpush1.bf16.msra.mxu0 %v11143_v31  ;;  %7194 = vmatpush1.bf16.msra.mxu1 %v11144_v47  ;;  %v11151_v31 = vld [vmem:[#allocation96_spill] sm:$0xff] }
 0xaa2   : > { %7132 = vmatprep.subr.bf16.mxu0 %v11145_v5  ;;  %7196 = vmatprep.subr.bf16.mxu1 %v11146_v55  ;;  %v11153_v5 = vld [vmem:[#allocation118_spill] sm:$0xff] }
 0xaa5   : > { %v8004_v49 = vpop.eup %8003  ;;  %7134 = vmatpush1.bf16.msra.mxu0 %v11147_v11  ;;  %7198 = vmatpush1.bf16.msra.mxu1 %v11148_v1  ;;  %v11156_v11 = vld [vmem:[#allocation120_spill] sm:$0xff] }
 0xaa6   : > { %v8006_v45 = vpop.eup %8005  ;;  %v4060_v17 = vmul.f32 %v8004_v49, %v8002_v30  ;;  %7136 = vmatprep.subr.bf16.mxu0 %v11149_v18  ;;  %7200 = vmatprep.subr.bf16.mxu1 %v11150_v41  ;;  %v11157_v30 = vld [vmem:[#allocation121_spill] sm:$0xff]  ;;  %v11159_v49 = vld [vmem:[#allocation14_spill] sm:$0xff] }
 0xaa7   : > { %v4059_v47 = vmul.f32 %v8006_v45, %v11151_v31  ;;  %v11160_v45 = vld [vmem:[#allocation15_spill] sm:$0xff] }
 0xaa9   : > { %7138 = vmatpush1.bf16.msra.mxu0 %v11152_v22  ;;  %7202 = vmatpush1.bf16.msra.mxu1 %v11153_v5  ;;  %v9938_v55 = vadd.f32 %v4060_v17, %v4059_v47  ;;  %v11161_v17 = vld [vmem:[#allocation16_spill] sm:$0xff]  ;;  %v11163_v47 = vld [vmem:[#allocation18_spill] sm:$0xff] }
 0xaaa   : > { %7140 = vmatprep.subr.bf16.mxu0 %v11155_v39  ;;  %7204 = vmatprep.subr.bf16.mxu1 %v11156_v11  ;;  %v8008_v31 = vpop.eup %8007 }
 0xaab   : > { %11154 = vst [vmem:[#allocation97_spill] sm:$0xff] %v9938_v55  ;;  %8009 = vtanh.f32 %v9938_v55 }
 0xaad   : > { %7142 = vmatpush1.bf16.msra.mxu0 %v11157_v30  ;;  %7206 = vmatpush1.bf16.msra.mxu1 %v11158_v16  ;;  %v11164_v16 = vld [vmem:[#allocation19_spill] sm:$0xff]  ;;  %v11175_v30 = vld [vmem:[#allocation29_spill] sm:$0xff] }
 0xaae   : > { %7208 = vmatprep.subr.bf16.mxu0 %v11159_v49  ;;  %7240 = vmatprep.subr.bf16.mxu1 %v11160_v45  ;;  %v11165_v49 = vmov 0.0   ;;  %v11166_v45 = vld [vmem:[#allocation20_spill] sm:$0xff] }
 0xab5   : > { %v8010_v22 = vpop.eup %8009 }
 0xab6   : > { %v4063_v5 = vmul.f32 %v8010_v22, %v8008_v31  ;;  %v11167_v22 = vld [vmem:[#allocation21_spill] sm:$0xff]  ;;  %v11169_v31 = vld [vmem:[#allocation23_spill] sm:$0xff] }
 0xab8   : > { %4305 = vmatprep.mubr.f32.mxu0 %v4063_v5  ;;  %4376 = vmatprep.mubr.f32.mxu1 %v4063_v5  ;;  %v11168_v5 = vld [vmem:[#allocation22_spill] sm:$0xff] }
 0xab9   : > { %4306 = vmatmul.mubr.f32.vlgmr.msra.gmra.mrb[40].mxu0 %v9871_v13  ;;  %4377 = vmatmul.mubr.f32.vlgmr.msra.gmra.mrb[50].mxu1 %v9871_v13  ;;  %v11170_v13 = vld [vmem:[#allocation24_spill] sm:$0xff] }
 0xaba   : > { %7210 = vmatpush1.bf16.msra.mxu0 %v11161_v17  ;;  %7242 = vmatpush1.bf16.msra.mxu1 %v11162_v61  ;;  %v11171_v17 = vld [vmem:[#allocation25_spill] sm:$0xff]  ;;  %v11172_v61 = vld [vmem:[#allocation26_spill] sm:$0xff] }
 0xabb   : > { %7212 = vmatprep.subr.bf16.mxu0 %v11163_v47  ;;  %7244 = vmatprep.subr.bf16.mxu1 %v11164_v16  ;;  %v11173_v47 = vld [vmem:[#allocation27_spill] sm:$0xff]  ;;  %v11174_v16 = vld [vmem:[#allocation28_spill] sm:$0xff] }
 0xabc   : > { %4478 = vmatprep.mubr.f32.mxu0 %v11165_v49  ;;  %4549 = vmatprep.mubr.f32.mxu1 %v11165_v49  ;;  %v11176_v49 = vld [vmem:[#allocation30_spill] sm:$0xff] }
 0xabe   : > { %7214 = vmatpush1.bf16.msra.mxu0 %v11166_v45  ;;  %7246 = vmatpush1.bf16.msra.mxu1 %v11167_v22  ;;  %v11177_v45 = vld [vmem:[#allocation31_spill] sm:$0xff]  ;;  %v11178_v22 = vld [vmem:[#allocation32_spill] sm:$0xff] }
 0xabf   : > { %7216 = vmatprep.subr.bf16.mxu0 %v11168_v5  ;;  %7248 = vmatprep.subr.bf16.mxu1 %v11169_v31  ;;  %v11179_v5 = vld [vmem:[#allocation33_spill] sm:$0xff]  ;;  %v11180_v31 = vld [vmem:[#allocation34_spill] sm:$0xff] }
 0xac2   : > { %7218 = vmatpush1.bf16.msra.mxu0 %v11170_v13  ;;  %7250 = vmatpush1.bf16.msra.mxu1 %v11171_v17  ;;  %v11181_v13 = vld [vmem:[#allocation35_spill] sm:$0xff]  ;;  %v11182_v17 = vld [vmem:[#allocation36_spill] sm:$0xff] }
 0xac3   : > { %7220 = vmatprep.subr.bf16.mxu0 %v11172_v61  ;;  %7252 = vmatprep.subr.bf16.mxu1 %v11173_v47  ;;  %v11183_v61 = vld [vmem:[#allocation37_spill] sm:$0xff]  ;;  %v11184_v47 = vld [vmem:[#allocation38_spill] sm:$0xff] }
 0xac6   : > { %7222 = vmatpush1.bf16.msra.mxu0 %v11174_v16  ;;  %7254 = vmatpush1.bf16.msra.mxu1 %v11175_v30  ;;  %v11185_v16 = vld [vmem:[#allocation39_spill] sm:$0xff]  ;;  %v11186_v30 = vld [vmem:[#allocation40_spill] sm:$0xff] }
 0xac7   : > { %7224 = vmatprep.subr.bf16.mxu0 %v11176_v49  ;;  %7256 = vmatprep.subr.bf16.mxu1 %v11177_v45  ;;  %v11187_v49 = vld [vmem:[#allocation41_spill] sm:$0xff]  ;;  %v11188_v45 = vld [vmem:[#allocation42_spill] sm:$0xff] }
 0xaca   : > { %7226 = vmatpush1.bf16.msra.mxu0 %v11178_v22  ;;  %7258 = vmatpush1.bf16.msra.mxu1 %v11179_v5  ;;  %v11189_v22 = vld [vmem:[#allocation43_spill] sm:$0xff]  ;;  %v11190_v5 = vld [vmem:[#allocation44_spill] sm:$0xff] }
 0xacb   : > { %7228 = vmatprep.subr.bf16.mxu0 %v11180_v31  ;;  %7260 = vmatprep.subr.bf16.mxu1 %v11181_v13  ;;  %v11191_v31 = vld [vmem:[#allocation45_spill] sm:$0xff]  ;;  %v11192_v13 = vld [vmem:[#allocation46_spill] sm:$0xff] }
 0xace   : > { %7230 = vmatpush1.bf16.msra.mxu0 %v11182_v17  ;;  %7262 = vmatpush1.bf16.msra.mxu1 %v11183_v61  ;;  %v11193_v17 = vld [vmem:[#allocation47_spill] sm:$0xff]  ;;  %v11194_v61 = vld [vmem:[#allocation49_spill] sm:$0xff] }
 0xacf   : > { %7232 = vmatprep.subr.bf16.mxu0 %v11184_v47  ;;  %7264 = vmatprep.subr.bf16.mxu1 %v11185_v16  ;;  %v11195_v47 = vld [vmem:[#allocation55_spill] sm:$0xff]  ;;  %v11196_v16 = vld [vmem:[#allocation56_spill] sm:$0xff] }
 0xad0   : > { %v540_v11 = vadd.f32 %v11195_v47, %v11194_v61 }
 0xad2   : > { %7234 = vmatpush1.bf16.msra.mxu0 %v11186_v30  ;;  %7266 = vmatpush1.bf16.msra.mxu1 %v11187_v49  ;;  %v542_v30 = vadd.f32 %v11196_v16, %v10771_v9  ;;  %v11215_v9 = vld [vmem:[#allocation97_spill] sm:$0xff] }
 0xad3   : > { %7236 = vmatprep.subr.bf16.mxu0 %v11188_v45  ;;  %7268 = vmatprep.subr.bf16.mxu1 %v11189_v22 }
 0xad6   : > { %7238 = vmatpush1.bf16.msra.mxu0 %v11190_v5  ;;  %7270 = vmatpush1.bf16.msra.mxu1 %v11191_v31 }
 0xad7   : > { %7272 = vmatprep.subr.bf16.mxu0 %v11192_v13  ;;  %7336 = vmatprep.subr.bf16.mxu1 %v11193_v17 }
 0xb43   : > { %v4137_v39 = vpop.f32.mrb[38].mxu0  ;;  %v4208_v49 = vpop.f32.mrb[28].mxu1 }
 0xb44   : > { %v4213_v55 = vadd.f32 %v4137_v39, %v540_v11  ;;  %v4139_v45 = vpop.f32.mrb[39].mxu0  ;;  %v4210_v41 = vpop.f32.mrb[29].mxu1  ;;  %v7601_v17 = vadd.f32 %v4208_v49, %v10711_v29 }
 0xb45   : > { %v4214_v22 = vadd.f32 %v4139_v45, %v542_v30  ;;  %v7602_v31 = vadd.f32 %v4210_v41, %v10710_v3 }
 0xb46   : > { %v5207_v18 = vmul.f32 -1.442695, %v4213_v55 }
 0xb47   : > { %v5208_v5 = vmul.f32 -1.442695, %v4214_v22  ;;  %v5209_v13 = vmul.f32 -1.442695, %v7602_v31 }
 0xb48   : > { %8011 = vpow2.f32 %v5207_v18 }
 0xb49   : > { %8013 = vpow2.f32 %v5208_v5 }
 0xb4a   : > { %8015 = vpow2.f32 %v5209_v13 }
 0xb4b   : > { %8017 = vtanh.f32 %v7601_v17 }
 0xb52   : > { %v8012_v1 = vpop.eup %8011 }
 0xb53   : > { %v8014_v47 = vpop.eup %8013  ;;  %v4220_v61 = vadd.f32 1.0, %v8012_v1 }
 0xb54   : > { %v4226_v16 = vadd.f32 1.0, %v8014_v47  ;;  %v8016_v39 = vpop.eup %8015 }
 0xb55   : > { %8019 = vrcp.f32 %v4220_v61  ;;  %v8018_v11 = vpop.eup %8017  ;;  %v4233_v18 = vadd.f32 1.0, %v8016_v39 }
 0xb56   : > { %8021 = vrcp.f32 %v4226_v16 }
 0xb57   : > { %8023 = vrcp.f32 %v4233_v18 }
 0xb5f   : > { %v8020_v30 = vpop.eup %8019 }
 0xb60   : > { %v8022_v55 = vpop.eup %8021  ;;  %v4237_v45 = vmul.f32 %v8020_v30, %v8018_v11 }
 0xb61   : > { %v4236_v22 = vmul.f32 %v8022_v55, %v9868_v52  ;;  %v8024_v49 = vpop.eup %8023  ;;  %v11198_v55 = vld [vmem:[#allocation126_spill] sm:$0xff] }
 0xb63   : > { %v9990_v41 = vadd.f32 %v4237_v45, %v4236_v22  ;;  %v11199_v22 = vld [vmem:[#allocation101_spill] sm:$0xff] }
 0xb65   : > { %11197 = vst [vmem:[#allocation98_spill] sm:$0xff] %v9990_v41  ;;  %8025 = vtanh.f32 %v9990_v41 }
 0xb6f   : > { %v8026_v1 = vpop.eup %8025 }
 0xb70   : > { %v9993_v13 = vmul.f32 %v8026_v1, %v8024_v49  ;;  %v11200_v49 = vld [vmem:[#allocation102_spill] sm:$0xff] }
 0xb72   : > { %4479 = vmatmul.mubr.f32.vlgmr.msra.gmra.mrb[42].mxu0 %v9993_v13  ;;  %4550 = vmatmul.mubr.f32.vlgmr.msra.gmra.mrb[30].mxu1 %v9993_v13 }
 0xb73   : > { %7274 = vmatpush1.bf16.msra.mxu0 %v10713_v32  ;;  %7338 = vmatpush1.bf16.msra.mxu1 %v10772_v63 }
 0xb74   : > { %7276 = vmatprep.subr.bf16.mxu0 %v10773_v4  ;;  %7340 = vmatprep.subr.bf16.mxu1 %v10831_v42 }
 0xb77   : > { %7278 = vmatpush1.bf16.msra.mxu0 %v10832_v54  ;;  %7342 = vmatpush1.bf16.msra.mxu1 %v10890_v24 }
 0xb78   : > { %7280 = vmatprep.subr.bf16.mxu0 %v10891_v33  ;;  %7344 = vmatprep.subr.bf16.mxu1 %v10892_v7 }
 0xb7b   : > { %7282 = vmatpush1.bf16.msra.mxu0 %v10949_v23  ;;  %7346 = vmatpush1.bf16.msra.mxu1 %v10950_v44 }
 0xb7c   : > { %7284 = vmatprep.subr.bf16.mxu0 %v10951_v60  ;;  %7348 = vmatprep.subr.bf16.mxu1 %v10952_v37 }
 0xb7f   : > { %7286 = vmatpush1.bf16.msra.mxu0 %v10953_v27  ;;  %7350 = vmatpush1.bf16.msra.mxu1 %v10954_v26 }
 0xb80   : > { %7288 = vmatprep.subr.bf16.mxu0 %v11009_v62  ;;  %7352 = vmatprep.subr.bf16.mxu1 %v11010_v57 }
 0xb83   : > { %7290 = vmatpush1.bf16.msra.mxu0 %v11011_v12  ;;  %7354 = vmatpush1.bf16.msra.mxu1 %v11012_v51 }
 0xb84   : > { %7292 = vmatprep.subr.bf16.mxu0 %v10958_v50  ;;  %7356 = vmatprep.subr.bf16.mxu1 %v10904_v6 }
 0xb87   : > { %7294 = vmatpush1.bf16.msra.mxu0 %v11013_v59  ;;  %7358 = vmatpush1.bf16.msra.mxu1 %v10905_v8 }
 0xb88   : > { %7296 = vmatprep.subr.bf16.mxu0 %v10959_v34  ;;  %7360 = vmatprep.subr.bf16.mxu1 %v10850_v40 }
 0xb8b   : > { %7298 = vmatpush1.bf16.msra.mxu0 %v10851_v2  ;;  %7362 = vmatpush1.bf16.msra.mxu1 %v10852_v25 }
 0xb8c   : > { %v4307_v52 = vpop.f32.mrb[40].mxu0  ;;  %v4378_v17 = vpop.f32.mrb[50].mxu1  ;;  %7300 = vmatprep.subr.bf16.mxu0 %v10853_v15  ;;  %7364 = vmatprep.subr.bf16.mxu1 %v10796_v14 }
 0xb8d   : > { %v4308_v61 = vadd.f32 %v4307_v52, %v10960_v0  ;;  %v4309_v5 = vpop.f32.mrb[41].mxu0  ;;  %v4380_v31 = vpop.f32.mrb[51].mxu1  ;;  %v4379_v45 = vadd.f32 %v4378_v17, %v11198_v55  ;;  %v11205_v17 = vld [vmem:[#allocation107_spill] sm:$0xff]  ;;  %v11210_v55 = vld [vmem:[#allocation112_spill] sm:$0xff] }
 0xb8e   : > { %v4310_v47 = vadd.f32 %v4309_v5, %v10849_v46  ;;  %v4381_v11 = vadd.f32 %v4380_v31, %v10797_v56  ;;  %v11202_v5 = vld [vmem:[#allocation104_spill] sm:$0xff]  ;;  %v11213_v46 = vld [vmem:[#allocation115_spill] sm:$0xff] }
 0xb8f   : > { %v5210_v16 = vmul.f32 -1.442695, %v4308_v61  ;;  %7302 = vmatpush1.bf16.msra.mxu0 %v10907_v58  ;;  %7366 = vmatpush1.bf16.msra.mxu1 %v10908_v43  ;;  %v11201_v61 = vld [vmem:[#allocation103_spill] sm:$0xff]  ;;  %v11214_v0 = vld [vmem:[#allocation116_spill] sm:$0xff] }
 0xb90   : > { %v5211_v39 = vmul.f32 -1.442695, %v4310_v47  ;;  %7304 = vmatprep.subr.bf16.mxu0 %v10799_v36  ;;  %7368 = vmatprep.subr.bf16.mxu1 %v10800_v19  ;;  %v5212_v30 = vmul.f32 -1.442695, %v4381_v11  ;;  %v11203_v47 = vld [vmem:[#allocation105_spill] sm:$0xff] }
 0xb91   : > { %8027 = vpow2.f32 %v5210_v16  ;;  %v11204_v16 = vld [vmem:[#allocation106_spill] sm:$0xff]  ;;  %v11207_v11 = vld [vmem:[#allocation109_spill] sm:$0xff] }
 0xb92   : > { %8029 = vpow2.f32 %v5211_v39  ;;  %v11206_v39 = vld [vmem:[#allocation108_spill] sm:$0xff] }
 0xb93   : > { %7306 = vmatpush1.bf16.msra.mxu0 %v10801_v10  ;;  %7370 = vmatpush1.bf16.msra.mxu1 %v10802_v21  ;;  %8031 = vpow2.f32 %v5212_v30  ;;  %v11209_v30 = vld [vmem:[#allocation111_spill] sm:$0xff] }
 0xb94   : > { %7308 = vmatprep.subr.bf16.mxu0 %v10856_v20  ;;  %7372 = vmatprep.subr.bf16.mxu1 %v10747_v48  ;;  %8033 = vtanh.f32 %v4379_v45 }
 0xb97   : > { %7310 = vmatpush1.bf16.msra.mxu0 %v10748_v38  ;;  %7374 = vmatpush1.bf16.msra.mxu1 %v10749_v35 }
 0xb98   : > { %7312 = vmatprep.subr.bf16.mxu0 %v10750_v53  ;;  %7376 = vmatprep.subr.bf16.mxu1 %v11134_v28 }
 0xb9b   : > { %v8028_v18 = vpop.eup %8027  ;;  %7314 = vmatpush1.bf16.msra.mxu0 %v11199_v22  ;;  %7378 = vmatpush1.bf16.msra.mxu1 %v11200_v49 }
 0xb9c   : > { %v8030_v1 = vpop.eup %8029  ;;  %v4386_v52 = vadd.f32 1.0, %v8028_v18  ;;  %7316 = vmatprep.subr.bf16.mxu0 %v11201_v61  ;;  %7380 = vmatprep.subr.bf16.mxu1 %v11202_v5  ;;  %v11208_v18 = vld [vmem:[#allocation110_spill] sm:$0xff] }
 0xb9d   : > { %v4392_v31 = vadd.f32 1.0, %v8030_v1  ;;  %v8032_v45 = vpop.eup %8031 }
 0xb9e   : > { %8035 = vrcp.f32 %v4386_v52  ;;  %v8034_v1 = vpop.eup %8033  ;;  %v11211_v52 = vld [vmem:[#allocation113_spill] sm:$0xff]  ;;  %v4399_v3 = vadd.f32 1.0, %v8032_v45 }
 0xb9f   : > { %8037 = vrcp.f32 %v4392_v31  ;;  %7318 = vmatpush1.bf16.msra.mxu0 %v11203_v47  ;;  %7382 = vmatpush1.bf16.msra.mxu1 %v11204_v16  ;;  %v11212_v31 = vld [vmem:[#allocation114_spill] sm:$0xff] }
 0xba0   : > { %7320 = vmatprep.subr.bf16.mxu0 %v11205_v17  ;;  %7384 = vmatprep.subr.bf16.mxu1 %v11206_v39  ;;  %v11219_v39 = vld [vmem:[#allocation120_spill] sm:$0xff]  ;;  %8039 = vrcp.f32 %v4399_v3 }
 0xba1   : > { %v11224_v3 = vld [vmem:[#allocation108_spill] sm:$0xff] }
 0xba3   : > { %7322 = vmatpush1.bf16.msra.mxu0 %v11207_v11  ;;  %7386 = vmatpush1.bf16.msra.mxu1 %v11208_v18  ;;  %v11216_v11 = vld [vmem:[#allocation117_spill] sm:$0xff] }
 0xba4   : > { %7324 = vmatprep.subr.bf16.mxu0 %v11209_v30  ;;  %7388 = vmatprep.subr.bf16.mxu1 %v11210_v55  ;;  %v11217_v30 = vld [vmem:[#allocation118_spill] sm:$0xff]  ;;  %v11218_v55 = vld [vmem:[#allocation119_spill] sm:$0xff] }
 0xba7   : > { %7326 = vmatpush1.bf16.msra.mxu0 %v11211_v52  ;;  %7390 = vmatpush1.bf16.msra.mxu1 %v11212_v31 }
 0xba8   : > { %v8036_v56 = vpop.eup %8035  ;;  %7328 = vmatprep.subr.bf16.mxu0 %v11213_v46  ;;  %7392 = vmatprep.subr.bf16.mxu1 %v11214_v0  ;;  %v11220_v46 = vld [vmem:[#allocation121_spill] sm:$0xff]  ;;  %v11221_v0 = vld [vmem:[#allocation122_spill] sm:$0xff] }
 0xba9   : > { %v8038_v41 = vpop.eup %8037  ;;  %v4403_v29 = vmul.f32 %v8036_v56, %v8034_v1  ;;  %v11222_v56 = vld [vmem:[#allocation46_spill] sm:$0xff] }
 0xbaa   : > { %v4402_v18 = vmul.f32 %v8038_v41, %v11215_v9  ;;  %v11223_v9 = vld [vmem:[#allocation47_spill] sm:$0xff]  ;;  %v8040_v41 = vpop.eup %8039 }
 0xbab   : > { %7330 = vmatpush1.bf16.msra.mxu0 %v11216_v11  ;;  %7394 = vmatpush1.bf16.msra.mxu1 %v11217_v30 }
 0xbac   : > { %7332 = vmatprep.subr.bf16.mxu0 %v11218_v55  ;;  %7396 = vmatprep.subr.bf16.mxu1 %v11219_v39  ;;  %v10062_v52 = vadd.f32 %v4403_v29, %v4402_v18  ;;  %v11227_v29 = vld [vmem:[#allocation111_spill] sm:$0xff] }
 0xbae   : > { %8041 = vtanh.f32 %v10062_v52 }
 0xbaf   : > { %7334 = vmatpush1.bf16.msra.mxu0 %v11220_v46  ;;  %7398 = vmatpush1.bf16.msra.mxu1 %v11221_v0 }
 0xbb0   : > { %7400 = vmatprep.subr.bf16.mxu0 %v11222_v56  ;;  %7464 = vmatprep.subr.bf16.mxu1 %v11223_v9 }
 0xbb8   : > { %v8042_v45 = vpop.eup %8041 }
 0xbb9   : > { %v4406_v1 = vmul.f32 %v8042_v45, %v8040_v41 }
 0xbbb   : > { %4648 = vmatprep.mubr.f32.mxu0 %v4406_v1  ;;  %4719 = vmatprep.mubr.f32.mxu1 %v4406_v1 }
 0xbbc   : > { %4649 = vmatmul.mubr.f32.vlgmr.msra.gmra.mrb[44].mxu0 %v9993_v13  ;;  %4720 = vmatmul.mubr.f32.vlgmr.msra.gmra.mrb[52].mxu1 %v9993_v13 }
 0xbbd   : > { %7402 = vmatpush1.bf16.msra.mxu0 %v10713_v32  ;;  %7466 = vmatpush1.bf16.msra.mxu1 %v10772_v63  ;;  %v11228_v32 = vld [vmem:[#allocation112_spill] sm:$0xff]  ;;  %v11232_v63 = vld [vmem:[#allocation49_spill] sm:$0xff] }
 0xbbe   : > { %7404 = vmatprep.subr.bf16.mxu0 %v10773_v4  ;;  %7468 = vmatprep.subr.bf16.mxu1 %v10831_v42  ;;  %v11233_v4 = vld [vmem:[#allocation57_spill] sm:$0xff] }
 0xbc1   : > { %7406 = vmatpush1.bf16.msra.mxu0 %v10832_v54  ;;  %7470 = vmatpush1.bf16.msra.mxu1 %v10890_v24  ;;  %v11236_v24 = vld [vmem:[#allocation60_spill] sm:$0xff] }
 0xbc2   : > { %7408 = vmatprep.subr.bf16.mxu0 %v10891_v33  ;;  %7472 = vmatprep.subr.bf16.mxu1 %v10892_v7  ;;  %v11237_v7 = vld [vmem:[#allocation59_spill] sm:$0xff] }
 0xbc5   : > { %7410 = vmatpush1.bf16.msra.mxu0 %v10949_v23  ;;  %7474 = vmatpush1.bf16.msra.mxu1 %v10950_v44 }
 0xbc6   : > { %7412 = vmatprep.subr.bf16.mxu0 %v10951_v60  ;;  %7476 = vmatprep.subr.bf16.mxu1 %v10952_v37 }
 0xbc9   : > { %7414 = vmatpush1.bf16.msra.mxu0 %v10953_v27  ;;  %7478 = vmatpush1.bf16.msra.mxu1 %v10954_v26 }
 0xbca   : > { %7416 = vmatprep.subr.bf16.mxu0 %v11009_v62  ;;  %7480 = vmatprep.subr.bf16.mxu1 %v11010_v57 }
 0xbcd   : > { %7418 = vmatpush1.bf16.msra.mxu0 %v11011_v12  ;;  %7482 = vmatpush1.bf16.msra.mxu1 %v11012_v51 }
 0xbce   : > { %7420 = vmatprep.subr.bf16.mxu0 %v10958_v50  ;;  %7484 = vmatprep.subr.bf16.mxu1 %v10904_v6 }
 0xbd1   : > { %7422 = vmatpush1.bf16.msra.mxu0 %v11013_v59  ;;  %7486 = vmatpush1.bf16.msra.mxu1 %v10905_v8 }
 0xbd2   : > { %7424 = vmatprep.subr.bf16.mxu0 %v10959_v34  ;;  %7488 = vmatprep.subr.bf16.mxu1 %v10850_v40 }
 0xbd5   : > { %7426 = vmatpush1.bf16.msra.mxu0 %v10851_v2  ;;  %7490 = vmatpush1.bf16.msra.mxu1 %v10852_v25 }
 0xbd6   : > { %7428 = vmatprep.subr.bf16.mxu0 %v10853_v15  ;;  %7492 = vmatprep.subr.bf16.mxu1 %v10796_v14  ;;  %v11235_v14 = vld [vmem:[#allocation58_spill] sm:$0xff] }
 0xbd9   : > { %7430 = vmatpush1.bf16.msra.mxu0 %v10907_v58  ;;  %7494 = vmatpush1.bf16.msra.mxu1 %v10908_v43  ;;  %v11234_v43 = vld [vmem:[#allocation50_spill] sm:$0xff] }
 0xbda   : > { %7432 = vmatprep.subr.bf16.mxu0 %v10799_v36  ;;  %7496 = vmatprep.subr.bf16.mxu1 %v10800_v19  ;;  %v11225_v19 = vld [vmem:[#allocation109_spill] sm:$0xff]  ;;  %v548_v36 = vadd.f32 %v11235_v14, %v11234_v43  ;;  %v8224_v14 = vmov 0.0|0.0  }
 0xbdd   : > { %7434 = vmatpush1.bf16.msra.mxu0 %v10801_v10  ;;  %7498 = vmatpush1.bf16.msra.mxu1 %v10802_v21  ;;  %v546_v21 = vadd.f32 %v11233_v4, %v11232_v63 }
 0xbde   : > { %7436 = vmatprep.subr.bf16.mxu0 %v10856_v20  ;;  %7500 = vmatprep.subr.bf16.mxu1 %v10747_v48  ;;  %v11230_v48 = vld [vmem:[#allocation115_spill] sm:$0xff] }
 0xbe1   : > { %7438 = vmatpush1.bf16.msra.mxu0 %v10748_v38  ;;  %7502 = vmatpush1.bf16.msra.mxu1 %v10749_v35  ;;  %v11226_v35 = vld [vmem:[#allocation110_spill] sm:$0xff]  ;;  %v11229_v38 = vld [vmem:[#allocation113_spill] sm:$0xff] }
 0xbe2   : > { %7440 = vmatprep.subr.bf16.mxu0 %v10750_v53  ;;  %7504 = vmatprep.subr.bf16.mxu1 %v11134_v28  ;;  %v11231_v53 = vld [vmem:[#allocation116_spill] sm:$0xff] }
 0xbe5   : > { %7442 = vmatpush1.bf16.msra.mxu0 %v11199_v22  ;;  %7506 = vmatpush1.bf16.msra.mxu1 %v11200_v49 }
 0xbe6   : > { %7444 = vmatprep.subr.bf16.mxu0 %v11201_v61  ;;  %7508 = vmatprep.subr.bf16.mxu1 %v11202_v5  ;;  %v11240_v5 = vld [vmem:[#allocation124_spill] sm:$0xff] }
 0xbe9   : > { %7446 = vmatpush1.bf16.msra.mxu0 %v11203_v47  ;;  %7510 = vmatpush1.bf16.msra.mxu1 %v11204_v16 }
 0xbea   : > { %7448 = vmatprep.subr.bf16.mxu0 %v11205_v17  ;;  %7512 = vmatprep.subr.bf16.mxu1 %v11224_v3 }
 0xbed   : > { %7450 = vmatpush1.bf16.msra.mxu0 %v11225_v19  ;;  %7514 = vmatpush1.bf16.msra.mxu1 %v11226_v35 }
 0xbee   : > { %7452 = vmatprep.subr.bf16.mxu0 %v11227_v29  ;;  %7516 = vmatprep.subr.bf16.mxu1 %v11228_v32 }
 0xbf1   : > { %7454 = vmatpush1.bf16.msra.mxu0 %v11229_v38  ;;  %7518 = vmatpush1.bf16.msra.mxu1 %v11212_v31 }
 0xbf2   : > { %7456 = vmatprep.subr.bf16.mxu0 %v11230_v48  ;;  %7520 = vmatprep.subr.bf16.mxu1 %v11231_v53 }
 0xbf5   : > { %7458 = vmatpush1.bf16.msra.mxu0 %v11216_v11  ;;  %7522 = vmatpush1.bf16.msra.mxu1 %v11217_v30  ;;  %v11242_v30 = vld [vmem:[#allocation126_spill] sm:$0xff] }
 0xbf6   : > { %7460 = vmatprep.subr.bf16.mxu0 %v11218_v55  ;;  %7524 = vmatprep.subr.bf16.mxu1 %v11219_v39  ;;  %v11239_v55 = vld [vmem:[#allocation48_spill] sm:$0xff]  ;;  %v11241_v39 = vld [vmem:[#allocation125_spill] sm:$0xff] }
 0xbf9   : > { %7462 = vmatpush1.bf16.msra.mxu0 %v11220_v46  ;;  %7526 = vmatpush1.bf16.msra.mxu1 %v11221_v0  ;;  %v11238_v0 = vld [vmem:[#allocation98_spill] sm:$0xff] }
 0xbfa   : > { %7527 = vmatprep.subr.bf16.mxu0 %v8224_v14 }
 0xc45   : > { %v4480_v10 = vpop.f32.mrb[42].mxu0  ;;  %v4551_v42 = vpop.f32.mrb[30].mxu1 }
 0xc46   : > { %v4556_v54 = vadd.f32 %v4480_v10, %v546_v21  ;;  %v4482_v2 = vpop.f32.mrb[43].mxu0  ;;  %v4553_v25 = vpop.f32.mrb[31].mxu1  ;;  %v7603_v8 = vadd.f32 %v4551_v42, %v11237_v7  ;;  %v4916_v21 = vld [vmem:[%s10258_s6] sm:$0xff]  ;;  %v4919_v10 = vld [vmem:[%s10258_s6 + $0x18] sm:$0xff]  ;;  %v4926_v7 = vld [vmem:[%s10258_s6 + $0x50] sm:$0xff] }
 0xc47   : > { %v4557_v40 = vadd.f32 %v4482_v2, %v548_v36  ;;  %v7604_v46 = vadd.f32 %v4553_v25, %v11236_v24  ;;  %v4918_v36 = vld [vmem:[%s10258_s6 + $0x10] sm:$0xff]  ;;  %v4921_v2 = vld [vmem:[%s10258_s6 + $0x28] sm:$0xff]  ;;  %v4924_v24 = vld [vmem:[%s10258_s6 + $0x40] sm:$0xff] }
 0xc48   : > { %v5213_v15 = vmul.f32 -1.442695, %v4556_v54  ;;  %v7531_v42 = vpack.c.bf16 %v4919_v10, %v4918_v36  ;;  %v4920_v54 = vld [vmem:[%s10258_s6 + $0x20] sm:$0xff] }
 0xc49   : > { %v5214_v20 = vmul.f32 -1.442695, %v4557_v40  ;;  %v5215_v33 = vmul.f32 -1.442695, %v7604_v46  ;;  %v7534_v25 = vpack.c.bf16 %v4921_v2, %v4920_v54  ;;  %v4922_v40 = vld [vmem:[%s10258_s6 + $0x30] sm:$0xff]  ;;  %v4925_v46 = vld [vmem:[%s10258_s6 + $0x48] sm:$0xff] }
 0xc4a   : > { %8043 = vpow2.f32 %v5213_v15  ;;  %v4923_v15 = vld [vmem:[%s10258_s6 + $0x38] sm:$0xff] }
 0xc4b   : > { %8045 = vpow2.f32 %v5214_v20  ;;  %v7537_v20 = vpack.c.bf16 %v4923_v15, %v4922_v40 }
 0xc4c   : > { %8047 = vpow2.f32 %v5215_v33  ;;  %v7540_v33 = vpack.c.bf16 %v4925_v46, %v4924_v24 }
 0xc4d   : > { %8049 = vtanh.f32 %v7603_v8  ;;  %v4927_v8 = vld [vmem:[%s10258_s6 + $0x58] sm:$0xff] }
 0xc54   : > { %v8044_v58 = vpop.eup %8043 }
 0xc55   : > { %v8046_v6 = vpop.eup %8045  ;;  %v4563_v23 = vadd.f32 1.0, %v8044_v58  ;;  %v4928_v58 = vld [vmem:[%s10258_s6 + $0x60] sm:$0xff] }
 0xc56   : > { %v4569_v44 = vadd.f32 1.0, %v8046_v6  ;;  %v8048_v60 = vpop.eup %8047  ;;  %v7543_v6 = vpack.c.bf16 %v4927_v8, %v4926_v7 }
 0xc57   : > { %8051 = vrcp.f32 %v4563_v23  ;;  %v8050_v37 = vpop.eup %8049  ;;  %v4576_v34 = vadd.f32 1.0, %v8048_v60  ;;  %v4929_v23 = vld [vmem:[%s10258_s6 + $0x68] sm:$0xff] }
 0xc58   : > { %8053 = vrcp.f32 %v4569_v44  ;;  %v11243_v44 = vmov 0.0   ;;  %v7546_v60 = vpack.c.bf16 %v4929_v23, %v4928_v58 }
 0xc59   : > { %8055 = vrcp.f32 %v4576_v34 }
 0xc61   : > { %v8052_v27 = vpop.eup %8051 }
 0xc62   : > { %v8054_v26 = vpop.eup %8053  ;;  %v4580_v50 = vmul.f32 %v8052_v27, %v8050_v37  ;;  %v4930_v37 = vld [vmem:[%s10258_s6 + $0x70] sm:$0xff]  ;;  %v4931_v27 = vld [vmem:[%s10258_s6 + $0x78] sm:$0xff] }
 0xc63   : > { %v4579_v62 = vmul.f32 %v8054_v26, %v11238_v0  ;;  %v8056_v12 = vpop.eup %8055  ;;  %v7549_v26 = vpack.c.bf16 %v4931_v27, %v4930_v37 }
 0xc65   : > { %v4581_v57 = vadd.f32 %v4580_v50, %v4579_v62 }
 0xc67   : > { %8057 = vtanh.f32 %v4581_v57 }
 0xc71   : > { %v8058_v51 = vpop.eup %8057 }
 0xc72   : > { %v4583_v59 = vmul.f32 %v8058_v51, %v8056_v12 }
 0xc8f   : > { %v4650_v28 = vpop.f32.mrb[44].mxu0  ;;  %v4721_v13 = vpop.f32.mrb[52].mxu1 }
 0xc90   : > { %v4651_v22 = vadd.f32 %v4650_v28, %v11239_v55  ;;  %v4652_v49 = vpop.f32.mrb[45].mxu0  ;;  %v4723_v61 = vpop.f32.mrb[53].mxu1  ;;  %v4722_v31 = vadd.f32 %v4721_v13, %v11242_v30 }
 0xc91   : > { %v4653_v47 = vadd.f32 %v4652_v49, %v11240_v5  ;;  %v4724_v11 = vadd.f32 %v4723_v61, %v11241_v39 }
 0xc92   : > { %v5216_v16 = vmul.f32 -1.442695, %v4651_v22 }
 0xc93   : > { %v5217_v17 = vmul.f32 -1.442695, %v4653_v47  ;;  %v5218_v18 = vmul.f32 -1.442695, %v4724_v11 }
 0xc94   : > { %8059 = vpow2.f32 %v5216_v16 }
 0xc95   : > { %8061 = vpow2.f32 %v5217_v17 }
 0xc96   : > { %8063 = vpow2.f32 %v5218_v18 }
 0xc97   : > { %8065 = vtanh.f32 %v4722_v31 }
 0xc9e   : > { %v8060_v56 = vpop.eup %8059 }
 0xc9f   : > { %v8062_v9 = vpop.eup %8061  ;;  %v4729_v41 = vadd.f32 1.0, %v8060_v56 }
 0xca0   : > { %v4735_v45 = vadd.f32 1.0, %v8062_v9  ;;  %v8064_v1 = vpop.eup %8063 }
 0xca1   : > { %8067 = vrcp.f32 %v4729_v41  ;;  %v8066_v3 = vpop.eup %8065  ;;  %v4742_v32 = vadd.f32 1.0, %v8064_v1 }
 0xca2   : > { %8069 = vrcp.f32 %v4735_v45  ;;  %v5222_v45 = vld [vmem:[%s10259_s7] ss:$0 sm:$0xff] }
 0xca3   : > { %8071 = vrcp.f32 %v4742_v32 }
 0xcab   : > { %v8068_v19 = vpop.eup %8067 }
 0xcac   : > { %v8070_v35 = vpop.eup %8069  ;;  %v4746_v29 = vmul.f32 %v8068_v19, %v8066_v3 }
 0xcad   : > { %v4745_v38 = vmul.f32 %v8070_v35, %v10062_v52  ;;  %v8072_v53 = vpop.eup %8071  ;;  %v4917_v52 = vld [vmem:[%s10258_s6 + $0x8] sm:$0xff] }
 0xcae   : > { %v7528_v43 = vpack.c.bf16 %v4917_v52, %v4916_v21 }
 0xcaf   : > { %v10145_v48 = vadd.f32 %v4746_v29, %v4745_v38 }
 0xcb1   : > { %8073 = vtanh.f32 %v10145_v48 }
 0xcbb   : > { %v8074_v63 = vpop.eup %8073 }
 0xcbc   : > { %v4749_v4 = vmul.f32 %v8074_v63, %v8072_v53 }
 0xcbe   : > { %4814 = vmatprep.mubr.f32.mxu0 %v4749_v4  ;;  %4885 = vmatprep.mubr.f32.mxu1 %v4749_v4 }
 0xcbf   : > { %4815 = vmatmul.mubr.f32.vlgmr.msra.gmra.mrb[46].mxu0 %v4583_v59  ;;  %4886 = vmatmul.mubr.f32.vlgmr.msra.gmra.mrb[54].mxu1 %v4583_v59 }
 0xcc0   : > { %7529 = vmatpush3.bf16.msra.mxu0 %v7528_v43  ;;  %5276 = vmatprep.mubr.msk.f32.mxu0 %vm8225_vm1, %v11243_v44 }
 0xcc1   : > { %7530 = vmatprep.subr.bf16.mxu0 %v8224_v14 }
 0xcc4   : > { %7532 = vmatpush3.bf16.msra.mxu0 %v7531_v42 }
 0xcc5   : > { %7533 = vmatprep.subr.bf16.mxu0 %v8224_v14 }
 0xcc8   : > { %7535 = vmatpush3.bf16.msra.mxu0 %v7534_v25 }
 0xcc9   : > { %7536 = vmatprep.subr.bf16.mxu0 %v8224_v14 }
 0xccc   : > { %7538 = vmatpush3.bf16.msra.mxu0 %v7537_v20 }
 0xccd   : > { %7539 = vmatprep.subr.bf16.mxu0 %v8224_v14 }
 0xcd0   : > { %7541 = vmatpush3.bf16.msra.mxu0 %v7540_v33 }
 0xcd1   : > { %7542 = vmatprep.subr.bf16.mxu0 %v8224_v14 }
 0xcd4   : > { %7544 = vmatpush3.bf16.msra.mxu0 %v7543_v6 }
 0xcd5   : > { %7545 = vmatprep.subr.bf16.mxu0 %v8224_v14 }
 0xcd8   : > { %7547 = vmatpush3.bf16.msra.mxu0 %v7546_v60 }
 0xcd9   : > { %7548 = vmatprep.subr.bf16.mxu0 %v8224_v14 }
 0xcdc   : > { %7550 = vmatpush3.bf16.msra.mxu0 %v7549_v26 }
 0xd92   : > { %v4816_v50 = vpop.f32.mrb[46].mxu0  ;;  %v4887_v34 = vpop.f32.mrb[54].mxu1 }
 0xd93   : > { %v4817_v0 = vadd.f32 %v4816_v50, %v11239_v55  ;;  %v4818_v62 = vpop.f32.mrb[47].mxu0  ;;  %v4889_v57 = vpop.f32.mrb[55].mxu1  ;;  %v4888_v22 = vadd.f32 %v4887_v34, %v11242_v30 }
 0xd94   : > { %v4819_v12 = vadd.f32 %v4818_v62, %v11240_v5  ;;  %v4890_v28 = vadd.f32 %v4889_v57, %v11241_v39 }
 0xd95   : > { %v5219_v51 = vmul.f32 -1.442695, %v4817_v0 }
 0xd96   : > { %v5220_v59 = vmul.f32 -1.442695, %v4819_v12  ;;  %v5221_v13 = vmul.f32 -1.442695, %v4890_v28 }
 0xd97   : > { %8075 = vpow2.f32 %v5219_v51 }
 0xd98   : > { %8077 = vpow2.f32 %v5220_v59 }
 0xd99   : > { %8079 = vpow2.f32 %v5221_v13 }
 0xd9a   : > { %8081 = vtanh.f32 %v4888_v22 }
 0xda1   : > { %v8076_v49 = vpop.eup %8075 }
 0xda2   : > { %v8078_v61 = vpop.eup %8077  ;;  %v4895_v47 = vadd.f32 1.0, %v8076_v49 }
 0xda3   : > { %v4901_v16 = vadd.f32 1.0, %v8078_v61  ;;  %v8080_v55 = vpop.eup %8079 }
 0xda4   : > { %8083 = vrcp.f32 %v4895_v47  ;;  %v8082_v5 = vpop.eup %8081  ;;  %v4908_v31 = vadd.f32 1.0, %v8080_v55 }
 0xda5   : > { %8085 = vrcp.f32 %v4901_v16 }
 0xda6   : > { %8087 = vrcp.f32 %v4908_v31 }
 0xdae   : > { %v8084_v17 = vpop.eup %8083 }
 0xdaf   : > { %v8086_v11 = vpop.eup %8085  ;;  %v4912_v18 = vmul.f32 %v8084_v17, %v8082_v5 }
 0xdb0   : > { %v4911_v39 = vmul.f32 %v8086_v11, %v10145_v48  ;;  %v8088_v30 = vpop.eup %8087 }
 0xdb2   : > { %v4913_v56 = vadd.f32 %v4912_v18, %v4911_v39 }
 0xdb4   : > { %8089 = vtanh.f32 %v4913_v56 }
 0xdbe   : > { %v8090_v9 = vpop.eup %8089 }
 0xdbf   : > { %v4915_v41 = vmul.f32 %v8090_v9, %v8088_v30 }
 0xdc1   : > { %5277 = vmatmul.mubr.f32.vlgmr.msra.gmra.mrb[48].mxu0 %v4915_v41 }
 0xe94   : > { %v5005_v1 = vpop.f32.mrb[48].mxu0 }
 0xe95   : > { %v5006_v3 = vadd.f32 %v5222_v45, %v5005_v1  ;;  %v5278_v19 = vpop.f32.mrb[49].mxu0 }
 0xe97   : > { %5009 = vst [vmem:[%s328_s21] sm:$0xff] %v5006_v3 }
 0xe98   : > { %8160 = shalt.err (!%p8157_p11)
}
 0xe99   : > { %s8161_s18 = scalar_lea.hbm %s10210_s25, 128  ;;  %s8165_s14 = scalar_lea.hbm %s10260_s8, 256 }
 0xe9a   : > { %p8162_p13 = scmp.ne.s32.totalorder %s10210_s25, %s8161_s18  ;;  %p8166_p6 = scmp.lt.u32.totalorder %s10210_s25, %s10260_s8 }
 0xe9b   : > { %p8167_p9 = scmp.lt.u32.totalorder %s8165_s14, %s8161_s18  ;;  %p8169_p12 = scmp.lt.u32.totalorder %s8161_s18, %s10210_s25 }
 0xe9c   : > { %p8163_p5 = pnand %p8162_p13, %p11244_p1 }
 0xe9d   : > { %p8168_p10 = por %p8167_p9, %p8166_p6 }
 0xe9e   : > { %p8164_p0 = pneg %p8163_p5 }
 0xe9f   : > { %p8170_p2 = por %p8169_p12, %p8168_p10 }
 0xea1   : > { %p8171_p3 = pnand %p8170_p2, %p8164_p0 }
 0xea3   : > { %8174 = shalt.err (!%p8171_p3)
}
 0xea4   : > { %7650 = dma.vmem_to_hbm [thread:$0]  (%p11244_p1), %s10212_s23, 128, %s10210_s25, %s5011_s26  }
 0xea5 PF: > { %p7667_p4 = scmp.ge.s32.totalorder %s8217_s30, 2  ;;  %s5036_s21 = sand.u32 1, %s8205_s27  }
 0xea6   : > { %p11245_p7 = scmp.ne.s32.totalorder %s10528_s16, 0  ;;  %s5037_s20 = scalar_lea.sflag [#allocation5], %s5036_s21 }
 0xea8   : > { %p7660_p8 = pnand %p7667_p4, %p11245_p7 }
 0xeaa   : > { %8200 = dma.done.wait (!%p7660_p8), %s5037_s20, 128  }
 0xeab   : > { %8202 = vsyncadd (!%p7660_p8), %s5037_s20, 4294967168  ;;  %s11246_s24 = sld [smem:[#allocation12_spill]]  ;;  %s11247_s29 = sld [smem:[#allocation13_spill]] }
 0xeac   : > { %p20_p11 = scmp.ge.s32.totalorder %s8297_s11, 4   ;;  %s11248_s27 = smov %s8209_s28 }
 0xead   : > { %s11250_s30 = smov %s8297_s11 }
 0xeae   :  { %22 = sbr.rel (!%p20_p11) target bundleno = 5 (0x5), region = 107 }
 0xeb1   : > { %s11249_s28 = smov %s11246_s24 }
 0xeb5   :  { %5042 = vsyncpa [#allocation4], 1 }
 0xeb6   :  { %5044 = vsyncpa [#allocation4 + $0x1], 1 }
 0xeb7   :  { %5045 = vsyncpa [#allocation7], 1 }
 0xeb8   :  { %5046 = vsyncpa [#allocation5], 1 }
 0xeb9   :  { %5048 = vsyncpa [#allocation5 + $0x1], 1 }

</bundles_post_ra>
